<compile_context>
chip_gen: v5e
topology: v5e:2x2
jax: 0.10.0
libtpu: 0.0.40
codegen_flags: <defaults>
</compile_context>

<pallas_src>
import functools

import jax
import jax.numpy as jnp
from jax.experimental import pallas as pl
from jax.experimental.pallas import tpu as pltpu

# ----------------------------- config (the "opt") -----------------------------
EMB_SIZE = 16
HIDDEN_SIZE = 32
NUM_LAYERS = 2
BIDIRECTIONAL = True
NUM_DIRECTIONS = 2 if BIDIRECTIONAL else 1
SUBLANE = 8
assert BIDIRECTIONAL and NUM_LAYERS == 2, "kernel is specialized for this config"


# ----------------------------- Pallas kernel ----------------------------------
def encoder_kernel(x_ref, len_ref, wih0_ref, b0_ref, whh0_ref,
                   wih1_ref, b1_ref, whh1_ref,
                   out_ref, hn_ref, cn_ref, xproj_ref):
    """Full 2-layer bidirectional LSTM encoder in one kernel invocation.

    x_ref    : (T*B, E)      time-major flattened (batch padded to 8 sublanes)
    len_ref  : (B, 1) int32  valid lengths (0 for padded batch rows)
    wih{l}   : (E_in, 8H)    [W_ih_fwd^T | W_ih_bwd^T] for layer l
    b{l}     : (1, 8H)       [b_ih_f + b_hh_f | b_ih_b + b_hh_b]
    whh{l}   : (2H, 8H)      block-diagonal [[W_hh_f^T, 0], [0, W_hh_b^T]]
    out_ref  : (T*B, 2H)     final layer outputs [fwd | bwd] (0 at padded positions)
    hn_ref   : (4, B, H)     h_n, PyTorch order (layer-major, direction-minor)
    cn_ref   : (4, B, H)     c_n
    xproj_ref: (T*B, 8H)     VMEM scratch for the hoisted input projection (reused per layer)
    """
    TB = x_ref.shape[0]
    B = len_ref.shape[0]
    T = TB // B
    H = whh0_ref.shape[0] // 2
    H4 = 4 * H

    # Hoisted once, shared by both layers and directions (JAX does not CSE broadcasts).
    # Lengths kept in VMEM (not SMEM) because they feed a vector mask over batch sublanes.
    len_bh = jnp.broadcast_to(len_ref[...], (B, H))

    def cell(pre, c_prev):
        # PyTorch gate order [i, f, g, o]; sigmoid over the full 4H row, tanh only on g lanes.
        sig = jax.nn.sigmoid(pre)
        g_g = jnp.tanh(pre[:, 2 * H:3 * H])
        i_g = sig[:, 0:H]
        f_g = sig[:, H:2 * H]
        o_g = sig[:, 3 * H:4 * H]
        c_new = f_g * c_prev + i_g * g_g
        h_new = o_g * jnp.tanh(c_new)
        return h_new, c_new

    def run_layer(x_val, wih_ref, b_ref, whh_bd_ref):
        # Hoisted input projection for BOTH directions: one (T*B, E_in) x (E_in, 8H) matmul.
        xproj_ref[...] = (
            jnp.dot(x_val, wih_ref[...], preferred_element_type=jnp.float32)
            + b_ref[...])
        w_bd = whh_bd_ref[...]                                  # (2H, 8H) block-diagonal
        zeros = jnp.zeros((B, H), jnp.float32)
        h_f, c_f, h_b, c_b = zeros, zeros, zeros, zeros
        outs_f = [None] * T
        outs_b = [None] * T
        # Interleaved, fully unrolled recurrence: step s == fwd time s and bwd time T-1-s.
        for s in range(T):
            tf, tb = s, T - 1 - s
            h_cat = jnp.concatenate([h_f, h_b], axis=-1)        # (B, 2H)
            hw = jnp.dot(h_cat, w_bd, preferred_element_type=jnp.float32)  # (B, 8H)
            pre_f = xproj_ref[tf * B:(tf + 1) * B, 0:H4] + hw[:, 0:H4]
            pre_b = xproj_ref[tb * B:(tb + 1) * B, H4:2 * H4] + hw[:, H4:2 * H4]
            hf_new, cf_new = cell(pre_f, c_f)
            hb_new, cb_new = cell(pre_b, c_b)
            valid_f = tf < len_bh                               # separate masks per direction
            valid_b = tb < len_bh
            outs_f[tf] = jnp.where(valid_f, hf_new, 0.0)
            outs_b[tb] = jnp.where(valid_b, hb_new, 0.0)
            h_f = jnp.where(valid_f, hf_new, h_f)               # hold state past length
            c_f = jnp.where(valid_f, cf_new, c_f)
            h_b = jnp.where(valid_b, hb_new, h_b)
            c_b = jnp.where(valid_b, cb_new, c_b)
        # Assemble (T*B, 2H) output off the serial path (one wide store, not 2T masked ones).
        rows = [jnp.concatenate([outs_f[t], outs_b[t]], axis=-1) for t in range(T)]
        out_val = jnp.concatenate(rows, axis=0)                 # (T*B, 2H)
        return out_val, h_f, c_f, h_b, c_b

    mid, hf0, cf0, hb0, cb0 = run_layer(x_ref[...], wih0_ref, b0_ref, whh0_ref)
    out, hf1, cf1, hb1, cb1 = run_layer(mid, wih1_ref, b1_ref, whh1_ref)

    out_ref[...] = out
    hn_ref[0] = hf0
    hn_ref[1] = hb0
    hn_ref[2] = hf1
    hn_ref[3] = hb1
    cn_ref[0] = cf0
    cn_ref[1] = cb0
    cn_ref[2] = cf1
    cn_ref[3] = cb1


def encoder_pallas(x_flat, len_col, p0, p1):
    """x_flat: (T*B_pad, E); len_col: (B_pad, 1) int32; p{l}: packed per-layer weights."""
    TB, E = x_flat.shape
    B = len_col.shape[0]
    H = HIDDEN_SIZE
    ND = NUM_LAYERS * NUM_DIRECTIONS
    out_flat, h_n, c_n = pl.pallas_call(
        encoder_kernel,
        out_shape=(
            jax.ShapeDtypeStruct((TB, 2 * H), jnp.float32),
            jax.ShapeDtypeStruct((ND, B, H), jnp.float32),
            jax.ShapeDtypeStruct((ND, B, H), jnp.float32),
        ),
        grid=(1,),
        in_specs=[
            pl.BlockSpec((TB, E), lambda i: (0, 0)),             # x (flat, time-major)
            pl.BlockSpec((B, 1), lambda i: (0, 0)),              # lengths
            pl.BlockSpec((E, 8 * H), lambda i: (0, 0)),          # layer-0 [W_ih_f^T | W_ih_b^T]
            pl.BlockSpec((1, 8 * H), lambda i: (0, 0)),          # layer-0 fused biases
            pl.BlockSpec((2 * H, 8 * H), lambda i: (0, 0)),      # layer-0 block-diag W_hh^T
            pl.BlockSpec((2 * H, 8 * H), lambda i: (0, 0)),      # layer-1 [W_ih_f^T | W_ih_b^T]
            pl.BlockSpec((1, 8 * H), lambda i: (0, 0)),          # layer-1 fused biases
            pl.BlockSpec((2 * H, 8 * H), lambda i: (0, 0)),      # layer-1 block-diag W_hh^T
        ],
        out_specs=(
            pl.BlockSpec((TB, 2 * H), lambda i: (0, 0)),         # final outputs [fwd | bwd]
            pl.BlockSpec((ND, B, H), lambda i: (0, 0, 0)),       # h_n
            pl.BlockSpec((ND, B, H), lambda i: (0, 0, 0)),       # c_n
        ),
        scratch_shapes=[pltpu.VMEM((TB, 8 * H), jnp.float32)],   # hoisted input projection
        compiler_params=pltpu.CompilerParams(
            dimension_semantics=("arbitrary",)),
    )(x_flat, len_col, p0["w_ih"], p0["bias"], p0["w_hh_bd"],
      p1["w_ih"], p1["bias"], p1["w_hh_bd"])
    return out_flat, h_n, c_n


# ----------------------------- params & weight packing -------------------------
def init_params(key):
    """Same shapes as torch.nn.LSTM(emb, hidden, num_layers, bidirectional),
    U(-1/sqrt(H), 1/sqrt(H)) init. Gate order i, f, g, o (PyTorch)."""
    k = 1.0 / jnp.sqrt(jnp.float32(HIDDEN_SIZE))
    params = {}
    for layer in range(NUM_LAYERS):
        in_size = EMB_SIZE if layer == 0 else HIDDEN_SIZE * NUM_DIRECTIONS
        for d in range(NUM_DIRECTIONS):
            key, k1, k2, k3, k4 = jax.random.split(key, 5)
            params[(layer, d)] = dict(
                w_ih=jax.random.uniform(k1, (4 * HIDDEN_SIZE, in_size), jnp.float32, -k, k),
                w_hh=jax.random.uniform(k2, (4 * HIDDEN_SIZE, HIDDEN_SIZE), jnp.float32, -k, k),
                b_ih=jax.random.uniform(k3, (4 * HIDDEN_SIZE,), jnp.float32, -k, k),
                b_hh=jax.random.uniform(k4, (4 * HIDDEN_SIZE,), jnp.float32, -k, k),
            )
    return params


def prepare_packed_params(params):
    """Pre-transpose / pre-concatenate weights ONCE (outside the jitted forward).
    W_hh is packed block-diagonally so both directions' recurrences share one matmul."""
    H = HIDDEN_SIZE
    packed = []
    for layer in range(NUM_LAYERS):
        pf = params[(layer, 0)]
        pb = params[(layer, 1)]
        w_ih_cat = jnp.concatenate([pf["w_ih"].T, pb["w_ih"].T], axis=1)        # (E_in, 8H)
        bias_cat = jnp.concatenate([pf["b_ih"] + pf["b_hh"],
                                    pb["b_ih"] + pb["b_hh"]])[None, :]           # (1, 8H)
        w_bd = jnp.zeros((2 * H, 8 * H), jnp.float32)
        w_bd = w_bd.at[0:H, 0:4 * H].set(pf["w_hh"].T)                           # fwd block
        w_bd = w_bd.at[H:2 * H, 4 * H:8 * H].set(pb["w_hh"].T)                   # bwd block
        packed.append(dict(w_ih=w_ih_cat, bias=bias_cat, w_hh_bd=w_bd))
    return packed


# ----------------------------- forward (mirrors Encoder.forward) ---------------
def encoder_forward(packed_layers, embedded_inputs, input_lengths):
    """embedded_inputs: (B, T, E) batch_first; input_lengths: (B,) with max == T.
    Returns (outputs (B, T, 2H), (h_n, c_n) each (num_layers*num_directions, B, H))."""
    B, T, E = embedded_inputs.shape
    H = HIDDEN_SIZE
    B_pad = ((B + SUBLANE - 1) // SUBLANE) * SUBLANE   # pad batch to 8-sublane multiple
    lengths = input_lengths.astype(jnp.int32)
    len_pad = jnp.zeros((B_pad,), jnp.int32).at[:B].set(lengths)       # pad rows -> length 0
    x_pad = jnp.zeros((B_pad, T, E), jnp.float32).at[:B].set(embedded_inputs)

    # time-major flat layout used inside the kernel for both layers
    x_flat = jnp.transpose(x_pad, (1, 0, 2)).reshape(T * B_pad, E)

    out_flat, h_n, c_n = encoder_pallas(x_flat, len_pad[:, None],
                                        packed_layers[0], packed_layers[1])

    outputs = jnp.transpose(out_flat.reshape(T, B_pad, 2 * H), (1, 0, 2))[:B]   # (B, T, 2H)
    return outputs, (h_n[:, :B, :], c_n[:, :B, :])


# ----------------------------- pure-JAX reference -------------------------------
def reverse_by_length(x_bte, lengths):
    """Reverse each sequence within its valid length. x_bte: (B, T, F)."""
    B, T, _ = x_bte.shape
    t_idx = jnp.arange(T, dtype=jnp.int32)[None, :]
    L = lengths[:, None]
    idx = jnp.where(t_idx < L, L - 1 - t_idx, t_idx)
    idx3 = jnp.broadcast_to(idx[:, :, None], x_bte.shape)
    return jnp.take_along_axis(x_bte, idx3, axis=1)


def _lstm_layer_ref(x_tm, lengths, w_ih, w_hh, b_ih, b_hh):
    T, B, _ = x_tm.shape
    H = w_hh.shape[1]
    h = jnp.zeros((B, H), jnp.float32)
    c = jnp.zeros((B, H), jnp.float32)
    outs = []
    for t in range(T):
        gates = x_tm[t] @ w_ih.T + h @ w_hh.T + b_ih + b_hh
        i_g = jax.nn.sigmoid(gates[:, :H])
        f_g = jax.nn.sigmoid(gates[:, H:2 * H])
        g_g = jnp.tanh(gates[:, 2 * H:3 * H])
        o_g = jax.nn.sigmoid(gates[:, 3 * H:])
        c_new = f_g * c + i_g * g_g
        h_new = o_g * jnp.tanh(c_new)
        m = (t < lengths)[:, None]
        h = jnp.where(m, h_new, h)
        c = jnp.where(m, c_new, c)
        outs.append(jnp.where(m, h_new, 0.0))
    return jnp.stack(outs, 0), h, c


def encoder_forward_ref(params, embedded_inputs, input_lengths):
    lengths = input_lengths.astype(jnp.int32)
    layer_in = embedded_inputs
    h_n_list, c_n_list = [], []
    for layer in range(NUM_LAYERS):
        dir_outs = []
        for d in range(NUM_DIRECTIONS):
            p = params[(layer, d)]
            inp = layer_in if d == 0 else reverse_by_length(layer_in, lengths)
            out_tm, h_n, c_n = _lstm_layer_ref(
                jnp.transpose(inp, (1, 0, 2)), lengths,
                p["w_ih"], p["w_hh"], p["b_ih"], p["b_hh"])
            out = jnp.transpose(out_tm, (1, 0, 2))
            if d == 1:
                out = reverse_by_length(out, lengths)
            dir_outs.append(out)
            h_n_list.append(h_n)
            c_n_list.append(c_n)
        layer_in = (jnp.concatenate(dir_outs, axis=-1)
                    if NUM_DIRECTIONS == 2 else dir_outs[0])
    return layer_in, (jnp.stack(h_n_list, 0), jnp.stack(c_n_list, 0))


# ----------------------------- main ---------------------------------------------
if __name__ == "__main__":
    B, T = 2, 8
    key = jax.random.PRNGKey(0)
    key, pkey, xkey = jax.random.split(key, 3)

    params = init_params(pkey)
    packed = prepare_packed_params(params)     # weight packing done once, outside jit

    embedded_inputs = jax.random.normal(xkey, (B, T, EMB_SIZE), jnp.float32)
    # Sorted descending (enforce_sorted=True default); max == T (pad_packed invariant).
    input_lengths = jnp.array([8, 5], dtype=jnp.int32)
    assert int(input_lengths.max()) == T, "pad_packed_sequence invariant: max(lengths) == T"

    fwd = jax.jit(functools.partial(encoder_forward, packed))
    outputs, (h_n, c_n) = fwd(embedded_inputs, input_lengths)
    jax.block_until_ready((outputs, h_n, c_n))

    ref_out, (ref_h, ref_c) = encoder_forward_ref(params, embedded_inputs, input_lengths)

    assert outputs.shape == (B, T, HIDDEN_SIZE * NUM_DIRECTIONS)
    assert h_n.shape == (NUM_LAYERS * NUM_DIRECTIONS, B, HIDDEN_SIZE)
    assert c_n.shape == (NUM_LAYERS * NUM_DIRECTIONS, B, HIDDEN_SIZE)
    assert jnp.allclose(outputs, ref_out, atol=1e-4, rtol=1e-4)
    assert jnp.allclose(h_n, ref_h, atol=1e-4, rtol=1e-4)
    assert jnp.allclose(c_n, ref_c, atol=1e-4, rtol=1e-4)

    print("KERNEL_OK")
</pallas_src>

<mosaic_0001>
module attributes {stable_mosaic.version = 11 : i64} {
  func.func @encoder_kernel(%arg0: i32, %arg1: memref<64x16xf32, #tpu.memory_space<vmem>>, %arg2: memref<8x1xi32, #tpu.memory_space<vmem>>, %arg3: memref<16x256xf32, #tpu.memory_space<vmem>>, %arg4: memref<1x256xf32, #tpu.memory_space<vmem>>, %arg5: memref<64x256xf32, #tpu.memory_space<vmem>>, %arg6: memref<64x256xf32, #tpu.memory_space<vmem>>, %arg7: memref<1x256xf32, #tpu.memory_space<vmem>>, %arg8: memref<64x256xf32, #tpu.memory_space<vmem>>, %arg9: memref<64x64xf32, #tpu.memory_space<vmem>>, %arg10: memref<4x8x32xf32, #tpu.memory_space<vmem>>, %arg11: memref<4x8x32xf32, #tpu.memory_space<vmem>>, %arg12: memref<64x256xf32, #tpu.memory_space<vmem>>) attributes {dimension_semantics = [#tpu.dimension_semantics<arbitrary>], iteration_bounds = array<i64: 1>, scalar_prefetch = 0 : i64, scratch_operands = 1 : i64, tpu.core_type = #tpu.core_type<tc>, window_params = [{pipeline_mode = #tpu.pipeline_mode<synchronous>, transform_indices = @transform_0, window_bounds = array<i64: 64, 16>}, {pipeline_mode = #tpu.pipeline_mode<synchronous>, transform_indices = @transform_1, window_bounds = array<i64: 8, 1>}, {pipeline_mode = #tpu.pipeline_mode<synchronous>, transform_indices = @transform_2, window_bounds = array<i64: 16, 256>}, {pipeline_mode = #tpu.pipeline_mode<synchronous>, transform_indices = @transform_3, window_bounds = array<i64: 1, 256>}, {pipeline_mode = #tpu.pipeline_mode<synchronous>, transform_indices = @transform_4, window_bounds = array<i64: 64, 256>}, {pipeline_mode = #tpu.pipeline_mode<synchronous>, transform_indices = @transform_5, window_bounds = array<i64: 64, 256>}, {pipeline_mode = #tpu.pipeline_mode<synchronous>, transform_indices = @transform_6, window_bounds = array<i64: 1, 256>}, {pipeline_mode = #tpu.pipeline_mode<synchronous>, transform_indices = @transform_7, window_bounds = array<i64: 64, 256>}, {pipeline_mode = #tpu.pipeline_mode<synchronous>, transform_indices = @transform_8, window_bounds = array<i64: 64, 64>}, {pipeline_mode = #tpu.pipeline_mode<synchronous>, transform_indices = @transform_9, window_bounds = array<i64: 4, 8, 32>}, {pipeline_mode = #tpu.pipeline_mode<synchronous>, transform_indices = @transform_10, window_bounds = array<i64: 4, 8, 32>}]} {
    %c0 = arith.constant 0 : index
    %c0_0 = arith.constant 0 : index
    %0 = vector.load %arg2[%c0, %c0_0] : memref<8x1xi32, #tpu.memory_space<vmem>>, vector<8x1xi32>
    %1 = vector.shape_cast %0 : vector<8x1xi32> to vector<8x1xi32>
    %2 = vector.broadcast %1 : vector<8x1xi32> to vector<8x32xi32>
    %c0_1 = arith.constant 0 : index
    %c0_2 = arith.constant 0 : index
    %3 = vector.load %arg1[%c0_1, %c0_2] : memref<64x16xf32, #tpu.memory_space<vmem>>, vector<64x16xf32>
    %c0_3 = arith.constant 0 : index
    %c0_4 = arith.constant 0 : index
    %4 = vector.load %arg3[%c0_3, %c0_4] : memref<16x256xf32, #tpu.memory_space<vmem>>, vector<16x256xf32>
    %cst = arith.constant dense<0.000000e+00> : vector<64x256xf32>
    %5 = tpu.matmul %3, %4, %cst {dimension_numbers = #tpu.dot_dimension_numbers<[1], [0], [0], [1], [0, 0, 1, 1], [], []>} : vector<64x16xf32>, vector<16x256xf32>, vector<64x256xf32> -> vector<64x256xf32>
    %c0_5 = arith.constant 0 : index
    %c0_6 = arith.constant 0 : index
    %6 = vector.load %arg4[%c0_5, %c0_6] : memref<1x256xf32, #tpu.memory_space<vmem>>, vector<1x256xf32>
    %7 = vector.broadcast %6 : vector<1x256xf32> to vector<64x256xf32>
    %8 = arith.addf %5, %7 : vector<64x256xf32>
    %c0_7 = arith.constant 0 : index
    %c0_8 = arith.constant 0 : index
    %9 = vector.load %arg12[%c0_7, %c0_8] : memref<64x256xf32, #tpu.memory_space<vmem>>, vector<64x256xf32>
    tpu.vector_store %arg12[%c0_7, %c0_8], %8 {strides = array<i32>} : memref<64x256xf32, #tpu.memory_space<vmem>>, vector<64x256xf32>,
    %c0_9 = arith.constant 0 : index
    %c0_10 = arith.constant 0 : index
    %10 = vector.load %arg5[%c0_9, %c0_10] : memref<64x256xf32, #tpu.memory_space<vmem>>, vector<64x256xf32>
    %cst_11 = arith.constant 0.000000e+00 : f32
    %11 = vector.broadcast %cst_11 : f32 to vector<8x32xf32>
    %12 = tpu.concatenate %11, %11 in 1 : vector<8x32xf32>, vector<8x32xf32> -> vector<8x64xf32>
    %cst_12 = arith.constant dense<0.000000e+00> : vector<8x256xf32>
    %13 = tpu.matmul %12, %10, %cst_12 {dimension_numbers = #tpu.dot_dimension_numbers<[1], [0], [0], [1], [0, 0, 1, 1], [], []>} : vector<8x64xf32>, vector<64x256xf32>, vector<8x256xf32> -> vector<8x256xf32>
    %c0_13 = arith.constant 0 : index
    %c0_14 = arith.constant 0 : index
    %14 = vector.load %arg12[%c0_13, %c0_14] : memref<64x256xf32, #tpu.memory_space<vmem>>, vector<8x128xf32>
    %15 = vector.extract_strided_slice %13 {offsets = [0, 0], sizes = [8, 128], strides = [1, 1]} : vector<8x256xf32> to vector<8x128xf32>
    %16 = arith.addf %14, %15 : vector<8x128xf32>
    %c56 = arith.constant 56 : index
    %c128 = arith.constant 128 : index
    %17 = vector.load %arg12[%c56, %c128] : memref<64x256xf32, #tpu.memory_space<vmem>>, vector<8x128xf32>
    %18 = vector.extract_strided_slice %13 {offsets = [0, 128], sizes = [8, 128], strides = [1, 1]} : vector<8x256xf32> to vector<8x128xf32>
    %19 = arith.addf %17, %18 : vector<8x128xf32>
    %20 = arith.negf %16 : vector<8x128xf32>
    %21 = math.exp %20 : vector<8x128xf32>
    %cst_15 = arith.constant 1.000000e+00 : f32
    %22 = vector.broadcast %cst_15 : f32 to vector<8x128xf32>
    %23 = arith.addf %22, %21 : vector<8x128xf32>
    %24 = arith.divf %22, %23 : vector<8x128xf32>
    %25 = vector.extract_strided_slice %16 {offsets = [0, 64], sizes = [8, 32], strides = [1, 1]} : vector<8x128xf32> to vector<8x32xf32>
    %26 = math.tanh %25 : vector<8x32xf32>
    %27 = vector.extract_strided_slice %24 {offsets = [0, 0], sizes = [8, 32], strides = [1, 1]} : vector<8x128xf32> to vector<8x32xf32>
    %28 = vector.extract_strided_slice %24 {offsets = [0, 32], sizes = [8, 32], strides = [1, 1]} : vector<8x128xf32> to vector<8x32xf32>
    %29 = vector.extract_strided_slice %24 {offsets = [0, 96], sizes = [8, 32], strides = [1, 1]} : vector<8x128xf32> to vector<8x32xf32>
    %30 = arith.mulf %28, %11 : vector<8x32xf32>
    %31 = arith.mulf %27, %26 : vector<8x32xf32>
    %32 = arith.addf %30, %31 : vector<8x32xf32>
    %33 = math.tanh %32 : vector<8x32xf32>
    %34 = arith.mulf %29, %33 : vector<8x32xf32>
    %35 = arith.negf %19 : vector<8x128xf32>
    %36 = math.exp %35 : vector<8x128xf32>
    %cst_16 = arith.constant 1.000000e+00 : f32
    %37 = vector.broadcast %cst_16 : f32 to vector<8x128xf32>
    %38 = arith.addf %37, %36 : vector<8x128xf32>
    %39 = arith.divf %37, %38 : vector<8x128xf32>
    %40 = vector.extract_strided_slice %19 {offsets = [0, 64], sizes = [8, 32], strides = [1, 1]} : vector<8x128xf32> to vector<8x32xf32>
    %41 = math.tanh %40 : vector<8x32xf32>
    %42 = vector.extract_strided_slice %39 {offsets = [0, 0], sizes = [8, 32], strides = [1, 1]} : vector<8x128xf32> to vector<8x32xf32>
    %43 = vector.extract_strided_slice %39 {offsets = [0, 32], sizes = [8, 32], strides = [1, 1]} : vector<8x128xf32> to vector<8x32xf32>
    %44 = vector.extract_strided_slice %39 {offsets = [0, 96], sizes = [8, 32], strides = [1, 1]} : vector<8x128xf32> to vector<8x32xf32>
    %45 = arith.mulf %43, %11 : vector<8x32xf32>
    %46 = arith.mulf %42, %41 : vector<8x32xf32>
    %47 = arith.addf %45, %46 : vector<8x32xf32>
    %48 = math.tanh %47 : vector<8x32xf32>
    %49 = arith.mulf %44, %48 : vector<8x32xf32>
    %c0_i32 = arith.constant 0 : i32
    %50 = vector.broadcast %c0_i32 : i32 to vector<8x32xi32>
    %51 = arith.cmpi sgt, %2, %50 : vector<8x32xi32>
    %c7_i32 = arith.constant 7 : i32
    %52 = vector.broadcast %c7_i32 : i32 to vector<8x32xi32>
    %53 = arith.cmpi sgt, %2, %52 : vector<8x32xi32>
    %cst_17 = arith.constant 0.000000e+00 : f32
    %54 = vector.broadcast %cst_17 : f32 to vector<8x32xf32>
    %55 = arith.select %51, %34, %54 : vector<8x32xi1>, vector<8x32xf32>
    %cst_18 = arith.constant 0.000000e+00 : f32
    %56 = vector.broadcast %cst_18 : f32 to vector<8x32xf32>
    %57 = arith.select %53, %49, %56 : vector<8x32xi1>, vector<8x32xf32>
    %58 = arith.select %51, %34, %11 : vector<8x32xi1>, vector<8x32xf32>
    %59 = arith.select %51, %32, %11 : vector<8x32xi1>, vector<8x32xf32>
    %60 = arith.select %53, %49, %11 : vector<8x32xi1>, vector<8x32xf32>
    %61 = arith.select %53, %47, %11 : vector<8x32xi1>, vector<8x32xf32>
    %62 = tpu.concatenate %58, %60 in 1 : vector<8x32xf32>, vector<8x32xf32> -> vector<8x64xf32>
    %cst_19 = arith.constant dense<0.000000e+00> : vector<8x256xf32>
    %63 = tpu.matmul %62, %10, %cst_19 {dimension_numbers = #tpu.dot_dimension_numbers<[1], [0], [0], [1], [0, 0, 1, 1], [], []>} : vector<8x64xf32>, vector<64x256xf32>, vector<8x256xf32> -> vector<8x256xf32>
    %c8 = arith.constant 8 : index
    %c0_20 = arith.constant 0 : index
    %64 = vector.load %arg12[%c8, %c0_20] : memref<64x256xf32, #tpu.memory_space<vmem>>, vector<8x128xf32>
    %65 = vector.extract_strided_slice %63 {offsets = [0, 0], sizes = [8, 128], strides = [1, 1]} : vector<8x256xf32> to vector<8x128xf32>
    %66 = arith.addf %64, %65 : vector<8x128xf32>
    %c48 = arith.constant 48 : index
    %c128_21 = arith.constant 128 : index
    %67 = vector.load %arg12[%c48, %c128_21] : memref<64x256xf32, #tpu.memory_space<vmem>>, vector<8x128xf32>
    %68 = vector.extract_strided_slice %63 {offsets = [0, 128], sizes = [8, 128], strides = [1, 1]} : vector<8x256xf32> to vector<8x128xf32>
    %69 = arith.addf %67, %68 : vector<8x128xf32>
    %70 = arith.negf %66 : vector<8x128xf32>
    %71 = math.exp %70 : vector<8x128xf32>
    %cst_22 = arith.constant 1.000000e+00 : f32
    %72 = vector.broadcast %cst_22 : f32 to vector<8x128xf32>
    %73 = arith.addf %72, %71 : vector<8x128xf32>
    %74 = arith.divf %72, %73 : vector<8x128xf32>
    %75 = vector.extract_strided_slice %66 {offsets = [0, 64], sizes = [8, 32], strides = [1, 1]} : vector<8x128xf32> to vector<8x32xf32>
    %76 = math.tanh %75 : vector<8x32xf32>
    %77 = vector.extract_strided_slice %74 {offsets = [0, 0], sizes = [8, 32], strides = [1, 1]} : vector<8x128xf32> to vector<8x32xf32>
    %78 = vector.extract_strided_slice %74 {offsets = [0, 32], sizes = [8, 32], strides = [1, 1]} : vector<8x128xf32> to vector<8x32xf32>
    %79 = vector.extract_strided_slice %74 {offsets = [0, 96], sizes = [8, 32], strides = [1, 1]} : vector<8x128xf32> to vector<8x32xf32>
    %80 = arith.mulf %78, %59 : vector<8x32xf32>
    %81 = arith.mulf %77, %76 : vector<8x32xf32>
    %82 = arith.addf %80, %81 : vector<8x32xf32>
    %83 = math.tanh %82 : vector<8x32xf32>
    %84 = arith.mulf %79, %83 : vector<8x32xf32>
    %85 = arith.negf %69 : vector<8x128xf32>
    %86 = math.exp %85 : vector<8x128xf32>
    %cst_23 = arith.constant 1.000000e+00 : f32
    %87 = vector.broadcast %cst_23 : f32 to vector<8x128xf32>
    %88 = arith.addf %87, %86 : vector<8x128xf32>
    %89 = arith.divf %87, %88 : vector<8x128xf32>
    %90 = vector.extract_strided_slice %69 {offsets = [0, 64], sizes = [8, 32], strides = [1, 1]} : vector<8x128xf32> to vector<8x32xf32>
    %91 = math.tanh %90 : vector<8x32xf32>
    %92 = vector.extract_strided_slice %89 {offsets = [0, 0], sizes = [8, 32], strides = [1, 1]} : vector<8x128xf32> to vector<8x32xf32>
    %93 = vector.extract_strided_slice %89 {offsets = [0, 32], sizes = [8, 32], strides = [1, 1]} : vector<8x128xf32> to vector<8x32xf32>
    %94 = vector.extract_strided_slice %89 {offsets = [0, 96], sizes = [8, 32], strides = [1, 1]} : vector<8x128xf32> to vector<8x32xf32>
    %95 = arith.mulf %93, %61 : vector<8x32xf32>
    %96 = arith.mulf %92, %91 : vector<8x32xf32>
    %97 = arith.addf %95, %96 : vector<8x32xf32>
    %98 = math.tanh %97 : vector<8x32xf32>
    %99 = arith.mulf %94, %98 : vector<8x32xf32>
    %c1_i32 = arith.constant 1 : i32
    %100 = vector.broadcast %c1_i32 : i32 to vector<8x32xi32>
    %101 = arith.cmpi sgt, %2, %100 : vector<8x32xi32>
    %c6_i32 = arith.constant 6 : i32
    %102 = vector.broadcast %c6_i32 : i32 to vector<8x32xi32>
    %103 = arith.cmpi sgt, %2, %102 : vector<8x32xi32>
    %cst_24 = arith.constant 0.000000e+00 : f32
    %104 = vector.broadcast %cst_24 : f32 to vector<8x32xf32>
    %105 = arith.select %101, %84, %104 : vector<8x32xi1>, vector<8x32xf32>
    %cst_25 = arith.constant 0.000000e+00 : f32
    %106 = vector.broadcast %cst_25 : f32 to vector<8x32xf32>
    %107 = arith.select %103, %99, %106 : vector<8x32xi1>, vector<8x32xf32>
    %108 = arith.select %101, %84, %58 : vector<8x32xi1>, vector<8x32xf32>
    %109 = arith.select %101, %82, %59 : vector<8x32xi1>, vector<8x32xf32>
    %110 = arith.select %103, %99, %60 : vector<8x32xi1>, vector<8x32xf32>
    %111 = arith.select %103, %97, %61 : vector<8x32xi1>, vector<8x32xf32>
    %112 = tpu.concatenate %108, %110 in 1 : vector<8x32xf32>, vector<8x32xf32> -> vector<8x64xf32>
    %cst_26 = arith.constant dense<0.000000e+00> : vector<8x256xf32>
    %113 = tpu.matmul %112, %10, %cst_26 {dimension_numbers = #tpu.dot_dimension_numbers<[1], [0], [0], [1], [0, 0, 1, 1], [], []>} : vector<8x64xf32>, vector<64x256xf32>, vector<8x256xf32> -> vector<8x256xf32>
    %c16 = arith.constant 16 : index
    %c0_27 = arith.constant 0 : index
    %114 = vector.load %arg12[%c16, %c0_27] : memref<64x256xf32, #tpu.memory_space<vmem>>, vector<8x128xf32>
    %115 = vector.extract_strided_slice %113 {offsets = [0, 0], sizes = [8, 128], strides = [1, 1]} : vector<8x256xf32> to vector<8x128xf32>
    %116 = arith.addf %114, %115 : vector<8x128xf32>
    %c40 = arith.constant 40 : index
    %c128_28 = arith.constant 128 : index
    %117 = vector.load %arg12[%c40, %c128_28] : memref<64x256xf32, #tpu.memory_space<vmem>>, vector<8x128xf32>
    %118 = vector.extract_strided_slice %113 {offsets = [0, 128], sizes = [8, 128], strides = [1, 1]} : vector<8x256xf32> to vector<8x128xf32>
    %119 = arith.addf %117, %118 : vector<8x128xf32>
    %120 = arith.negf %116 : vector<8x128xf32>
    %121 = math.exp %120 : vector<8x128xf32>
    %cst_29 = arith.constant 1.000000e+00 : f32
    %122 = vector.broadcast %cst_29 : f32 to vector<8x128xf32>
    %123 = arith.addf %122, %121 : vector<8x128xf32>
    %124 = arith.divf %122, %123 : vector<8x128xf32>
    %125 = vector.extract_strided_slice %116 {offsets = [0, 64], sizes = [8, 32], strides = [1, 1]} : vector<8x128xf32> to vector<8x32xf32>
    %126 = math.tanh %125 : vector<8x32xf32>
    %127 = vector.extract_strided_slice %124 {offsets = [0, 0], sizes = [8, 32], strides = [1, 1]} : vector<8x128xf32> to vector<8x32xf32>
    %128 = vector.extract_strided_slice %124 {offsets = [0, 32], sizes = [8, 32], strides = [1, 1]} : vector<8x128xf32> to vector<8x32xf32>
    %129 = vector.extract_strided_slice %124 {offsets = [0, 96], sizes = [8, 32], strides = [1, 1]} : vector<8x128xf32> to vector<8x32xf32>
    %130 = arith.mulf %128, %109 : vector<8x32xf32>
    %131 = arith.mulf %127, %126 : vector<8x32xf32>
    %132 = arith.addf %130, %131 : vector<8x32xf32>
    %133 = math.tanh %132 : vector<8x32xf32>
    %134 = arith.mulf %129, %133 : vector<8x32xf32>
    %135 = arith.negf %119 : vector<8x128xf32>
    %136 = math.exp %135 : vector<8x128xf32>
    %cst_30 = arith.constant 1.000000e+00 : f32
    %137 = vector.broadcast %cst_30 : f32 to vector<8x128xf32>
    %138 = arith.addf %137, %136 : vector<8x128xf32>
    %139 = arith.divf %137, %138 : vector<8x128xf32>
    %140 = vector.extract_strided_slice %119 {offsets = [0, 64], sizes = [8, 32], strides = [1, 1]} : vector<8x128xf32> to vector<8x32xf32>
    %141 = math.tanh %140 : vector<8x32xf32>
    %142 = vector.extract_strided_slice %139 {offsets = [0, 0], sizes = [8, 32], strides = [1, 1]} : vector<8x128xf32> to vector<8x32xf32>
    %143 = vector.extract_strided_slice %139 {offsets = [0, 32], sizes = [8, 32], strides = [1, 1]} : vector<8x128xf32> to vector<8x32xf32>
    %144 = vector.extract_strided_slice %139 {offsets = [0, 96], sizes = [8, 32], strides = [1, 1]} : vector<8x128xf32> to vector<8x32xf32>
    %145 = arith.mulf %143, %111 : vector<8x32xf32>
    %146 = arith.mulf %142, %141 : vector<8x32xf32>
    %147 = arith.addf %145, %146 : vector<8x32xf32>
    %148 = math.tanh %147 : vector<8x32xf32>
    %149 = arith.mulf %144, %148 : vector<8x32xf32>
    %c2_i32 = arith.constant 2 : i32
    %150 = vector.broadcast %c2_i32 : i32 to vector<8x32xi32>
    %151 = arith.cmpi sgt, %2, %150 : vector<8x32xi32>
    %c5_i32 = arith.constant 5 : i32
    %152 = vector.broadcast %c5_i32 : i32 to vector<8x32xi32>
    %153 = arith.cmpi sgt, %2, %152 : vector<8x32xi32>
    %cst_31 = arith.constant 0.000000e+00 : f32
    %154 = vector.broadcast %cst_31 : f32 to vector<8x32xf32>
    %155 = arith.select %151, %134, %154 : vector<8x32xi1>, vector<8x32xf32>
    %cst_32 = arith.constant 0.000000e+00 : f32
    %156 = vector.broadcast %cst_32 : f32 to vector<8x32xf32>
    %157 = arith.select %153, %149, %156 : vector<8x32xi1>, vector<8x32xf32>
    %158 = arith.select %151, %134, %108 : vector<8x32xi1>, vector<8x32xf32>
    %159 = arith.select %151, %132, %109 : vector<8x32xi1>, vector<8x32xf32>
    %160 = arith.select %153, %149, %110 : vector<8x32xi1>, vector<8x32xf32>
    %161 = arith.select %153, %147, %111 : vector<8x32xi1>, vector<8x32xf32>
    %162 = tpu.concatenate %158, %160 in 1 : vector<8x32xf32>, vector<8x32xf32> -> vector<8x64xf32>
    %cst_33 = arith.constant dense<0.000000e+00> : vector<8x256xf32>
    %163 = tpu.matmul %162, %10, %cst_33 {dimension_numbers = #tpu.dot_dimension_numbers<[1], [0], [0], [1], [0, 0, 1, 1], [], []>} : vector<8x64xf32>, vector<64x256xf32>, vector<8x256xf32> -> vector<8x256xf32>
    %c24 = arith.constant 24 : index
    %c0_34 = arith.constant 0 : index
    %164 = vector.load %arg12[%c24, %c0_34] : memref<64x256xf32, #tpu.memory_space<vmem>>, vector<8x128xf32>
    %165 = vector.extract_strided_slice %163 {offsets = [0, 0], sizes = [8, 128], strides = [1, 1]} : vector<8x256xf32> to vector<8x128xf32>
    %166 = arith.addf %164, %165 : vector<8x128xf32>
    %c32 = arith.constant 32 : index
    %c128_35 = arith.constant 128 : index
    %167 = vector.load %arg12[%c32, %c128_35] : memref<64x256xf32, #tpu.memory_space<vmem>>, vector<8x128xf32>
    %168 = vector.extract_strided_slice %163 {offsets = [0, 128], sizes = [8, 128], strides = [1, 1]} : vector<8x256xf32> to vector<8x128xf32>
    %169 = arith.addf %167, %168 : vector<8x128xf32>
    %170 = arith.negf %166 : vector<8x128xf32>
    %171 = math.exp %170 : vector<8x128xf32>
    %cst_36 = arith.constant 1.000000e+00 : f32
    %172 = vector.broadcast %cst_36 : f32 to vector<8x128xf32>
    %173 = arith.addf %172, %171 : vector<8x128xf32>
    %174 = arith.divf %172, %173 : vector<8x128xf32>
    %175 = vector.extract_strided_slice %166 {offsets = [0, 64], sizes = [8, 32], strides = [1, 1]} : vector<8x128xf32> to vector<8x32xf32>
    %176 = math.tanh %175 : vector<8x32xf32>
    %177 = vector.extract_strided_slice %174 {offsets = [0, 0], sizes = [8, 32], strides = [1, 1]} : vector<8x128xf32> to vector<8x32xf32>
    %178 = vector.extract_strided_slice %174 {offsets = [0, 32], sizes = [8, 32], strides = [1, 1]} : vector<8x128xf32> to vector<8x32xf32>
    %179 = vector.extract_strided_slice %174 {offsets = [0, 96], sizes = [8, 32], strides = [1, 1]} : vector<8x128xf32> to vector<8x32xf32>
    %180 = arith.mulf %178, %159 : vector<8x32xf32>
    %181 = arith.mulf %177, %176 : vector<8x32xf32>
    %182 = arith.addf %180, %181 : vector<8x32xf32>
    %183 = math.tanh %182 : vector<8x32xf32>
    %184 = arith.mulf %179, %183 : vector<8x32xf32>
    %185 = arith.negf %169 : vector<8x128xf32>
    %186 = math.exp %185 : vector<8x128xf32>
    %cst_37 = arith.constant 1.000000e+00 : f32
    %187 = vector.broadcast %cst_37 : f32 to vector<8x128xf32>
    %188 = arith.addf %187, %186 : vector<8x128xf32>
    %189 = arith.divf %187, %188 : vector<8x128xf32>
    %190 = vector.extract_strided_slice %169 {offsets = [0, 64], sizes = [8, 32], strides = [1, 1]} : vector<8x128xf32> to vector<8x32xf32>
    %191 = math.tanh %190 : vector<8x32xf32>
    %192 = vector.extract_strided_slice %189 {offsets = [0, 0], sizes = [8, 32], strides = [1, 1]} : vector<8x128xf32> to vector<8x32xf32>
    %193 = vector.extract_strided_slice %189 {offsets = [0, 32], sizes = [8, 32], strides = [1, 1]} : vector<8x128xf32> to vector<8x32xf32>
    %194 = vector.extract_strided_slice %189 {offsets = [0, 96], sizes = [8, 32], strides = [1, 1]} : vector<8x128xf32> to vector<8x32xf32>
    %195 = arith.mulf %193, %161 : vector<8x32xf32>
    %196 = arith.mulf %192, %191 : vector<8x32xf32>
    %197 = arith.addf %195, %196 : vector<8x32xf32>
    %198 = math.tanh %197 : vector<8x32xf32>
    %199 = arith.mulf %194, %198 : vector<8x32xf32>
    %c3_i32 = arith.constant 3 : i32
    %200 = vector.broadcast %c3_i32 : i32 to vector<8x32xi32>
    %201 = arith.cmpi sgt, %2, %200 : vector<8x32xi32>
    %c4_i32 = arith.constant 4 : i32
    %202 = vector.broadcast %c4_i32 : i32 to vector<8x32xi32>
    %203 = arith.cmpi sgt, %2, %202 : vector<8x32xi32>
    %cst_38 = arith.constant 0.000000e+00 : f32
    %204 = vector.broadcast %cst_38 : f32 to vector<8x32xf32>
    %205 = arith.select %201, %184, %204 : vector<8x32xi1>, vector<8x32xf32>
    %cst_39 = arith.constant 0.000000e+00 : f32
    %206 = vector.broadcast %cst_39 : f32 to vector<8x32xf32>
    %207 = arith.select %203, %199, %206 : vector<8x32xi1>, vector<8x32xf32>
    %208 = arith.select %201, %184, %158 : vector<8x32xi1>, vector<8x32xf32>
    %209 = arith.select %201, %182, %159 : vector<8x32xi1>, vector<8x32xf32>
    %210 = arith.select %203, %199, %160 : vector<8x32xi1>, vector<8x32xf32>
    %211 = arith.select %203, %197, %161 : vector<8x32xi1>, vector<8x32xf32>
    %212 = tpu.concatenate %208, %210 in 1 : vector<8x32xf32>, vector<8x32xf32> -> vector<8x64xf32>
    %cst_40 = arith.constant dense<0.000000e+00> : vector<8x256xf32>
    %213 = tpu.matmul %212, %10, %cst_40 {dimension_numbers = #tpu.dot_dimension_numbers<[1], [0], [0], [1], [0, 0, 1, 1], [], []>} : vector<8x64xf32>, vector<64x256xf32>, vector<8x256xf32> -> vector<8x256xf32>
    %c32_41 = arith.constant 32 : index
    %c0_42 = arith.constant 0 : index
    %214 = vector.load %arg12[%c32_41, %c0_42] : memref<64x256xf32, #tpu.memory_space<vmem>>, vector<8x128xf32>
    %215 = vector.extract_strided_slice %213 {offsets = [0, 0], sizes = [8, 128], strides = [1, 1]} : vector<8x256xf32> to vector<8x128xf32>
    %216 = arith.addf %214, %215 : vector<8x128xf32>
    %c24_43 = arith.constant 24 : index
    %c128_44 = arith.constant 128 : index
    %217 = vector.load %arg12[%c24_43, %c128_44] : memref<64x256xf32, #tpu.memory_space<vmem>>, vector<8x128xf32>
    %218 = vector.extract_strided_slice %213 {offsets = [0, 128], sizes = [8, 128], strides = [1, 1]} : vector<8x256xf32> to vector<8x128xf32>
    %219 = arith.addf %217, %218 : vector<8x128xf32>
    %220 = arith.negf %216 : vector<8x128xf32>
    %221 = math.exp %220 : vector<8x128xf32>
    %cst_45 = arith.constant 1.000000e+00 : f32
    %222 = vector.broadcast %cst_45 : f32 to vector<8x128xf32>
    %223 = arith.addf %222, %221 : vector<8x128xf32>
    %224 = arith.divf %222, %223 : vector<8x128xf32>
    %225 = vector.extract_strided_slice %216 {offsets = [0, 64], sizes = [8, 32], strides = [1, 1]} : vector<8x128xf32> to vector<8x32xf32>
    %226 = math.tanh %225 : vector<8x32xf32>
    %227 = vector.extract_strided_slice %224 {offsets = [0, 0], sizes = [8, 32], strides = [1, 1]} : vector<8x128xf32> to vector<8x32xf32>
    %228 = vector.extract_strided_slice %224 {offsets = [0, 32], sizes = [8, 32], strides = [1, 1]} : vector<8x128xf32> to vector<8x32xf32>
    %229 = vector.extract_strided_slice %224 {offsets = [0, 96], sizes = [8, 32], strides = [1, 1]} : vector<8x128xf32> to vector<8x32xf32>
    %230 = arith.mulf %228, %209 : vector<8x32xf32>
    %231 = arith.mulf %227, %226 : vector<8x32xf32>
    %232 = arith.addf %230, %231 : vector<8x32xf32>
    %233 = math.tanh %232 : vector<8x32xf32>
    %234 = arith.mulf %229, %233 : vector<8x32xf32>
    %235 = arith.negf %219 : vector<8x128xf32>
    %236 = math.exp %235 : vector<8x128xf32>
    %cst_46 = arith.constant 1.000000e+00 : f32
    %237 = vector.broadcast %cst_46 : f32 to vector<8x128xf32>
    %238 = arith.addf %237, %236 : vector<8x128xf32>
    %239 = arith.divf %237, %238 : vector<8x128xf32>
    %240 = vector.extract_strided_slice %219 {offsets = [0, 64], sizes = [8, 32], strides = [1, 1]} : vector<8x128xf32> to vector<8x32xf32>
    %241 = math.tanh %240 : vector<8x32xf32>
    %242 = vector.extract_strided_slice %239 {offsets = [0, 0], sizes = [8, 32], strides = [1, 1]} : vector<8x128xf32> to vector<8x32xf32>
    %243 = vector.extract_strided_slice %239 {offsets = [0, 32], sizes = [8, 32], strides = [1, 1]} : vector<8x128xf32> to vector<8x32xf32>
    %244 = vector.extract_strided_slice %239 {offsets = [0, 96], sizes = [8, 32], strides = [1, 1]} : vector<8x128xf32> to vector<8x32xf32>
    %245 = arith.mulf %243, %211 : vector<8x32xf32>
    %246 = arith.mulf %242, %241 : vector<8x32xf32>
    %247 = arith.addf %245, %246 : vector<8x32xf32>
    %248 = math.tanh %247 : vector<8x32xf32>
    %249 = arith.mulf %244, %248 : vector<8x32xf32>
    %c4_i32_47 = arith.constant 4 : i32
    %250 = vector.broadcast %c4_i32_47 : i32 to vector<8x32xi32>
    %251 = arith.cmpi sgt, %2, %250 : vector<8x32xi32>
    %c3_i32_48 = arith.constant 3 : i32
    %252 = vector.broadcast %c3_i32_48 : i32 to vector<8x32xi32>
    %253 = arith.cmpi sgt, %2, %252 : vector<8x32xi32>
    %cst_49 = arith.constant 0.000000e+00 : f32
    %254 = vector.broadcast %cst_49 : f32 to vector<8x32xf32>
    %255 = arith.select %251, %234, %254 : vector<8x32xi1>, vector<8x32xf32>
    %cst_50 = arith.constant 0.000000e+00 : f32
    %256 = vector.broadcast %cst_50 : f32 to vector<8x32xf32>
    %257 = arith.select %253, %249, %256 : vector<8x32xi1>, vector<8x32xf32>
    %258 = arith.select %251, %234, %208 : vector<8x32xi1>, vector<8x32xf32>
    %259 = arith.select %251, %232, %209 : vector<8x32xi1>, vector<8x32xf32>
    %260 = arith.select %253, %249, %210 : vector<8x32xi1>, vector<8x32xf32>
    %261 = arith.select %253, %247, %211 : vector<8x32xi1>, vector<8x32xf32>
    %262 = tpu.concatenate %258, %260 in 1 : vector<8x32xf32>, vector<8x32xf32> -> vector<8x64xf32>
    %cst_51 = arith.constant dense<0.000000e+00> : vector<8x256xf32>
    %263 = tpu.matmul %262, %10, %cst_51 {dimension_numbers = #tpu.dot_dimension_numbers<[1], [0], [0], [1], [0, 0, 1, 1], [], []>} : vector<8x64xf32>, vector<64x256xf32>, vector<8x256xf32> -> vector<8x256xf32>
    %c40_52 = arith.constant 40 : index
    %c0_53 = arith.constant 0 : index
    %264 = vector.load %arg12[%c40_52, %c0_53] : memref<64x256xf32, #tpu.memory_space<vmem>>, vector<8x128xf32>
    %265 = vector.extract_strided_slice %263 {offsets = [0, 0], sizes = [8, 128], strides = [1, 1]} : vector<8x256xf32> to vector<8x128xf32>
    %266 = arith.addf %264, %265 : vector<8x128xf32>
    %c16_54 = arith.constant 16 : index
    %c128_55 = arith.constant 128 : index
    %267 = vector.load %arg12[%c16_54, %c128_55] : memref<64x256xf32, #tpu.memory_space<vmem>>, vector<8x128xf32>
    %268 = vector.extract_strided_slice %263 {offsets = [0, 128], sizes = [8, 128], strides = [1, 1]} : vector<8x256xf32> to vector<8x128xf32>
    %269 = arith.addf %267, %268 : vector<8x128xf32>
    %270 = arith.negf %266 : vector<8x128xf32>
    %271 = math.exp %270 : vector<8x128xf32>
    %cst_56 = arith.constant 1.000000e+00 : f32
    %272 = vector.broadcast %cst_56 : f32 to vector<8x128xf32>
    %273 = arith.addf %272, %271 : vector<8x128xf32>
    %274 = arith.divf %272, %273 : vector<8x128xf32>
    %275 = vector.extract_strided_slice %266 {offsets = [0, 64], sizes = [8, 32], strides = [1, 1]} : vector<8x128xf32> to vector<8x32xf32>
    %276 = math.tanh %275 : vector<8x32xf32>
    %277 = vector.extract_strided_slice %274 {offsets = [0, 0], sizes = [8, 32], strides = [1, 1]} : vector<8x128xf32> to vector<8x32xf32>
    %278 = vector.extract_strided_slice %274 {offsets = [0, 32], sizes = [8, 32], strides = [1, 1]} : vector<8x128xf32> to vector<8x32xf32>
    %279 = vector.extract_strided_slice %274 {offsets = [0, 96], sizes = [8, 32], strides = [1, 1]} : vector<8x128xf32> to vector<8x32xf32>
    %280 = arith.mulf %278, %259 : vector<8x32xf32>
    %281 = arith.mulf %277, %276 : vector<8x32xf32>
    %282 = arith.addf %280, %281 : vector<8x32xf32>
    %283 = math.tanh %282 : vector<8x32xf32>
    %284 = arith.mulf %279, %283 : vector<8x32xf32>
    %285 = arith.negf %269 : vector<8x128xf32>
    %286 = math.exp %285 : vector<8x128xf32>
    %cst_57 = arith.constant 1.000000e+00 : f32
    %287 = vector.broadcast %cst_57 : f32 to vector<8x128xf32>
    %288 = arith.addf %287, %286 : vector<8x128xf32>
    %289 = arith.divf %287, %288 : vector<8x128xf32>
    %290 = vector.extract_strided_slice %269 {offsets = [0, 64], sizes = [8, 32], strides = [1, 1]} : vector<8x128xf32> to vector<8x32xf32>
    %291 = math.tanh %290 : vector<8x32xf32>
    %292 = vector.extract_strided_slice %289 {offsets = [0, 0], sizes = [8, 32], strides = [1, 1]} : vector<8x128xf32> to vector<8x32xf32>
    %293 = vector.extract_strided_slice %289 {offsets = [0, 32], sizes = [8, 32], strides = [1, 1]} : vector<8x128xf32> to vector<8x32xf32>
    %294 = vector.extract_strided_slice %289 {offsets = [0, 96], sizes = [8, 32], strides = [1, 1]} : vector<8x128xf32> to vector<8x32xf32>
    %295 = arith.mulf %293, %261 : vector<8x32xf32>
    %296 = arith.mulf %292, %291 : vector<8x32xf32>
    %297 = arith.addf %295, %296 : vector<8x32xf32>
    %298 = math.tanh %297 : vector<8x32xf32>
    %299 = arith.mulf %294, %298 : vector<8x32xf32>
    %c5_i32_58 = arith.constant 5 : i32
    %300 = vector.broadcast %c5_i32_58 : i32 to vector<8x32xi32>
    %301 = arith.cmpi sgt, %2, %300 : vector<8x32xi32>
    %c2_i32_59 = arith.constant 2 : i32
    %302 = vector.broadcast %c2_i32_59 : i32 to vector<8x32xi32>
    %303 = arith.cmpi sgt, %2, %302 : vector<8x32xi32>
    %cst_60 = arith.constant 0.000000e+00 : f32
    %304 = vector.broadcast %cst_60 : f32 to vector<8x32xf32>
    %305 = arith.select %301, %284, %304 : vector<8x32xi1>, vector<8x32xf32>
    %cst_61 = arith.constant 0.000000e+00 : f32
    %306 = vector.broadcast %cst_61 : f32 to vector<8x32xf32>
    %307 = arith.select %303, %299, %306 : vector<8x32xi1>, vector<8x32xf32>
    %308 = arith.select %301, %284, %258 : vector<8x32xi1>, vector<8x32xf32>
    %309 = arith.select %301, %282, %259 : vector<8x32xi1>, vector<8x32xf32>
    %310 = arith.select %303, %299, %260 : vector<8x32xi1>, vector<8x32xf32>
    %311 = arith.select %303, %297, %261 : vector<8x32xi1>, vector<8x32xf32>
    %312 = tpu.concatenate %308, %310 in 1 : vector<8x32xf32>, vector<8x32xf32> -> vector<8x64xf32>
    %cst_62 = arith.constant dense<0.000000e+00> : vector<8x256xf32>
    %313 = tpu.matmul %312, %10, %cst_62 {dimension_numbers = #tpu.dot_dimension_numbers<[1], [0], [0], [1], [0, 0, 1, 1], [], []>} : vector<8x64xf32>, vector<64x256xf32>, vector<8x256xf32> -> vector<8x256xf32>
    %c48_63 = arith.constant 48 : index
    %c0_64 = arith.constant 0 : index
    %314 = vector.load %arg12[%c48_63, %c0_64] : memref<64x256xf32, #tpu.memory_space<vmem>>, vector<8x128xf32>
    %315 = vector.extract_strided_slice %313 {offsets = [0, 0], sizes = [8, 128], strides = [1, 1]} : vector<8x256xf32> to vector<8x128xf32>
    %316 = arith.addf %314, %315 : vector<8x128xf32>
    %c8_65 = arith.constant 8 : index
    %c128_66 = arith.constant 128 : index
    %317 = vector.load %arg12[%c8_65, %c128_66] : memref<64x256xf32, #tpu.memory_space<vmem>>, vector<8x128xf32>
    %318 = vector.extract_strided_slice %313 {offsets = [0, 128], sizes = [8, 128], strides = [1, 1]} : vector<8x256xf32> to vector<8x128xf32>
    %319 = arith.addf %317, %318 : vector<8x128xf32>
    %320 = arith.negf %316 : vector<8x128xf32>
    %321 = math.exp %320 : vector<8x128xf32>
    %cst_67 = arith.constant 1.000000e+00 : f32
    %322 = vector.broadcast %cst_67 : f32 to vector<8x128xf32>
    %323 = arith.addf %322, %321 : vector<8x128xf32>
    %324 = arith.divf %322, %323 : vector<8x128xf32>
    %325 = vector.extract_strided_slice %316 {offsets = [0, 64], sizes = [8, 32], strides = [1, 1]} : vector<8x128xf32> to vector<8x32xf32>
    %326 = math.tanh %325 : vector<8x32xf32>
    %327 = vector.extract_strided_slice %324 {offsets = [0, 0], sizes = [8, 32], strides = [1, 1]} : vector<8x128xf32> to vector<8x32xf32>
    %328 = vector.extract_strided_slice %324 {offsets = [0, 32], sizes = [8, 32], strides = [1, 1]} : vector<8x128xf32> to vector<8x32xf32>
    %329 = vector.extract_strided_slice %324 {offsets = [0, 96], sizes = [8, 32], strides = [1, 1]} : vector<8x128xf32> to vector<8x32xf32>
    %330 = arith.mulf %328, %309 : vector<8x32xf32>
    %331 = arith.mulf %327, %326 : vector<8x32xf32>
    %332 = arith.addf %330, %331 : vector<8x32xf32>
    %333 = math.tanh %332 : vector<8x32xf32>
    %334 = arith.mulf %329, %333 : vector<8x32xf32>
    %335 = arith.negf %319 : vector<8x128xf32>
    %336 = math.exp %335 : vector<8x128xf32>
    %cst_68 = arith.constant 1.000000e+00 : f32
    %337 = vector.broadcast %cst_68 : f32 to vector<8x128xf32>
    %338 = arith.addf %337, %336 : vector<8x128xf32>
    %339 = arith.divf %337, %338 : vector<8x128xf32>
    %340 = vector.extract_strided_slice %319 {offsets = [0, 64], sizes = [8, 32], strides = [1, 1]} : vector<8x128xf32> to vector<8x32xf32>
    %341 = math.tanh %340 : vector<8x32xf32>
    %342 = vector.extract_strided_slice %339 {offsets = [0, 0], sizes = [8, 32], strides = [1, 1]} : vector<8x128xf32> to vector<8x32xf32>
    %343 = vector.extract_strided_slice %339 {offsets = [0, 32], sizes = [8, 32], strides = [1, 1]} : vector<8x128xf32> to vector<8x32xf32>
    %344 = vector.extract_strided_slice %339 {offsets = [0, 96], sizes = [8, 32], strides = [1, 1]} : vector<8x128xf32> to vector<8x32xf32>
    %345 = arith.mulf %343, %311 : vector<8x32xf32>
    %346 = arith.mulf %342, %341 : vector<8x32xf32>
    %347 = arith.addf %345, %346 : vector<8x32xf32>
    %348 = math.tanh %347 : vector<8x32xf32>
    %349 = arith.mulf %344, %348 : vector<8x32xf32>
    %c6_i32_69 = arith.constant 6 : i32
    %350 = vector.broadcast %c6_i32_69 : i32 to vector<8x32xi32>
    %351 = arith.cmpi sgt, %2, %350 : vector<8x32xi32>
    %c1_i32_70 = arith.constant 1 : i32
    %352 = vector.broadcast %c1_i32_70 : i32 to vector<8x32xi32>
    %353 = arith.cmpi sgt, %2, %352 : vector<8x32xi32>
    %cst_71 = arith.constant 0.000000e+00 : f32
    %354 = vector.broadcast %cst_71 : f32 to vector<8x32xf32>
    %355 = arith.select %351, %334, %354 : vector<8x32xi1>, vector<8x32xf32>
    %cst_72 = arith.constant 0.000000e+00 : f32
    %356 = vector.broadcast %cst_72 : f32 to vector<8x32xf32>
    %357 = arith.select %353, %349, %356 : vector<8x32xi1>, vector<8x32xf32>
    %358 = arith.select %351, %334, %308 : vector<8x32xi1>, vector<8x32xf32>
    %359 = arith.select %351, %332, %309 : vector<8x32xi1>, vector<8x32xf32>
    %360 = arith.select %353, %349, %310 : vector<8x32xi1>, vector<8x32xf32>
    %361 = arith.select %353, %347, %311 : vector<8x32xi1>, vector<8x32xf32>
    %362 = tpu.concatenate %358, %360 in 1 : vector<8x32xf32>, vector<8x32xf32> -> vector<8x64xf32>
    %cst_73 = arith.constant dense<0.000000e+00> : vector<8x256xf32>
    %363 = tpu.matmul %362, %10, %cst_73 {dimension_numbers = #tpu.dot_dimension_numbers<[1], [0], [0], [1], [0, 0, 1, 1], [], []>} : vector<8x64xf32>, vector<64x256xf32>, vector<8x256xf32> -> vector<8x256xf32>
    %c56_74 = arith.constant 56 : index
    %c0_75 = arith.constant 0 : index
    %364 = vector.load %arg12[%c56_74, %c0_75] : memref<64x256xf32, #tpu.memory_space<vmem>>, vector<8x128xf32>
    %365 = vector.extract_strided_slice %363 {offsets = [0, 0], sizes = [8, 128], strides = [1, 1]} : vector<8x256xf32> to vector<8x128xf32>
    %366 = arith.addf %364, %365 : vector<8x128xf32>
    %c0_76 = arith.constant 0 : index
    %c128_77 = arith.constant 128 : index
    %367 = vector.load %arg12[%c0_76, %c128_77] : memref<64x256xf32, #tpu.memory_space<vmem>>, vector<8x128xf32>
    %368 = vector.extract_strided_slice %363 {offsets = [0, 128], sizes = [8, 128], strides = [1, 1]} : vector<8x256xf32> to vector<8x128xf32>
    %369 = arith.addf %367, %368 : vector<8x128xf32>
    %370 = arith.negf %366 : vector<8x128xf32>
    %371 = math.exp %370 : vector<8x128xf32>
    %cst_78 = arith.constant 1.000000e+00 : f32
    %372 = vector.broadcast %cst_78 : f32 to vector<8x128xf32>
    %373 = arith.addf %372, %371 : vector<8x128xf32>
    %374 = arith.divf %372, %373 : vector<8x128xf32>
    %375 = vector.extract_strided_slice %366 {offsets = [0, 64], sizes = [8, 32], strides = [1, 1]} : vector<8x128xf32> to vector<8x32xf32>
    %376 = math.tanh %375 : vector<8x32xf32>
    %377 = vector.extract_strided_slice %374 {offsets = [0, 0], sizes = [8, 32], strides = [1, 1]} : vector<8x128xf32> to vector<8x32xf32>
    %378 = vector.extract_strided_slice %374 {offsets = [0, 32], sizes = [8, 32], strides = [1, 1]} : vector<8x128xf32> to vector<8x32xf32>
    %379 = vector.extract_strided_slice %374 {offsets = [0, 96], sizes = [8, 32], strides = [1, 1]} : vector<8x128xf32> to vector<8x32xf32>
    %380 = arith.mulf %378, %359 : vector<8x32xf32>
    %381 = arith.mulf %377, %376 : vector<8x32xf32>
    %382 = arith.addf %380, %381 : vector<8x32xf32>
    %383 = math.tanh %382 : vector<8x32xf32>
    %384 = arith.mulf %379, %383 : vector<8x32xf32>
    %385 = arith.negf %369 : vector<8x128xf32>
    %386 = math.exp %385 : vector<8x128xf32>
    %cst_79 = arith.constant 1.000000e+00 : f32
    %387 = vector.broadcast %cst_79 : f32 to vector<8x128xf32>
    %388 = arith.addf %387, %386 : vector<8x128xf32>
    %389 = arith.divf %387, %388 : vector<8x128xf32>
    %390 = vector.extract_strided_slice %369 {offsets = [0, 64], sizes = [8, 32], strides = [1, 1]} : vector<8x128xf32> to vector<8x32xf32>
    %391 = math.tanh %390 : vector<8x32xf32>
    %392 = vector.extract_strided_slice %389 {offsets = [0, 0], sizes = [8, 32], strides = [1, 1]} : vector<8x128xf32> to vector<8x32xf32>
    %393 = vector.extract_strided_slice %389 {offsets = [0, 32], sizes = [8, 32], strides = [1, 1]} : vector<8x128xf32> to vector<8x32xf32>
    %394 = vector.extract_strided_slice %389 {offsets = [0, 96], sizes = [8, 32], strides = [1, 1]} : vector<8x128xf32> to vector<8x32xf32>
    %395 = arith.mulf %393, %361 : vector<8x32xf32>
    %396 = arith.mulf %392, %391 : vector<8x32xf32>
    %397 = arith.addf %395, %396 : vector<8x32xf32>
    %398 = math.tanh %397 : vector<8x32xf32>
    %399 = arith.mulf %394, %398 : vector<8x32xf32>
    %c7_i32_80 = arith.constant 7 : i32
    %400 = vector.broadcast %c7_i32_80 : i32 to vector<8x32xi32>
    %401 = arith.cmpi sgt, %2, %400 : vector<8x32xi32>
    %c0_i32_81 = arith.constant 0 : i32
    %402 = vector.broadcast %c0_i32_81 : i32 to vector<8x32xi32>
    %403 = arith.cmpi sgt, %2, %402 : vector<8x32xi32>
    %cst_82 = arith.constant 0.000000e+00 : f32
    %404 = vector.broadcast %cst_82 : f32 to vector<8x32xf32>
    %405 = arith.select %401, %384, %404 : vector<8x32xi1>, vector<8x32xf32>
    %cst_83 = arith.constant 0.000000e+00 : f32
    %406 = vector.broadcast %cst_83 : f32 to vector<8x32xf32>
    %407 = arith.select %403, %399, %406 : vector<8x32xi1>, vector<8x32xf32>
    %408 = arith.select %401, %384, %358 : vector<8x32xi1>, vector<8x32xf32>
    %409 = arith.select %401, %382, %359 : vector<8x32xi1>, vector<8x32xf32>
    %410 = arith.select %403, %399, %360 : vector<8x32xi1>, vector<8x32xf32>
    %411 = arith.select %403, %397, %361 : vector<8x32xi1>, vector<8x32xf32>
    %412 = tpu.concatenate %55, %407 in 1 : vector<8x32xf32>, vector<8x32xf32> -> vector<8x64xf32>
    %413 = tpu.concatenate %105, %357 in 1 : vector<8x32xf32>, vector<8x32xf32> -> vector<8x64xf32>
    %414 = tpu.concatenate %155, %307 in 1 : vector<8x32xf32>, vector<8x32xf32> -> vector<8x64xf32>
    %415 = tpu.concatenate %205, %257 in 1 : vector<8x32xf32>, vector<8x32xf32> -> vector<8x64xf32>
    %416 = tpu.concatenate %255, %207 in 1 : vector<8x32xf32>, vector<8x32xf32> -> vector<8x64xf32>
    %417 = tpu.concatenate %305, %157 in 1 : vector<8x32xf32>, vector<8x32xf32> -> vector<8x64xf32>
    %418 = tpu.concatenate %355, %107 in 1 : vector<8x32xf32>, vector<8x32xf32> -> vector<8x64xf32>
    %419 = tpu.concatenate %405, %57 in 1 : vector<8x32xf32>, vector<8x32xf32> -> vector<8x64xf32>
    %420 = tpu.concatenate %412, %413, %414, %415, %416, %417, %418, %419 in 0 : vector<8x64xf32>, vector<8x64xf32>, vector<8x64xf32>, vector<8x64xf32>, vector<8x64xf32>, vector<8x64xf32>, vector<8x64xf32>, vector<8x64xf32> -> vector<64x64xf32>
    %c0_84 = arith.constant 0 : index
    %c0_85 = arith.constant 0 : index
    %421 = vector.load %arg6[%c0_84, %c0_85] : memref<64x256xf32, #tpu.memory_space<vmem>>, vector<64x256xf32>
    %cst_86 = arith.constant dense<0.000000e+00> : vector<64x256xf32>
    %422 = tpu.matmul %420, %421, %cst_86 {dimension_numbers = #tpu.dot_dimension_numbers<[1], [0], [0], [1], [0, 0, 1, 1], [], []>} : vector<64x64xf32>, vector<64x256xf32>, vector<64x256xf32> -> vector<64x256xf32>
    %c0_87 = arith.constant 0 : index
    %c0_88 = arith.constant 0 : index
    %423 = vector.load %arg7[%c0_87, %c0_88] : memref<1x256xf32, #tpu.memory_space<vmem>>, vector<1x256xf32>
    %424 = vector.broadcast %423 : vector<1x256xf32> to vector<64x256xf32>
    %425 = arith.addf %422, %424 : vector<64x256xf32>
    %c0_89 = arith.constant 0 : index
    %c0_90 = arith.constant 0 : index
    %426 = vector.load %arg12[%c0_89, %c0_90] : memref<64x256xf32, #tpu.memory_space<vmem>>, vector<64x256xf32>
    tpu.vector_store %arg12[%c0_89, %c0_90], %425 {strides = array<i32>} : memref<64x256xf32, #tpu.memory_space<vmem>>, vector<64x256xf32>,
    %c0_91 = arith.constant 0 : index
    %c0_92 = arith.constant 0 : index
    %427 = vector.load %arg8[%c0_91, %c0_92] : memref<64x256xf32, #tpu.memory_space<vmem>>, vector<64x256xf32>
    %cst_93 = arith.constant 0.000000e+00 : f32
    %428 = vector.broadcast %cst_93 : f32 to vector<8x32xf32>
    %429 = tpu.concatenate %428, %428 in 1 : vector<8x32xf32>, vector<8x32xf32> -> vector<8x64xf32>
    %cst_94 = arith.constant dense<0.000000e+00> : vector<8x256xf32>
    %430 = tpu.matmul %429, %427, %cst_94 {dimension_numbers = #tpu.dot_dimension_numbers<[1], [0], [0], [1], [0, 0, 1, 1], [], []>} : vector<8x64xf32>, vector<64x256xf32>, vector<8x256xf32> -> vector<8x256xf32>
    %c0_95 = arith.constant 0 : index
    %c0_96 = arith.constant 0 : index
    %431 = vector.load %arg12[%c0_95, %c0_96] : memref<64x256xf32, #tpu.memory_space<vmem>>, vector<8x128xf32>
    %432 = vector.extract_strided_slice %430 {offsets = [0, 0], sizes = [8, 128], strides = [1, 1]} : vector<8x256xf32> to vector<8x128xf32>
    %433 = arith.addf %431, %432 : vector<8x128xf32>
    %c56_97 = arith.constant 56 : index
    %c128_98 = arith.constant 128 : index
    %434 = vector.load %arg12[%c56_97, %c128_98] : memref<64x256xf32, #tpu.memory_space<vmem>>, vector<8x128xf32>
    %435 = vector.extract_strided_slice %430 {offsets = [0, 128], sizes = [8, 128], strides = [1, 1]} : vector<8x256xf32> to vector<8x128xf32>
    %436 = arith.addf %434, %435 : vector<8x128xf32>
    %437 = arith.negf %433 : vector<8x128xf32>
    %438 = math.exp %437 : vector<8x128xf32>
    %cst_99 = arith.constant 1.000000e+00 : f32
    %439 = vector.broadcast %cst_99 : f32 to vector<8x128xf32>
    %440 = arith.addf %439, %438 : vector<8x128xf32>
    %441 = arith.divf %439, %440 : vector<8x128xf32>
    %442 = vector.extract_strided_slice %433 {offsets = [0, 64], sizes = [8, 32], strides = [1, 1]} : vector<8x128xf32> to vector<8x32xf32>
    %443 = math.tanh %442 : vector<8x32xf32>
    %444 = vector.extract_strided_slice %441 {offsets = [0, 0], sizes = [8, 32], strides = [1, 1]} : vector<8x128xf32> to vector<8x32xf32>
    %445 = vector.extract_strided_slice %441 {offsets = [0, 32], sizes = [8, 32], strides = [1, 1]} : vector<8x128xf32> to vector<8x32xf32>
    %446 = vector.extract_strided_slice %441 {offsets = [0, 96], sizes = [8, 32], strides = [1, 1]} : vector<8x128xf32> to vector<8x32xf32>
    %447 = arith.mulf %445, %428 : vector<8x32xf32>
    %448 = arith.mulf %444, %443 : vector<8x32xf32>
    %449 = arith.addf %447, %448 : vector<8x32xf32>
    %450 = math.tanh %449 : vector<8x32xf32>
    %451 = arith.mulf %446, %450 : vector<8x32xf32>
    %452 = arith.negf %436 : vector<8x128xf32>
    %453 = math.exp %452 : vector<8x128xf32>
    %cst_100 = arith.constant 1.000000e+00 : f32
    %454 = vector.broadcast %cst_100 : f32 to vector<8x128xf32>
    %455 = arith.addf %454, %453 : vector<8x128xf32>
    %456 = arith.divf %454, %455 : vector<8x128xf32>
    %457 = vector.extract_strided_slice %436 {offsets = [0, 64], sizes = [8, 32], strides = [1, 1]} : vector<8x128xf32> to vector<8x32xf32>
    %458 = math.tanh %457 : vector<8x32xf32>
    %459 = vector.extract_strided_slice %456 {offsets = [0, 0], sizes = [8, 32], strides = [1, 1]} : vector<8x128xf32> to vector<8x32xf32>
    %460 = vector.extract_strided_slice %456 {offsets = [0, 32], sizes = [8, 32], strides = [1, 1]} : vector<8x128xf32> to vector<8x32xf32>
    %461 = vector.extract_strided_slice %456 {offsets = [0, 96], sizes = [8, 32], strides = [1, 1]} : vector<8x128xf32> to vector<8x32xf32>
    %462 = arith.mulf %460, %428 : vector<8x32xf32>
    %463 = arith.mulf %459, %458 : vector<8x32xf32>
    %464 = arith.addf %462, %463 : vector<8x32xf32>
    %465 = math.tanh %464 : vector<8x32xf32>
    %466 = arith.mulf %461, %465 : vector<8x32xf32>
    %c0_i32_101 = arith.constant 0 : i32
    %467 = vector.broadcast %c0_i32_101 : i32 to vector<8x32xi32>
    %468 = arith.cmpi sgt, %2, %467 : vector<8x32xi32>
    %c7_i32_102 = arith.constant 7 : i32
    %469 = vector.broadcast %c7_i32_102 : i32 to vector<8x32xi32>
    %470 = arith.cmpi sgt, %2, %469 : vector<8x32xi32>
    %cst_103 = arith.constant 0.000000e+00 : f32
    %471 = vector.broadcast %cst_103 : f32 to vector<8x32xf32>
    %472 = arith.select %468, %451, %471 : vector<8x32xi1>, vector<8x32xf32>
    %cst_104 = arith.constant 0.000000e+00 : f32
    %473 = vector.broadcast %cst_104 : f32 to vector<8x32xf32>
    %474 = arith.select %470, %466, %473 : vector<8x32xi1>, vector<8x32xf32>
    %475 = arith.select %468, %451, %428 : vector<8x32xi1>, vector<8x32xf32>
    %476 = arith.select %468, %449, %428 : vector<8x32xi1>, vector<8x32xf32>
    %477 = arith.select %470, %466, %428 : vector<8x32xi1>, vector<8x32xf32>
    %478 = arith.select %470, %464, %428 : vector<8x32xi1>, vector<8x32xf32>
    %479 = tpu.concatenate %475, %477 in 1 : vector<8x32xf32>, vector<8x32xf32> -> vector<8x64xf32>
    %cst_105 = arith.constant dense<0.000000e+00> : vector<8x256xf32>
    %480 = tpu.matmul %479, %427, %cst_105 {dimension_numbers = #tpu.dot_dimension_numbers<[1], [0], [0], [1], [0, 0, 1, 1], [], []>} : vector<8x64xf32>, vector<64x256xf32>, vector<8x256xf32> -> vector<8x256xf32>
    %c8_106 = arith.constant 8 : index
    %c0_107 = arith.constant 0 : index
    %481 = vector.load %arg12[%c8_106, %c0_107] : memref<64x256xf32, #tpu.memory_space<vmem>>, vector<8x128xf32>
    %482 = vector.extract_strided_slice %480 {offsets = [0, 0], sizes = [8, 128], strides = [1, 1]} : vector<8x256xf32> to vector<8x128xf32>
    %483 = arith.addf %481, %482 : vector<8x128xf32>
    %c48_108 = arith.constant 48 : index
    %c128_109 = arith.constant 128 : index
    %484 = vector.load %arg12[%c48_108, %c128_109] : memref<64x256xf32, #tpu.memory_space<vmem>>, vector<8x128xf32>
    %485 = vector.extract_strided_slice %480 {offsets = [0, 128], sizes = [8, 128], strides = [1, 1]} : vector<8x256xf32> to vector<8x128xf32>
    %486 = arith.addf %484, %485 : vector<8x128xf32>
    %487 = arith.negf %483 : vector<8x128xf32>
    %488 = math.exp %487 : vector<8x128xf32>
    %cst_110 = arith.constant 1.000000e+00 : f32
    %489 = vector.broadcast %cst_110 : f32 to vector<8x128xf32>
    %490 = arith.addf %489, %488 : vector<8x128xf32>
    %491 = arith.divf %489, %490 : vector<8x128xf32>
    %492 = vector.extract_strided_slice %483 {offsets = [0, 64], sizes = [8, 32], strides = [1, 1]} : vector<8x128xf32> to vector<8x32xf32>
    %493 = math.tanh %492 : vector<8x32xf32>
    %494 = vector.extract_strided_slice %491 {offsets = [0, 0], sizes = [8, 32], strides = [1, 1]} : vector<8x128xf32> to vector<8x32xf32>
    %495 = vector.extract_strided_slice %491 {offsets = [0, 32], sizes = [8, 32], strides = [1, 1]} : vector<8x128xf32> to vector<8x32xf32>
    %496 = vector.extract_strided_slice %491 {offsets = [0, 96], sizes = [8, 32], strides = [1, 1]} : vector<8x128xf32> to vector<8x32xf32>
    %497 = arith.mulf %495, %476 : vector<8x32xf32>
    %498 = arith.mulf %494, %493 : vector<8x32xf32>
    %499 = arith.addf %497, %498 : vector<8x32xf32>
    %500 = math.tanh %499 : vector<8x32xf32>
    %501 = arith.mulf %496, %500 : vector<8x32xf32>
    %502 = arith.negf %486 : vector<8x128xf32>
    %503 = math.exp %502 : vector<8x128xf32>
    %cst_111 = arith.constant 1.000000e+00 : f32
    %504 = vector.broadcast %cst_111 : f32 to vector<8x128xf32>
    %505 = arith.addf %504, %503 : vector<8x128xf32>
    %506 = arith.divf %504, %505 : vector<8x128xf32>
    %507 = vector.extract_strided_slice %486 {offsets = [0, 64], sizes = [8, 32], strides = [1, 1]} : vector<8x128xf32> to vector<8x32xf32>
    %508 = math.tanh %507 : vector<8x32xf32>
    %509 = vector.extract_strided_slice %506 {offsets = [0, 0], sizes = [8, 32], strides = [1, 1]} : vector<8x128xf32> to vector<8x32xf32>
    %510 = vector.extract_strided_slice %506 {offsets = [0, 32], sizes = [8, 32], strides = [1, 1]} : vector<8x128xf32> to vector<8x32xf32>
    %511 = vector.extract_strided_slice %506 {offsets = [0, 96], sizes = [8, 32], strides = [1, 1]} : vector<8x128xf32> to vector<8x32xf32>
    %512 = arith.mulf %510, %478 : vector<8x32xf32>
    %513 = arith.mulf %509, %508 : vector<8x32xf32>
    %514 = arith.addf %512, %513 : vector<8x32xf32>
    %515 = math.tanh %514 : vector<8x32xf32>
    %516 = arith.mulf %511, %515 : vector<8x32xf32>
    %c1_i32_112 = arith.constant 1 : i32
    %517 = vector.broadcast %c1_i32_112 : i32 to vector<8x32xi32>
    %518 = arith.cmpi sgt, %2, %517 : vector<8x32xi32>
    %c6_i32_113 = arith.constant 6 : i32
    %519 = vector.broadcast %c6_i32_113 : i32 to vector<8x32xi32>
    %520 = arith.cmpi sgt, %2, %519 : vector<8x32xi32>
    %cst_114 = arith.constant 0.000000e+00 : f32
    %521 = vector.broadcast %cst_114 : f32 to vector<8x32xf32>
    %522 = arith.select %518, %501, %521 : vector<8x32xi1>, vector<8x32xf32>
    %cst_115 = arith.constant 0.000000e+00 : f32
    %523 = vector.broadcast %cst_115 : f32 to vector<8x32xf32>
    %524 = arith.select %520, %516, %523 : vector<8x32xi1>, vector<8x32xf32>
    %525 = arith.select %518, %501, %475 : vector<8x32xi1>, vector<8x32xf32>
    %526 = arith.select %518, %499, %476 : vector<8x32xi1>, vector<8x32xf32>
    %527 = arith.select %520, %516, %477 : vector<8x32xi1>, vector<8x32xf32>
    %528 = arith.select %520, %514, %478 : vector<8x32xi1>, vector<8x32xf32>
    %529 = tpu.concatenate %525, %527 in 1 : vector<8x32xf32>, vector<8x32xf32> -> vector<8x64xf32>
    %cst_116 = arith.constant dense<0.000000e+00> : vector<8x256xf32>
    %530 = tpu.matmul %529, %427, %cst_116 {dimension_numbers = #tpu.dot_dimension_numbers<[1], [0], [0], [1], [0, 0, 1, 1], [], []>} : vector<8x64xf32>, vector<64x256xf32>, vector<8x256xf32> -> vector<8x256xf32>
    %c16_117 = arith.constant 16 : index
    %c0_118 = arith.constant 0 : index
    %531 = vector.load %arg12[%c16_117, %c0_118] : memref<64x256xf32, #tpu.memory_space<vmem>>, vector<8x128xf32>
    %532 = vector.extract_strided_slice %530 {offsets = [0, 0], sizes = [8, 128], strides = [1, 1]} : vector<8x256xf32> to vector<8x128xf32>
    %533 = arith.addf %531, %532 : vector<8x128xf32>
    %c40_119 = arith.constant 40 : index
    %c128_120 = arith.constant 128 : index
    %534 = vector.load %arg12[%c40_119, %c128_120] : memref<64x256xf32, #tpu.memory_space<vmem>>, vector<8x128xf32>
    %535 = vector.extract_strided_slice %530 {offsets = [0, 128], sizes = [8, 128], strides = [1, 1]} : vector<8x256xf32> to vector<8x128xf32>
    %536 = arith.addf %534, %535 : vector<8x128xf32>
    %537 = arith.negf %533 : vector<8x128xf32>
    %538 = math.exp %537 : vector<8x128xf32>
    %cst_121 = arith.constant 1.000000e+00 : f32
    %539 = vector.broadcast %cst_121 : f32 to vector<8x128xf32>
    %540 = arith.addf %539, %538 : vector<8x128xf32>
    %541 = arith.divf %539, %540 : vector<8x128xf32>
    %542 = vector.extract_strided_slice %533 {offsets = [0, 64], sizes = [8, 32], strides = [1, 1]} : vector<8x128xf32> to vector<8x32xf32>
    %543 = math.tanh %542 : vector<8x32xf32>
    %544 = vector.extract_strided_slice %541 {offsets = [0, 0], sizes = [8, 32], strides = [1, 1]} : vector<8x128xf32> to vector<8x32xf32>
    %545 = vector.extract_strided_slice %541 {offsets = [0, 32], sizes = [8, 32], strides = [1, 1]} : vector<8x128xf32> to vector<8x32xf32>
    %546 = vector.extract_strided_slice %541 {offsets = [0, 96], sizes = [8, 32], strides = [1, 1]} : vector<8x128xf32> to vector<8x32xf32>
    %547 = arith.mulf %545, %526 : vector<8x32xf32>
    %548 = arith.mulf %544, %543 : vector<8x32xf32>
    %549 = arith.addf %547, %548 : vector<8x32xf32>
    %550 = math.tanh %549 : vector<8x32xf32>
    %551 = arith.mulf %546, %550 : vector<8x32xf32>
    %552 = arith.negf %536 : vector<8x128xf32>
    %553 = math.exp %552 : vector<8x128xf32>
    %cst_122 = arith.constant 1.000000e+00 : f32
    %554 = vector.broadcast %cst_122 : f32 to vector<8x128xf32>
    %555 = arith.addf %554, %553 : vector<8x128xf32>
    %556 = arith.divf %554, %555 : vector<8x128xf32>
    %557 = vector.extract_strided_slice %536 {offsets = [0, 64], sizes = [8, 32], strides = [1, 1]} : vector<8x128xf32> to vector<8x32xf32>
    %558 = math.tanh %557 : vector<8x32xf32>
    %559 = vector.extract_strided_slice %556 {offsets = [0, 0], sizes = [8, 32], strides = [1, 1]} : vector<8x128xf32> to vector<8x32xf32>
    %560 = vector.extract_strided_slice %556 {offsets = [0, 32], sizes = [8, 32], strides = [1, 1]} : vector<8x128xf32> to vector<8x32xf32>
    %561 = vector.extract_strided_slice %556 {offsets = [0, 96], sizes = [8, 32], strides = [1, 1]} : vector<8x128xf32> to vector<8x32xf32>
    %562 = arith.mulf %560, %528 : vector<8x32xf32>
    %563 = arith.mulf %559, %558 : vector<8x32xf32>
    %564 = arith.addf %562, %563 : vector<8x32xf32>
    %565 = math.tanh %564 : vector<8x32xf32>
    %566 = arith.mulf %561, %565 : vector<8x32xf32>
    %c2_i32_123 = arith.constant 2 : i32
    %567 = vector.broadcast %c2_i32_123 : i32 to vector<8x32xi32>
    %568 = arith.cmpi sgt, %2, %567 : vector<8x32xi32>
    %c5_i32_124 = arith.constant 5 : i32
    %569 = vector.broadcast %c5_i32_124 : i32 to vector<8x32xi32>
    %570 = arith.cmpi sgt, %2, %569 : vector<8x32xi32>
    %cst_125 = arith.constant 0.000000e+00 : f32
    %571 = vector.broadcast %cst_125 : f32 to vector<8x32xf32>
    %572 = arith.select %568, %551, %571 : vector<8x32xi1>, vector<8x32xf32>
    %cst_126 = arith.constant 0.000000e+00 : f32
    %573 = vector.broadcast %cst_126 : f32 to vector<8x32xf32>
    %574 = arith.select %570, %566, %573 : vector<8x32xi1>, vector<8x32xf32>
    %575 = arith.select %568, %551, %525 : vector<8x32xi1>, vector<8x32xf32>
    %576 = arith.select %568, %549, %526 : vector<8x32xi1>, vector<8x32xf32>
    %577 = arith.select %570, %566, %527 : vector<8x32xi1>, vector<8x32xf32>
    %578 = arith.select %570, %564, %528 : vector<8x32xi1>, vector<8x32xf32>
    %579 = tpu.concatenate %575, %577 in 1 : vector<8x32xf32>, vector<8x32xf32> -> vector<8x64xf32>
    %cst_127 = arith.constant dense<0.000000e+00> : vector<8x256xf32>
    %580 = tpu.matmul %579, %427, %cst_127 {dimension_numbers = #tpu.dot_dimension_numbers<[1], [0], [0], [1], [0, 0, 1, 1], [], []>} : vector<8x64xf32>, vector<64x256xf32>, vector<8x256xf32> -> vector<8x256xf32>
    %c24_128 = arith.constant 24 : index
    %c0_129 = arith.constant 0 : index
    %581 = vector.load %arg12[%c24_128, %c0_129] : memref<64x256xf32, #tpu.memory_space<vmem>>, vector<8x128xf32>
    %582 = vector.extract_strided_slice %580 {offsets = [0, 0], sizes = [8, 128], strides = [1, 1]} : vector<8x256xf32> to vector<8x128xf32>
    %583 = arith.addf %581, %582 : vector<8x128xf32>
    %c32_130 = arith.constant 32 : index
    %c128_131 = arith.constant 128 : index
    %584 = vector.load %arg12[%c32_130, %c128_131] : memref<64x256xf32, #tpu.memory_space<vmem>>, vector<8x128xf32>
    %585 = vector.extract_strided_slice %580 {offsets = [0, 128], sizes = [8, 128], strides = [1, 1]} : vector<8x256xf32> to vector<8x128xf32>
    %586 = arith.addf %584, %585 : vector<8x128xf32>
    %587 = arith.negf %583 : vector<8x128xf32>
    %588 = math.exp %587 : vector<8x128xf32>
    %cst_132 = arith.constant 1.000000e+00 : f32
    %589 = vector.broadcast %cst_132 : f32 to vector<8x128xf32>
    %590 = arith.addf %589, %588 : vector<8x128xf32>
    %591 = arith.divf %589, %590 : vector<8x128xf32>
    %592 = vector.extract_strided_slice %583 {offsets = [0, 64], sizes = [8, 32], strides = [1, 1]} : vector<8x128xf32> to vector<8x32xf32>
    %593 = math.tanh %592 : vector<8x32xf32>
    %594 = vector.extract_strided_slice %591 {offsets = [0, 0], sizes = [8, 32], strides = [1, 1]} : vector<8x128xf32> to vector<8x32xf32>
    %595 = vector.extract_strided_slice %591 {offsets = [0, 32], sizes = [8, 32], strides = [1, 1]} : vector<8x128xf32> to vector<8x32xf32>
    %596 = vector.extract_strided_slice %591 {offsets = [0, 96], sizes = [8, 32], strides = [1, 1]} : vector<8x128xf32> to vector<8x32xf32>
    %597 = arith.mulf %595, %576 : vector<8x32xf32>
    %598 = arith.mulf %594, %593 : vector<8x32xf32>
    %599 = arith.addf %597, %598 : vector<8x32xf32>
    %600 = math.tanh %599 : vector<8x32xf32>
    %601 = arith.mulf %596, %600 : vector<8x32xf32>
    %602 = arith.negf %586 : vector<8x128xf32>
    %603 = math.exp %602 : vector<8x128xf32>
    %cst_133 = arith.constant 1.000000e+00 : f32
    %604 = vector.broadcast %cst_133 : f32 to vector<8x128xf32>
    %605 = arith.addf %604, %603 : vector<8x128xf32>
    %606 = arith.divf %604, %605 : vector<8x128xf32>
    %607 = vector.extract_strided_slice %586 {offsets = [0, 64], sizes = [8, 32], strides = [1, 1]} : vector<8x128xf32> to vector<8x32xf32>
    %608 = math.tanh %607 : vector<8x32xf32>
    %609 = vector.extract_strided_slice %606 {offsets = [0, 0], sizes = [8, 32], strides = [1, 1]} : vector<8x128xf32> to vector<8x32xf32>
    %610 = vector.extract_strided_slice %606 {offsets = [0, 32], sizes = [8, 32], strides = [1, 1]} : vector<8x128xf32> to vector<8x32xf32>
    %611 = vector.extract_strided_slice %606 {offsets = [0, 96], sizes = [8, 32], strides = [1, 1]} : vector<8x128xf32> to vector<8x32xf32>
    %612 = arith.mulf %610, %578 : vector<8x32xf32>
    %613 = arith.mulf %609, %608 : vector<8x32xf32>
    %614 = arith.addf %612, %613 : vector<8x32xf32>
    %615 = math.tanh %614 : vector<8x32xf32>
    %616 = arith.mulf %611, %615 : vector<8x32xf32>
    %c3_i32_134 = arith.constant 3 : i32
    %617 = vector.broadcast %c3_i32_134 : i32 to vector<8x32xi32>
    %618 = arith.cmpi sgt, %2, %617 : vector<8x32xi32>
    %c4_i32_135 = arith.constant 4 : i32
    %619 = vector.broadcast %c4_i32_135 : i32 to vector<8x32xi32>
    %620 = arith.cmpi sgt, %2, %619 : vector<8x32xi32>
    %cst_136 = arith.constant 0.000000e+00 : f32
    %621 = vector.broadcast %cst_136 : f32 to vector<8x32xf32>
    %622 = arith.select %618, %601, %621 : vector<8x32xi1>, vector<8x32xf32>
    %cst_137 = arith.constant 0.000000e+00 : f32
    %623 = vector.broadcast %cst_137 : f32 to vector<8x32xf32>
    %624 = arith.select %620, %616, %623 : vector<8x32xi1>, vector<8x32xf32>
    %625 = arith.select %618, %601, %575 : vector<8x32xi1>, vector<8x32xf32>
    %626 = arith.select %618, %599, %576 : vector<8x32xi1>, vector<8x32xf32>
    %627 = arith.select %620, %616, %577 : vector<8x32xi1>, vector<8x32xf32>
    %628 = arith.select %620, %614, %578 : vector<8x32xi1>, vector<8x32xf32>
    %629 = tpu.concatenate %625, %627 in 1 : vector<8x32xf32>, vector<8x32xf32> -> vector<8x64xf32>
    %cst_138 = arith.constant dense<0.000000e+00> : vector<8x256xf32>
    %630 = tpu.matmul %629, %427, %cst_138 {dimension_numbers = #tpu.dot_dimension_numbers<[1], [0], [0], [1], [0, 0, 1, 1], [], []>} : vector<8x64xf32>, vector<64x256xf32>, vector<8x256xf32> -> vector<8x256xf32>
    %c32_139 = arith.constant 32 : index
    %c0_140 = arith.constant 0 : index
    %631 = vector.load %arg12[%c32_139, %c0_140] : memref<64x256xf32, #tpu.memory_space<vmem>>, vector<8x128xf32>
    %632 = vector.extract_strided_slice %630 {offsets = [0, 0], sizes = [8, 128], strides = [1, 1]} : vector<8x256xf32> to vector<8x128xf32>
    %633 = arith.addf %631, %632 : vector<8x128xf32>
    %c24_141 = arith.constant 24 : index
    %c128_142 = arith.constant 128 : index
    %634 = vector.load %arg12[%c24_141, %c128_142] : memref<64x256xf32, #tpu.memory_space<vmem>>, vector<8x128xf32>
    %635 = vector.extract_strided_slice %630 {offsets = [0, 128], sizes = [8, 128], strides = [1, 1]} : vector<8x256xf32> to vector<8x128xf32>
    %636 = arith.addf %634, %635 : vector<8x128xf32>
    %637 = arith.negf %633 : vector<8x128xf32>
    %638 = math.exp %637 : vector<8x128xf32>
    %cst_143 = arith.constant 1.000000e+00 : f32
    %639 = vector.broadcast %cst_143 : f32 to vector<8x128xf32>
    %640 = arith.addf %639, %638 : vector<8x128xf32>
    %641 = arith.divf %639, %640 : vector<8x128xf32>
    %642 = vector.extract_strided_slice %633 {offsets = [0, 64], sizes = [8, 32], strides = [1, 1]} : vector<8x128xf32> to vector<8x32xf32>
    %643 = math.tanh %642 : vector<8x32xf32>
    %644 = vector.extract_strided_slice %641 {offsets = [0, 0], sizes = [8, 32], strides = [1, 1]} : vector<8x128xf32> to vector<8x32xf32>
    %645 = vector.extract_strided_slice %641 {offsets = [0, 32], sizes = [8, 32], strides = [1, 1]} : vector<8x128xf32> to vector<8x32xf32>
    %646 = vector.extract_strided_slice %641 {offsets = [0, 96], sizes = [8, 32], strides = [1, 1]} : vector<8x128xf32> to vector<8x32xf32>
    %647 = arith.mulf %645, %626 : vector<8x32xf32>
    %648 = arith.mulf %644, %643 : vector<8x32xf32>
    %649 = arith.addf %647, %648 : vector<8x32xf32>
    %650 = math.tanh %649 : vector<8x32xf32>
    %651 = arith.mulf %646, %650 : vector<8x32xf32>
    %652 = arith.negf %636 : vector<8x128xf32>
    %653 = math.exp %652 : vector<8x128xf32>
    %cst_144 = arith.constant 1.000000e+00 : f32
    %654 = vector.broadcast %cst_144 : f32 to vector<8x128xf32>
    %655 = arith.addf %654, %653 : vector<8x128xf32>
    %656 = arith.divf %654, %655 : vector<8x128xf32>
    %657 = vector.extract_strided_slice %636 {offsets = [0, 64], sizes = [8, 32], strides = [1, 1]} : vector<8x128xf32> to vector<8x32xf32>
    %658 = math.tanh %657 : vector<8x32xf32>
    %659 = vector.extract_strided_slice %656 {offsets = [0, 0], sizes = [8, 32], strides = [1, 1]} : vector<8x128xf32> to vector<8x32xf32>
    %660 = vector.extract_strided_slice %656 {offsets = [0, 32], sizes = [8, 32], strides = [1, 1]} : vector<8x128xf32> to vector<8x32xf32>
    %661 = vector.extract_strided_slice %656 {offsets = [0, 96], sizes = [8, 32], strides = [1, 1]} : vector<8x128xf32> to vector<8x32xf32>
    %662 = arith.mulf %660, %628 : vector<8x32xf32>
    %663 = arith.mulf %659, %658 : vector<8x32xf32>
    %664 = arith.addf %662, %663 : vector<8x32xf32>
    %665 = math.tanh %664 : vector<8x32xf32>
    %666 = arith.mulf %661, %665 : vector<8x32xf32>
    %c4_i32_145 = arith.constant 4 : i32
    %667 = vector.broadcast %c4_i32_145 : i32 to vector<8x32xi32>
    %668 = arith.cmpi sgt, %2, %667 : vector<8x32xi32>
    %c3_i32_146 = arith.constant 3 : i32
    %669 = vector.broadcast %c3_i32_146 : i32 to vector<8x32xi32>
    %670 = arith.cmpi sgt, %2, %669 : vector<8x32xi32>
    %cst_147 = arith.constant 0.000000e+00 : f32
    %671 = vector.broadcast %cst_147 : f32 to vector<8x32xf32>
    %672 = arith.select %668, %651, %671 : vector<8x32xi1>, vector<8x32xf32>
    %cst_148 = arith.constant 0.000000e+00 : f32
    %673 = vector.broadcast %cst_148 : f32 to vector<8x32xf32>
    %674 = arith.select %670, %666, %673 : vector<8x32xi1>, vector<8x32xf32>
    %675 = arith.select %668, %651, %625 : vector<8x32xi1>, vector<8x32xf32>
    %676 = arith.select %668, %649, %626 : vector<8x32xi1>, vector<8x32xf32>
    %677 = arith.select %670, %666, %627 : vector<8x32xi1>, vector<8x32xf32>
    %678 = arith.select %670, %664, %628 : vector<8x32xi1>, vector<8x32xf32>
    %679 = tpu.concatenate %675, %677 in 1 : vector<8x32xf32>, vector<8x32xf32> -> vector<8x64xf32>
    %cst_149 = arith.constant dense<0.000000e+00> : vector<8x256xf32>
    %680 = tpu.matmul %679, %427, %cst_149 {dimension_numbers = #tpu.dot_dimension_numbers<[1], [0], [0], [1], [0, 0, 1, 1], [], []>} : vector<8x64xf32>, vector<64x256xf32>, vector<8x256xf32> -> vector<8x256xf32>
    %c40_150 = arith.constant 40 : index
    %c0_151 = arith.constant 0 : index
    %681 = vector.load %arg12[%c40_150, %c0_151] : memref<64x256xf32, #tpu.memory_space<vmem>>, vector<8x128xf32>
    %682 = vector.extract_strided_slice %680 {offsets = [0, 0], sizes = [8, 128], strides = [1, 1]} : vector<8x256xf32> to vector<8x128xf32>
    %683 = arith.addf %681, %682 : vector<8x128xf32>
    %c16_152 = arith.constant 16 : index
    %c128_153 = arith.constant 128 : index
    %684 = vector.load %arg12[%c16_152, %c128_153] : memref<64x256xf32, #tpu.memory_space<vmem>>, vector<8x128xf32>
    %685 = vector.extract_strided_slice %680 {offsets = [0, 128], sizes = [8, 128], strides = [1, 1]} : vector<8x256xf32> to vector<8x128xf32>
    %686 = arith.addf %684, %685 : vector<8x128xf32>
    %687 = arith.negf %683 : vector<8x128xf32>
    %688 = math.exp %687 : vector<8x128xf32>
    %cst_154 = arith.constant 1.000000e+00 : f32
    %689 = vector.broadcast %cst_154 : f32 to vector<8x128xf32>
    %690 = arith.addf %689, %688 : vector<8x128xf32>
    %691 = arith.divf %689, %690 : vector<8x128xf32>
    %692 = vector.extract_strided_slice %683 {offsets = [0, 64], sizes = [8, 32], strides = [1, 1]} : vector<8x128xf32> to vector<8x32xf32>
    %693 = math.tanh %692 : vector<8x32xf32>
    %694 = vector.extract_strided_slice %691 {offsets = [0, 0], sizes = [8, 32], strides = [1, 1]} : vector<8x128xf32> to vector<8x32xf32>
    %695 = vector.extract_strided_slice %691 {offsets = [0, 32], sizes = [8, 32], strides = [1, 1]} : vector<8x128xf32> to vector<8x32xf32>
    %696 = vector.extract_strided_slice %691 {offsets = [0, 96], sizes = [8, 32], strides = [1, 1]} : vector<8x128xf32> to vector<8x32xf32>
    %697 = arith.mulf %695, %676 : vector<8x32xf32>
    %698 = arith.mulf %694, %693 : vector<8x32xf32>
    %699 = arith.addf %697, %698 : vector<8x32xf32>
    %700 = math.tanh %699 : vector<8x32xf32>
    %701 = arith.mulf %696, %700 : vector<8x32xf32>
    %702 = arith.negf %686 : vector<8x128xf32>
    %703 = math.exp %702 : vector<8x128xf32>
    %cst_155 = arith.constant 1.000000e+00 : f32
    %704 = vector.broadcast %cst_155 : f32 to vector<8x128xf32>
    %705 = arith.addf %704, %703 : vector<8x128xf32>
    %706 = arith.divf %704, %705 : vector<8x128xf32>
    %707 = vector.extract_strided_slice %686 {offsets = [0, 64], sizes = [8, 32], strides = [1, 1]} : vector<8x128xf32> to vector<8x32xf32>
    %708 = math.tanh %707 : vector<8x32xf32>
    %709 = vector.extract_strided_slice %706 {offsets = [0, 0], sizes = [8, 32], strides = [1, 1]} : vector<8x128xf32> to vector<8x32xf32>
    %710 = vector.extract_strided_slice %706 {offsets = [0, 32], sizes = [8, 32], strides = [1, 1]} : vector<8x128xf32> to vector<8x32xf32>
    %711 = vector.extract_strided_slice %706 {offsets = [0, 96], sizes = [8, 32], strides = [1, 1]} : vector<8x128xf32> to vector<8x32xf32>
    %712 = arith.mulf %710, %678 : vector<8x32xf32>
    %713 = arith.mulf %709, %708 : vector<8x32xf32>
    %714 = arith.addf %712, %713 : vector<8x32xf32>
    %715 = math.tanh %714 : vector<8x32xf32>
    %716 = arith.mulf %711, %715 : vector<8x32xf32>
    %c5_i32_156 = arith.constant 5 : i32
    %717 = vector.broadcast %c5_i32_156 : i32 to vector<8x32xi32>
    %718 = arith.cmpi sgt, %2, %717 : vector<8x32xi32>
    %c2_i32_157 = arith.constant 2 : i32
    %719 = vector.broadcast %c2_i32_157 : i32 to vector<8x32xi32>
    %720 = arith.cmpi sgt, %2, %719 : vector<8x32xi32>
    %cst_158 = arith.constant 0.000000e+00 : f32
    %721 = vector.broadcast %cst_158 : f32 to vector<8x32xf32>
    %722 = arith.select %718, %701, %721 : vector<8x32xi1>, vector<8x32xf32>
    %cst_159 = arith.constant 0.000000e+00 : f32
    %723 = vector.broadcast %cst_159 : f32 to vector<8x32xf32>
    %724 = arith.select %720, %716, %723 : vector<8x32xi1>, vector<8x32xf32>
    %725 = arith.select %718, %701, %675 : vector<8x32xi1>, vector<8x32xf32>
    %726 = arith.select %718, %699, %676 : vector<8x32xi1>, vector<8x32xf32>
    %727 = arith.select %720, %716, %677 : vector<8x32xi1>, vector<8x32xf32>
    %728 = arith.select %720, %714, %678 : vector<8x32xi1>, vector<8x32xf32>
    %729 = tpu.concatenate %725, %727 in 1 : vector<8x32xf32>, vector<8x32xf32> -> vector<8x64xf32>
    %cst_160 = arith.constant dense<0.000000e+00> : vector<8x256xf32>
    %730 = tpu.matmul %729, %427, %cst_160 {dimension_numbers = #tpu.dot_dimension_numbers<[1], [0], [0], [1], [0, 0, 1, 1], [], []>} : vector<8x64xf32>, vector<64x256xf32>, vector<8x256xf32> -> vector<8x256xf32>
    %c48_161 = arith.constant 48 : index
    %c0_162 = arith.constant 0 : index
    %731 = vector.load %arg12[%c48_161, %c0_162] : memref<64x256xf32, #tpu.memory_space<vmem>>, vector<8x128xf32>
    %732 = vector.extract_strided_slice %730 {offsets = [0, 0], sizes = [8, 128], strides = [1, 1]} : vector<8x256xf32> to vector<8x128xf32>
    %733 = arith.addf %731, %732 : vector<8x128xf32>
    %c8_163 = arith.constant 8 : index
    %c128_164 = arith.constant 128 : index
    %734 = vector.load %arg12[%c8_163, %c128_164] : memref<64x256xf32, #tpu.memory_space<vmem>>, vector<8x128xf32>
    %735 = vector.extract_strided_slice %730 {offsets = [0, 128], sizes = [8, 128], strides = [1, 1]} : vector<8x256xf32> to vector<8x128xf32>
    %736 = arith.addf %734, %735 : vector<8x128xf32>
    %737 = arith.negf %733 : vector<8x128xf32>
    %738 = math.exp %737 : vector<8x128xf32>
    %cst_165 = arith.constant 1.000000e+00 : f32
    %739 = vector.broadcast %cst_165 : f32 to vector<8x128xf32>
    %740 = arith.addf %739, %738 : vector<8x128xf32>
    %741 = arith.divf %739, %740 : vector<8x128xf32>
    %742 = vector.extract_strided_slice %733 {offsets = [0, 64], sizes = [8, 32], strides = [1, 1]} : vector<8x128xf32> to vector<8x32xf32>
    %743 = math.tanh %742 : vector<8x32xf32>
    %744 = vector.extract_strided_slice %741 {offsets = [0, 0], sizes = [8, 32], strides = [1, 1]} : vector<8x128xf32> to vector<8x32xf32>
    %745 = vector.extract_strided_slice %741 {offsets = [0, 32], sizes = [8, 32], strides = [1, 1]} : vector<8x128xf32> to vector<8x32xf32>
    %746 = vector.extract_strided_slice %741 {offsets = [0, 96], sizes = [8, 32], strides = [1, 1]} : vector<8x128xf32> to vector<8x32xf32>
    %747 = arith.mulf %745, %726 : vector<8x32xf32>
    %748 = arith.mulf %744, %743 : vector<8x32xf32>
    %749 = arith.addf %747, %748 : vector<8x32xf32>
    %750 = math.tanh %749 : vector<8x32xf32>
    %751 = arith.mulf %746, %750 : vector<8x32xf32>
    %752 = arith.negf %736 : vector<8x128xf32>
    %753 = math.exp %752 : vector<8x128xf32>
    %cst_166 = arith.constant 1.000000e+00 : f32
    %754 = vector.broadcast %cst_166 : f32 to vector<8x128xf32>
    %755 = arith.addf %754, %753 : vector<8x128xf32>
    %756 = arith.divf %754, %755 : vector<8x128xf32>
    %757 = vector.extract_strided_slice %736 {offsets = [0, 64], sizes = [8, 32], strides = [1, 1]} : vector<8x128xf32> to vector<8x32xf32>
    %758 = math.tanh %757 : vector<8x32xf32>
    %759 = vector.extract_strided_slice %756 {offsets = [0, 0], sizes = [8, 32], strides = [1, 1]} : vector<8x128xf32> to vector<8x32xf32>
    %760 = vector.extract_strided_slice %756 {offsets = [0, 32], sizes = [8, 32], strides = [1, 1]} : vector<8x128xf32> to vector<8x32xf32>
    %761 = vector.extract_strided_slice %756 {offsets = [0, 96], sizes = [8, 32], strides = [1, 1]} : vector<8x128xf32> to vector<8x32xf32>
    %762 = arith.mulf %760, %728 : vector<8x32xf32>
    %763 = arith.mulf %759, %758 : vector<8x32xf32>
    %764 = arith.addf %762, %763 : vector<8x32xf32>
    %765 = math.tanh %764 : vector<8x32xf32>
    %766 = arith.mulf %761, %765 : vector<8x32xf32>
    %c6_i32_167 = arith.constant 6 : i32
    %767 = vector.broadcast %c6_i32_167 : i32 to vector<8x32xi32>
    %768 = arith.cmpi sgt, %2, %767 : vector<8x32xi32>
    %c1_i32_168 = arith.constant 1 : i32
    %769 = vector.broadcast %c1_i32_168 : i32 to vector<8x32xi32>
    %770 = arith.cmpi sgt, %2, %769 : vector<8x32xi32>
    %cst_169 = arith.constant 0.000000e+00 : f32
    %771 = vector.broadcast %cst_169 : f32 to vector<8x32xf32>
    %772 = arith.select %768, %751, %771 : vector<8x32xi1>, vector<8x32xf32>
    %cst_170 = arith.constant 0.000000e+00 : f32
    %773 = vector.broadcast %cst_170 : f32 to vector<8x32xf32>
    %774 = arith.select %770, %766, %773 : vector<8x32xi1>, vector<8x32xf32>
    %775 = arith.select %768, %751, %725 : vector<8x32xi1>, vector<8x32xf32>
    %776 = arith.select %768, %749, %726 : vector<8x32xi1>, vector<8x32xf32>
    %777 = arith.select %770, %766, %727 : vector<8x32xi1>, vector<8x32xf32>
    %778 = arith.select %770, %764, %728 : vector<8x32xi1>, vector<8x32xf32>
    %779 = tpu.concatenate %775, %777 in 1 : vector<8x32xf32>, vector<8x32xf32> -> vector<8x64xf32>
    %cst_171 = arith.constant dense<0.000000e+00> : vector<8x256xf32>
    %780 = tpu.matmul %779, %427, %cst_171 {dimension_numbers = #tpu.dot_dimension_numbers<[1], [0], [0], [1], [0, 0, 1, 1], [], []>} : vector<8x64xf32>, vector<64x256xf32>, vector<8x256xf32> -> vector<8x256xf32>
    %c56_172 = arith.constant 56 : index
    %c0_173 = arith.constant 0 : index
    %781 = vector.load %arg12[%c56_172, %c0_173] : memref<64x256xf32, #tpu.memory_space<vmem>>, vector<8x128xf32>
    %782 = vector.extract_strided_slice %780 {offsets = [0, 0], sizes = [8, 128], strides = [1, 1]} : vector<8x256xf32> to vector<8x128xf32>
    %783 = arith.addf %781, %782 : vector<8x128xf32>
    %c0_174 = arith.constant 0 : index
    %c128_175 = arith.constant 128 : index
    %784 = vector.load %arg12[%c0_174, %c128_175] : memref<64x256xf32, #tpu.memory_space<vmem>>, vector<8x128xf32>
    %785 = vector.extract_strided_slice %780 {offsets = [0, 128], sizes = [8, 128], strides = [1, 1]} : vector<8x256xf32> to vector<8x128xf32>
    %786 = arith.addf %784, %785 : vector<8x128xf32>
    %787 = arith.negf %783 : vector<8x128xf32>
    %788 = math.exp %787 : vector<8x128xf32>
    %cst_176 = arith.constant 1.000000e+00 : f32
    %789 = vector.broadcast %cst_176 : f32 to vector<8x128xf32>
    %790 = arith.addf %789, %788 : vector<8x128xf32>
    %791 = arith.divf %789, %790 : vector<8x128xf32>
    %792 = vector.extract_strided_slice %783 {offsets = [0, 64], sizes = [8, 32], strides = [1, 1]} : vector<8x128xf32> to vector<8x32xf32>
    %793 = math.tanh %792 : vector<8x32xf32>
    %794 = vector.extract_strided_slice %791 {offsets = [0, 0], sizes = [8, 32], strides = [1, 1]} : vector<8x128xf32> to vector<8x32xf32>
    %795 = vector.extract_strided_slice %791 {offsets = [0, 32], sizes = [8, 32], strides = [1, 1]} : vector<8x128xf32> to vector<8x32xf32>
    %796 = vector.extract_strided_slice %791 {offsets = [0, 96], sizes = [8, 32], strides = [1, 1]} : vector<8x128xf32> to vector<8x32xf32>
    %797 = arith.mulf %795, %776 : vector<8x32xf32>
    %798 = arith.mulf %794, %793 : vector<8x32xf32>
    %799 = arith.addf %797, %798 : vector<8x32xf32>
    %800 = math.tanh %799 : vector<8x32xf32>
    %801 = arith.mulf %796, %800 : vector<8x32xf32>
    %802 = arith.negf %786 : vector<8x128xf32>
    %803 = math.exp %802 : vector<8x128xf32>
    %cst_177 = arith.constant 1.000000e+00 : f32
    %804 = vector.broadcast %cst_177 : f32 to vector<8x128xf32>
    %805 = arith.addf %804, %803 : vector<8x128xf32>
    %806 = arith.divf %804, %805 : vector<8x128xf32>
    %807 = vector.extract_strided_slice %786 {offsets = [0, 64], sizes = [8, 32], strides = [1, 1]} : vector<8x128xf32> to vector<8x32xf32>
    %808 = math.tanh %807 : vector<8x32xf32>
    %809 = vector.extract_strided_slice %806 {offsets = [0, 0], sizes = [8, 32], strides = [1, 1]} : vector<8x128xf32> to vector<8x32xf32>
    %810 = vector.extract_strided_slice %806 {offsets = [0, 32], sizes = [8, 32], strides = [1, 1]} : vector<8x128xf32> to vector<8x32xf32>
    %811 = vector.extract_strided_slice %806 {offsets = [0, 96], sizes = [8, 32], strides = [1, 1]} : vector<8x128xf32> to vector<8x32xf32>
    %812 = arith.mulf %810, %778 : vector<8x32xf32>
    %813 = arith.mulf %809, %808 : vector<8x32xf32>
    %814 = arith.addf %812, %813 : vector<8x32xf32>
    %815 = math.tanh %814 : vector<8x32xf32>
    %816 = arith.mulf %811, %815 : vector<8x32xf32>
    %c7_i32_178 = arith.constant 7 : i32
    %817 = vector.broadcast %c7_i32_178 : i32 to vector<8x32xi32>
    %818 = arith.cmpi sgt, %2, %817 : vector<8x32xi32>
    %c0_i32_179 = arith.constant 0 : i32
    %819 = vector.broadcast %c0_i32_179 : i32 to vector<8x32xi32>
    %820 = arith.cmpi sgt, %2, %819 : vector<8x32xi32>
    %cst_180 = arith.constant 0.000000e+00 : f32
    %821 = vector.broadcast %cst_180 : f32 to vector<8x32xf32>
    %822 = arith.select %818, %801, %821 : vector<8x32xi1>, vector<8x32xf32>
    %cst_181 = arith.constant 0.000000e+00 : f32
    %823 = vector.broadcast %cst_181 : f32 to vector<8x32xf32>
    %824 = arith.select %820, %816, %823 : vector<8x32xi1>, vector<8x32xf32>
    %825 = arith.select %818, %801, %775 : vector<8x32xi1>, vector<8x32xf32>
    %826 = arith.select %818, %799, %776 : vector<8x32xi1>, vector<8x32xf32>
    %827 = arith.select %820, %816, %777 : vector<8x32xi1>, vector<8x32xf32>
    %828 = arith.select %820, %814, %778 : vector<8x32xi1>, vector<8x32xf32>
    %829 = tpu.concatenate %472, %824 in 1 : vector<8x32xf32>, vector<8x32xf32> -> vector<8x64xf32>
    %830 = tpu.concatenate %522, %774 in 1 : vector<8x32xf32>, vector<8x32xf32> -> vector<8x64xf32>
    %831 = tpu.concatenate %572, %724 in 1 : vector<8x32xf32>, vector<8x32xf32> -> vector<8x64xf32>
    %832 = tpu.concatenate %622, %674 in 1 : vector<8x32xf32>, vector<8x32xf32> -> vector<8x64xf32>
    %833 = tpu.concatenate %672, %624 in 1 : vector<8x32xf32>, vector<8x32xf32> -> vector<8x64xf32>
    %834 = tpu.concatenate %722, %574 in 1 : vector<8x32xf32>, vector<8x32xf32> -> vector<8x64xf32>
    %835 = tpu.concatenate %772, %524 in 1 : vector<8x32xf32>, vector<8x32xf32> -> vector<8x64xf32>
    %836 = tpu.concatenate %822, %474 in 1 : vector<8x32xf32>, vector<8x32xf32> -> vector<8x64xf32>
    %837 = tpu.concatenate %829, %830, %831, %832, %833, %834, %835, %836 in 0 : vector<8x64xf32>, vector<8x64xf32>, vector<8x64xf32>, vector<8x64xf32>, vector<8x64xf32>, vector<8x64xf32>, vector<8x64xf32>, vector<8x64xf32> -> vector<64x64xf32>
    %c0_182 = arith.constant 0 : index
    %c0_183 = arith.constant 0 : index
    %838 = vector.load %arg9[%c0_182, %c0_183] : memref<64x64xf32, #tpu.memory_space<vmem>>, vector<64x64xf32>
    tpu.vector_store %arg9[%c0_182, %c0_183], %837 {strides = array<i32>} : memref<64x64xf32, #tpu.memory_space<vmem>>, vector<64x64xf32>,
    %c0_184 = arith.constant 0 : index
    %c0_185 = arith.constant 0 : index
    %c0_186 = arith.constant 0 : index
    %839 = vector.load %arg10[%c0_184, %c0_185, %c0_186] : memref<4x8x32xf32, #tpu.memory_space<vmem>>, vector<1x8x32xf32>
    %840 = vector.shape_cast %839 : vector<1x8x32xf32> to vector<8x32xf32>
    %841 = vector.shape_cast %408 : vector<8x32xf32> to vector<1x8x32xf32>
    tpu.vector_store %arg10[%c0_184, %c0_185, %c0_186], %841 {strides = array<i32>} : memref<4x8x32xf32, #tpu.memory_space<vmem>>, vector<1x8x32xf32>,
    %c1 = arith.constant 1 : index
    %c0_187 = arith.constant 0 : index
    %c0_188 = arith.constant 0 : index
    %842 = vector.load %arg10[%c1, %c0_187, %c0_188] : memref<4x8x32xf32, #tpu.memory_space<vmem>>, vector<1x8x32xf32>
    %843 = vector.shape_cast %842 : vector<1x8x32xf32> to vector<8x32xf32>
    %844 = vector.shape_cast %410 : vector<8x32xf32> to vector<1x8x32xf32>
    tpu.vector_store %arg10[%c1, %c0_187, %c0_188], %844 {strides = array<i32>} : memref<4x8x32xf32, #tpu.memory_space<vmem>>, vector<1x8x32xf32>,
    %c2 = arith.constant 2 : index
    %c0_189 = arith.constant 0 : index
    %c0_190 = arith.constant 0 : index
    %845 = vector.load %arg10[%c2, %c0_189, %c0_190] : memref<4x8x32xf32, #tpu.memory_space<vmem>>, vector<1x8x32xf32>
    %846 = vector.shape_cast %845 : vector<1x8x32xf32> to vector<8x32xf32>
    %847 = vector.shape_cast %825 : vector<8x32xf32> to vector<1x8x32xf32>
    tpu.vector_store %arg10[%c2, %c0_189, %c0_190], %847 {strides = array<i32>} : memref<4x8x32xf32, #tpu.memory_space<vmem>>, vector<1x8x32xf32>,
    %c3 = arith.constant 3 : index
    %c0_191 = arith.constant 0 : index
    %c0_192 = arith.constant 0 : index
    %848 = vector.load %arg10[%c3, %c0_191, %c0_192] : memref<4x8x32xf32, #tpu.memory_space<vmem>>, vector<1x8x32xf32>
    %849 = vector.shape_cast %848 : vector<1x8x32xf32> to vector<8x32xf32>
    %850 = vector.shape_cast %827 : vector<8x32xf32> to vector<1x8x32xf32>
    tpu.vector_store %arg10[%c3, %c0_191, %c0_192], %850 {strides = array<i32>} : memref<4x8x32xf32, #tpu.memory_space<vmem>>, vector<1x8x32xf32>,
    %c0_193 = arith.constant 0 : index
    %c0_194 = arith.constant 0 : index
    %c0_195 = arith.constant 0 : index
    %851 = vector.load %arg11[%c0_193, %c0_194, %c0_195] : memref<4x8x32xf32, #tpu.memory_space<vmem>>, vector<1x8x32xf32>
    %852 = vector.shape_cast %851 : vector<1x8x32xf32> to vector<8x32xf32>
    %853 = vector.shape_cast %409 : vector<8x32xf32> to vector<1x8x32xf32>
    tpu.vector_store %arg11[%c0_193, %c0_194, %c0_195], %853 {strides = array<i32>} : memref<4x8x32xf32, #tpu.memory_space<vmem>>, vector<1x8x32xf32>,
    %c1_196 = arith.constant 1 : index
    %c0_197 = arith.constant 0 : index
    %c0_198 = arith.constant 0 : index
    %854 = vector.load %arg11[%c1_196, %c0_197, %c0_198] : memref<4x8x32xf32, #tpu.memory_space<vmem>>, vector<1x8x32xf32>
    %855 = vector.shape_cast %854 : vector<1x8x32xf32> to vector<8x32xf32>
    %856 = vector.shape_cast %411 : vector<8x32xf32> to vector<1x8x32xf32>
    tpu.vector_store %arg11[%c1_196, %c0_197, %c0_198], %856 {strides = array<i32>} : memref<4x8x32xf32, #tpu.memory_space<vmem>>, vector<1x8x32xf32>,
    %c2_199 = arith.constant 2 : index
    %c0_200 = arith.constant 0 : index
    %c0_201 = arith.constant 0 : index
    %857 = vector.load %arg11[%c2_199, %c0_200, %c0_201] : memref<4x8x32xf32, #tpu.memory_space<vmem>>, vector<1x8x32xf32>
    %858 = vector.shape_cast %857 : vector<1x8x32xf32> to vector<8x32xf32>
    %859 = vector.shape_cast %826 : vector<8x32xf32> to vector<1x8x32xf32>
    tpu.vector_store %arg11[%c2_199, %c0_200, %c0_201], %859 {strides = array<i32>} : memref<4x8x32xf32, #tpu.memory_space<vmem>>, vector<1x8x32xf32>,
    %c3_202 = arith.constant 3 : index
    %c0_203 = arith.constant 0 : index
    %c0_204 = arith.constant 0 : index
    %860 = vector.load %arg11[%c3_202, %c0_203, %c0_204] : memref<4x8x32xf32, #tpu.memory_space<vmem>>, vector<1x8x32xf32>
    %861 = vector.shape_cast %860 : vector<1x8x32xf32> to vector<8x32xf32>
    %862 = vector.shape_cast %828 : vector<8x32xf32> to vector<1x8x32xf32>
    tpu.vector_store %arg11[%c3_202, %c0_203, %c0_204], %862 {strides = array<i32>} : memref<4x8x32xf32, #tpu.memory_space<vmem>>, vector<1x8x32xf32>,
    return
  }
  func.func @transform_0(%arg0: i32) -> (i32, i32) {
    %c0_i32 = arith.constant 0 : i32
    %c0_i32_0 = arith.constant 0 : i32
    %c0_i32_1 = arith.constant 0 : i32
    return %c0_i32, %c0_i32_0 : i32, i32
  }
  func.func @transform_1(%arg0: i32) -> (i32, i32) {
    %c0_i32 = arith.constant 0 : i32
    %c0_i32_0 = arith.constant 0 : i32
    %c0_i32_1 = arith.constant 0 : i32
    return %c0_i32, %c0_i32_0 : i32, i32
  }
  func.func @transform_2(%arg0: i32) -> (i32, i32) {
    %c0_i32 = arith.constant 0 : i32
    %c0_i32_0 = arith.constant 0 : i32
    %c0_i32_1 = arith.constant 0 : i32
    return %c0_i32, %c0_i32_0 : i32, i32
  }
  func.func @transform_3(%arg0: i32) -> (i32, i32) {
    %c0_i32 = arith.constant 0 : i32
    %c0_i32_0 = arith.constant 0 : i32
    %c0_i32_1 = arith.constant 0 : i32
    return %c0_i32, %c0_i32_0 : i32, i32
  }
  func.func @transform_4(%arg0: i32) -> (i32, i32) {
    %c0_i32 = arith.constant 0 : i32
    %c0_i32_0 = arith.constant 0 : i32
    %c0_i32_1 = arith.constant 0 : i32
    return %c0_i32, %c0_i32_0 : i32, i32
  }
  func.func @transform_5(%arg0: i32) -> (i32, i32) {
    %c0_i32 = arith.constant 0 : i32
    %c0_i32_0 = arith.constant 0 : i32
    %c0_i32_1 = arith.constant 0 : i32
    return %c0_i32, %c0_i32_0 : i32, i32
  }
  func.func @transform_6(%arg0: i32) -> (i32, i32) {
    %c0_i32 = arith.constant 0 : i32
    %c0_i32_0 = arith.constant 0 : i32
    %c0_i32_1 = arith.constant 0 : i32
    return %c0_i32, %c0_i32_0 : i32, i32
  }
  func.func @transform_7(%arg0: i32) -> (i32, i32) {
    %c0_i32 = arith.constant 0 : i32
    %c0_i32_0 = arith.constant 0 : i32
    %c0_i32_1 = arith.constant 0 : i32
    return %c0_i32, %c0_i32_0 : i32, i32
  }
  func.func @transform_8(%arg0: i32) -> (i32, i32) {
    %c0_i32 = arith.constant 0 : i32
    %c0_i32_0 = arith.constant 0 : i32
    %c0_i32_1 = arith.constant 0 : i32
    return %c0_i32, %c0_i32_0 : i32, i32
  }
  func.func @transform_9(%arg0: i32) -> (i32, i32, i32) {
    %c0_i32 = arith.constant 0 : i32
    %c0_i32_0 = arith.constant 0 : i32
    %c0_i32_1 = arith.constant 0 : i32
    %c0_i32_2 = arith.constant 0 : i32
    return %c0_i32, %c0_i32_0, %c0_i32_1 : i32, i32, i32
  }
  func.func @transform_10(%arg0: i32) -> (i32, i32, i32) {
    %c0_i32 = arith.constant 0 : i32
    %c0_i32_0 = arith.constant 0 : i32
    %c0_i32_1 = arith.constant 0 : i32
    %c0_i32_2 = arith.constant 0 : i32
    return %c0_i32, %c0_i32_0, %c0_i32_1 : i32, i32, i32
  }
}

</mosaic_0001>

<bundles_post_ra>
// kernel: encoder_forward.1
= control target key start
LH: loop header
LB: loop body
LE: loop exit
PB: predicated region body
PF: predicated region fallthrough
CT: control target
= control target key end

     0   :  { %16 = vsyncpa [#allocation4], 0  ;;  %s4705_s0 = inlined_call_operand.vmem [shape: f32[64,16], index: 0, kind: input, shape index: {}]   ;;  %s4706_s1 = inlined_call_operand.vmem [shape: s32[8,1], index: 1, kind: input, shape index: {}]   ;;  %s4707_s2 = inlined_call_operand.vmem [shape: f32[16,256], index: 2, kind: input, shape index: {}]   ;;  %s4708_s3 = inlined_call_operand.vmem [shape: f32[1,256], index: 3, kind: input, shape index: {}]   ;;  %s4709_s4 = inlined_call_operand.hbm [shape: f32[64,256], index: 4, kind: input, shape index: {}]   ;;  %s4710_s5 = inlined_call_operand.hbm [shape: f32[64,256], index: 5, kind: input, shape index: {}]   ;;  %s4711_s6 = inlined_call_operand.vmem [shape: f32[1,256], index: 6, kind: input, shape index: {}]   ;;  %s4712_s7 = inlined_call_operand.vmem [shape: f32[64,256], index: 7, kind: input, shape index: {}]   ;;  %s4713_s8 = inlined_call_operand.vmem [shape: f32[64,64], index: 8, kind: output, shape index: {0}]   ;;  %s4714_s9 = inlined_call_operand.vmem [shape: f32[4,8,32], index: 9, kind: output, shape index: {1}]   ;;  %s4715_s10 = inlined_call_operand.vmem [shape: f32[4,8,32], index: 10, kind: output, shape index: {2}]  }
   0x1   :  { %s30_s15 = sshll.u32 %s4709_s4, 4  ;;  %s31_s15 = int_to_ptr.hbm [resolvable:$true] %s30_s15 }
   0x2   :  { %17 = vsyncpa [#allocation6], 0  ;;  %s3158_s16 = smov [#allocation3]   ;;  %s43_s20 = sshll.u32 %s4710_s5, 4  ;;  %s44_s20 = int_to_ptr.hbm [resolvable:$true] %s43_s20 }
   0x3   :  { %s32_s17 = sshll.u32 %s3158_s16, 4  ;;  %s3159_s21 = smov 256   ;;  %s33_s17 = int_to_ptr.vmem [resolvable:$true] %s32_s17 }
   0x4   :  { %s3160_s22 = smov 16   ;;  %s3161_s23 = smov [#allocation5]  }
   0x5   :  { %38 = dma.hbm_to_vmem [thread:$0]  %s31_s15, 2048, %s33_s17, [#allocation4], %s3159_s21, %s3159_s21, %s3160_s22  }
   0x6   :  { %s45_s24 = sshll.u32 %s3161_s23, 4  ;;  %s46_s24 = int_to_ptr.vmem [resolvable:$true] %s45_s24 }
   0x7   :  { %51 = dma.hbm_to_vmem [thread:$0]  %s44_s20, 2048, %s46_s24, [#allocation6], %s3159_s21, %s3159_s21, %s3160_s22  }
   0x8   :  { %3154 = dma.done.wait [#allocation4], 2048  }
   0x9   :  { %3155 = vsyncadd [#allocation4], 4294965248 }
   0xa   :  { %3156 = dma.done.wait [#allocation6], 2048  }
   0xb   :  { %3157 = vsyncadd [#allocation6], 4294965248  ;;  %v79_v0 = vld [vmem:[%s4707_s2 + $0x18] sm:$0xff]  ;;  %v3231_v1 = vld [vmem:[#allocation3 + $0x70] sm:$0xff]  ;;  %vm86_vm0 = vcmask 130048   ;;  %v3162_v19 = vmov 0.0  }
   0xc   :  { %v77_v2 = vld [vmem:[%s4707_s2 + $0x8] sm:$0xff]  ;;  %166 = vmatpush.msra.mxu1 %v79_v0  ;;  %237 = vmatpush.msra.mxu2 %v3231_v1  ;;  %v3237_v3 = vld [vmem:[#allocation3 + $0x60] sm:$0xff]  ;;  %v3242_v5 = vld [vmem:[#allocation3 + $0x50] sm:$0xff]  ;;  %v3164_v59 = vmov 0   ;;  %vm361_vm11 = vcmask 261120   ;;  %vm225_vm12 = vcmask 523264  }
   0xd   :  { %v68_v4 = vld [vmem:[%s4705_s0] sm:$0xff]  ;;  %v78_v7 = vld [vmem:[%s4707_s2 + $0x10] sm:$0xff]  ;;  %v3255_v9 = vld [vmem:[#allocation3 + $0x78] sm:$0xff]  ;;  %2849 = vset.pattern.permute.xlu0 %v3164_v59 }
   0xe   :  { %167 = vmatpush.msra.mxu1 %v77_v2  ;;  %238 = vmatpush.msra.mxu2 %v3237_v3  ;;  %v3246_v6 = vld [vmem:[#allocation3 + $0x40] sm:$0xff]  ;;  %v3257_v10 = vld [vmem:[#allocation3 + $0x30] sm:$0xff]  ;;  %v3260_v11 = vld [vmem:[#allocation3 + $0x68] sm:$0xff] }
   0xf   :  { %2750 = vmatmul.msk.f32.vlgmr.msra.gmra.mxu1 %vm86_vm0, %v68_v4  ;;  %v76_v8 = vld [vmem:[%s4707_s2] sm:$0xff]  ;;  %125 = vmatpush.msra.mxu0 %v78_v7  ;;  %v69_v13 = vld [vmem:[%s4705_s0 + $0x8] sm:$0xff]  ;;  %v3273_v14 = vld [vmem:[#allocation3 + $0x10] sm:$0xff] }
  0x10   :  { %239 = vmatpush.msra.mxu2 %v3242_v5  ;;  %257 = vmatpush.msra.mxu3 %v3255_v9  ;;  %v3264_v12 = vld [vmem:[#allocation3 + $0x20] sm:$0xff]  ;;  %v3281_v16 = vld [vmem:[#allocation3 + $0x58] sm:$0xff]  ;;  %v3283_v17 = vld [vmem:[#allocation3 + $0x48] sm:$0xff] }
  0x11   :  { %808 = vmatpush.msrb.mxu1 %v3255_v9  ;;  %126 = vmatpush.msra.mxu0 %v76_v8  ;;  %v3279_v15 = vld [vmem:[#allocation3] sm:$0xff]  ;;  %v3287_v18 = vld [vmem:[#allocation3 + $0x38] sm:$0xff]  ;;  %v3294_v20 = vld [vmem:[#allocation3 + $0x28] sm:$0xff] }
  0x12   :  { %240 = vmatpush.msra.mxu2 %v3246_v6  ;;  %2742 = vmatmul.msk.f32.vlgmr.msra.gmra.mxu0 %vm86_vm0, %v68_v4  ;;  %v70_v21 = vld [vmem:[%s4705_s0 + $0x10] sm:$0xff]  ;;  %v3307_v22 = vld [vmem:[#allocation3 + $0x18] sm:$0xff]  ;;  %v3309_v23 = vld [vmem:[#allocation3 + $0x8] sm:$0xff] }
  0x13   :  { %258 = vmatpush.msra.mxu3 %v3260_v11  ;;  %788 = vmatpush.msrb.mxu0 %v3231_v1  ;;  %v71_v24 = vld [vmem:[%s4705_s0 + $0x18] sm:$0xff]  ;;  %v72_v25 = vld [vmem:[%s4705_s0 + $0x20] sm:$0xff]  ;;  %v73_v26 = vld [vmem:[%s4705_s0 + $0x28] sm:$0xff] }
  0x14   :  { %241 = vmatpush.msra.mxu2 %v3257_v10  ;;  %809 = vmatpush.msrb.mxu1 %v3260_v11  ;;  %v74_v27 = vld [vmem:[%s4705_s0 + $0x30] sm:$0xff]  ;;  %v75_v28 = vld [vmem:[%s4705_s0 + $0x38] sm:$0xff]  ;;  %v80_v29 = vld [vmem:[%s4708_s3] sm:$0x3]  ;;  %s3163_s0 = smov 64  }
  0x15   :  { %789 = vmatpush.msrb.mxu0 %v3237_v3  ;;  %259 = vmatpush.msra.mxu3 %v3281_v16  ;;  %v83_v30 = vperm.slane %v80_v29, 1  ;;  %v3401_v35 = vperm.slane %v80_v29, 0  ;;  %v64_v60 = vld [vmem:[%s4706_s1] sm:$0xff]  ;;  %s3165_s1 = smov 32  }
  0x16   :  { %242 = vmatpush.msra.mxu2 %v3264_v12  ;;  %810 = vmatpush.msrb.mxu1 %v3281_v16 }
  0x17   :  { %2751 = vmatmul.msk.f32.gmra.mxu1 %vm86_vm0, %v69_v13  ;;  %790 = vmatpush.msrb.mxu0 %v3242_v5 }
  0x18   :  { %243 = vmatpush.msra.mxu2 %v3273_v14  ;;  %260 = vmatpush.msra.mxu3 %v3283_v17 }
  0x19   :  { %791 = vmatpush.msrb.mxu0 %v3246_v6  ;;  %811 = vmatpush.msrb.mxu1 %v3283_v17 }
  0x1a   :  { %244 = vmatpush.msra.mxu2 %v3279_v15  ;;  %2743 = vmatmul.msk.f32.gmra.mxu0 %vm86_vm0, %v69_v13 }
  0x1b   :  { %245 = vmatmul.f32.vlgmr.msra.gmra.mxu2 %v3162_v19  ;;  %261 = vmatpush.msra.mxu3 %v3287_v18 }
  0x1c   :  { %374 = vmatpush.msrb.mxu2 %v3231_v1  ;;  %792 = vmatpush.msrb.mxu0 %v3257_v10 }
  0x1d   :  { %262 = vmatpush.msra.mxu3 %v3294_v20  ;;  %812 = vmatpush.msrb.mxu1 %v3287_v18 }
  0x1e   :  { %375 = vmatpush.msrb.mxu2 %v3237_v3  ;;  %793 = vmatpush.msrb.mxu0 %v3264_v12 }
  0x1f   :  { %2752 = vmatmul.msk.f32.gmra.mxu1 %vm86_vm0, %v70_v21  ;;  %263 = vmatpush.msra.mxu3 %v3307_v22 }
  0x20   :  { %376 = vmatpush.msrb.mxu2 %v3242_v5  ;;  %794 = vmatpush.msrb.mxu0 %v3273_v14 }
  0x21   :  { %264 = vmatpush.msra.mxu3 %v3309_v23  ;;  %813 = vmatpush.msrb.mxu1 %v3294_v20 }
  0x22   :  { %377 = vmatpush.msrb.mxu2 %v3246_v6  ;;  %265 = vmatmul.f32.vlgmr.msra.gmra.mxu3 %v3162_v19 }
  0x23   :  { %2744 = vmatmul.msk.f32.gmra.mxu0 %vm86_vm0, %v70_v21  ;;  %394 = vmatpush.msrb.mxu3 %v3255_v9 }
  0x24   :  { %378 = vmatpush.msrb.mxu2 %v3257_v10  ;;  %795 = vmatpush.msrb.mxu0 %v3279_v15 }
  0x25   :  { %395 = vmatpush.msrb.mxu3 %v3260_v11  ;;  %814 = vmatpush.msrb.mxu1 %v3307_v22 }
  0x26   :  { %379 = vmatpush.msrb.mxu2 %v3264_v12  ;;  %1060 = vmatpush.msra.mxu0 %v3231_v1 }
  0x27   :  { %2753 = vmatmul.msk.f32.gmra.mxu1 %vm86_vm0, %v71_v24  ;;  %396 = vmatpush.msrb.mxu3 %v3281_v16 }
  0x28   :  { %380 = vmatpush.msrb.mxu2 %v3273_v14  ;;  %815 = vmatpush.msrb.mxu1 %v3309_v23 }
  0x29   :  { %397 = vmatpush.msrb.mxu3 %v3283_v17  ;;  %1061 = vmatpush.msra.mxu0 %v3237_v3 }
  0x2a   :  { %381 = vmatpush.msrb.mxu2 %v3279_v15  ;;  %1080 = vmatpush.msra.mxu1 %v3255_v9 }
  0x2b   :  { %2745 = vmatmul.msk.f32.gmra.mxu0 %vm86_vm0, %v71_v24  ;;  %398 = vmatpush.msrb.mxu3 %v3287_v18 }
  0x2c   :  { %512 = vmatpush.msra.mxu2 %v3231_v1  ;;  %1081 = vmatpush.msra.mxu1 %v3260_v11 }
  0x2d   :  { %399 = vmatpush.msrb.mxu3 %v3294_v20  ;;  %1062 = vmatpush.msra.mxu0 %v3242_v5 }
  0x2e   :  { %513 = vmatpush.msra.mxu2 %v3237_v3  ;;  %1082 = vmatpush.msra.mxu1 %v3281_v16 }
  0x2f   :  { %2754 = vmatmul.msk.f32.gmra.mxu1 %vm86_vm0, %v72_v25  ;;  %400 = vmatpush.msrb.mxu3 %v3307_v22 }
  0x30   :  { %514 = vmatpush.msra.mxu2 %v3242_v5  ;;  %1083 = vmatpush.msra.mxu1 %v3283_v17 }
  0x31   :  { %401 = vmatpush.msrb.mxu3 %v3309_v23  ;;  %1063 = vmatpush.msra.mxu0 %v3246_v6 }
  0x32   :  { %515 = vmatpush.msra.mxu2 %v3246_v6  ;;  %1084 = vmatpush.msra.mxu1 %v3287_v18 }
  0x33   :  { %532 = vmatpush.msra.mxu3 %v3255_v9  ;;  %2746 = vmatmul.msk.f32.gmra.mxu0 %vm86_vm0, %v72_v25 }
  0x34   :  { %516 = vmatpush.msra.mxu2 %v3257_v10  ;;  %1064 = vmatpush.msra.mxu0 %v3257_v10 }
  0x35   :  { %533 = vmatpush.msra.mxu3 %v3260_v11  ;;  %1085 = vmatpush.msra.mxu1 %v3294_v20 }
  0x36   :  { %517 = vmatpush.msra.mxu2 %v3264_v12  ;;  %1065 = vmatpush.msra.mxu0 %v3264_v12 }
  0x37   :  { %2755 = vmatmul.msk.f32.gmra.mxu1 %vm86_vm0, %v73_v26  ;;  %534 = vmatpush.msra.mxu3 %v3281_v16 }
  0x38   :  { %518 = vmatpush.msra.mxu2 %v3273_v14  ;;  %1086 = vmatpush.msra.mxu1 %v3307_v22 }
  0x39   :  { %535 = vmatpush.msra.mxu3 %v3283_v17  ;;  %1066 = vmatpush.msra.mxu0 %v3273_v14 }
  0x3a   :  { %519 = vmatpush.msra.mxu2 %v3279_v15  ;;  %1087 = vmatpush.msra.mxu1 %v3309_v23 }
  0x3b   :  { %536 = vmatpush.msra.mxu3 %v3287_v18  ;;  %2747 = vmatmul.msk.f32.gmra.mxu0 %vm86_vm0, %v73_v26 }
  0x3c   :  { %1067 = vmatpush.msra.mxu0 %v3279_v15 }
  0x3d   :  { %537 = vmatpush.msra.mxu3 %v3294_v20 }
  0x3f   :  { %2756 = vmatmul.msk.f32.gmra.mxu1 %vm86_vm0, %v74_v27  ;;  %538 = vmatpush.msra.mxu3 %v3307_v22 }
  0x41   :  { %539 = vmatpush.msra.mxu3 %v3309_v23 }
  0x43   :  { %2748 = vmatmul.msk.f32.gmra.mxu0 %vm86_vm0, %v74_v27 }
  0x47   :  { %2757 = vmatmul.msk.f32.gmra.mxu1 %vm86_vm0, %v75_v28 }
  0x4b   :  { %2749 = vmatmul.msk.f32.gmra.mxu0 %vm86_vm0, %v75_v28 }
  0x8c   :  { %v169_v31 = vpop.f32.mrf.mxu1 }
  0x8d   :  { %v3397_v32 = vadd.f32 %v169_v31, %v83_v30 }
  0x8f   :  { %v128_v36 = vpop.f32.mrf.mxu0 }
  0x90   :  { %v129_v37 = vadd.f32 %v128_v36, %v3401_v35 }
  0x94   :  { %v172_v33 = vpop.f32.mrf.mxu1 }
  0x95   :  { %v3399_v34 = vadd.f32 %v172_v33, %v83_v30 }
  0x9c   :  { %v175_v38 = vpop.f32.mrf.mxu1 }
  0x9d   :  { %v3404_v39 = vadd.f32 %v175_v38, %v83_v30 }
  0x9e   :  { %v246_v40 = vpop.f32.mrf.mxu2 }
  0x9f   :  { %v270_v41 = vadd.f32 %v246_v40, %v129_v37 }
  0xa1   :  { %2850 = vtanh.f32 %v270_v41  ;;  %v2758_v56 = vmul.f32 -1.442695, %v270_v41 }
  0xa4   :  { %v178_v42 = vpop.f32.mrf.mxu1 }
  0xa5   :  { %v3406_v43 = vadd.f32 %v178_v42, %v83_v30  ;;  %v266_v52 = vpop.f32.mrf.mxu3 }
  0xa7   :  { %v2851_v44 = vpop.eup %2850 }
  0xa8   :  { %295 = vrot.lane.b32.xlu0 %v2851_v44, %s3163_s0 }
  0xac   :  { %v181_v45 = vpop.f32.mrf.mxu1 }
  0xad   :  { %v3409_v46 = vadd.f32 %v181_v45, %v83_v30 }
  0xb4   :  { %v184_v47 = vpop.f32.mrf.mxu1 }
  0xb5   :  { %v3411_v48 = vadd.f32 %v184_v47, %v83_v30 }
  0xbc   :  { %v187_v49 = vpop.f32.mrf.mxu1 }
  0xbd   :  { %v3413_v50 = vadd.f32 %v187_v49, %v83_v30 }
  0xc4   :  { %v190_v51 = vpop.f32.mrf.mxu1 }
  0xc5   :  { %v191_v53 = vadd.f32 %v190_v51, %v83_v30 }
  0xc7   :  { %v272_v54 = vadd.f32 %v266_v52, %v191_v53 }
  0xc9   :  { %2852 = vtanh.f32 %v272_v54  ;;  %v2759_v8 = vmul.f32 -1.442695, %v272_v54 }
  0xca   :  { %2854 = vpow2.f32 %v2758_v56 }
  0xcf   :  { %v2853_v55 = vpop.eup %2852 }
  0xd0   :  { %332 = vrot.lane.b32.xlu0 %v2853_v55, %s3163_s0  ;;  %v2855_v57 = vpop.eup %2854 }
  0xd1   :  { %v276_v58 = vadd.f32 1.0, %v2855_v57 }
  0xd3   :  { %2856 = vrcp.f32 %v276_v58  ;;  %vm282_vm1 = vweird.f32 %v276_v58  ;;  %v288_v2 = vand.u32 2147483648, %v276_v58  ;;  %v286_v7 = vand.u32 2147483647, %v276_v58 }
  0xd4   :  { %2858 = vpow2.f32 %v2759_v8 }
  0xd5   :  { %v289_v13 = vor.u32 1.1754944e-38, %v288_v2  ;;  %vm287_vm4 = vcmp.eq.f32.partialorder %v286_v7, 8.507059e+37  ;;  %v131_v7 = vpop.f32.mrf.mxu0 }
  0xd6   :  { %v132_v8 = vadd.f32 %v131_v7, %v3401_v35 }
  0xd8   :  { %66 = vperm.xlu0 %2849, %v64_v60  }
  0xd9   :  { %v2857_v61 = vpop.eup %2856 }
  0xda   :  { %v278_v62 = vmul.f32 %v2857_v61, %v276_v58  ;;  %vm283_vm2 = vweird.f32 %v2857_v61  ;;  %v2859_v27 = vpop.eup %2858 }
  0xdb   :  { %vm284_vm3 = vmor %vm282_vm1, %vm283_vm2  ;;  %v313_v28 = vadd.f32 1.0, %v2859_v27 }
  0xdc   :  { %v279_v63 = vsub.f32 1.0, %v278_v62 }
  0xdd   :  { %2860 = vrcp.f32 %v313_v28  ;;  %v325_v37 = vand.u32 2147483648, %v313_v28  ;;  %vm319_vm6 = vweird.f32 %v313_v28  ;;  %v323_v38 = vand.u32 2147483647, %v313_v28 }
  0xde   :  { %v280_v0 = vmul.f32 %v2857_v61, %v279_v63 }
  0xdf   :  { %v326_v41 = vor.u32 1.1754944e-38, %v325_v37  ;;  %vm324_vm8 = vcmp.eq.f32.partialorder %v323_v38, 8.507059e+37 }
  0xe0   :  { %v281_v4 = vadd.f32 %v2857_v61, %v280_v0 }
  0xe2   :  { %v285_v21 = vsel %vm284_vm3, %v2857_v61, %v281_v4 }
  0xe3   :  { %v290_v25 = vsel %vm287_vm4, %v289_v13, %v285_v21  ;;  %v2861_v29 = vpop.eup %2860 }
  0xe4   :  { %v315_v30 = vmul.f32 %v2861_v29, %v313_v28  ;;  %vm320_vm5 = vweird.f32 %v2861_v29  ;;  %v293_v47 = vmul.f32 0.0, %v290_v25 }
  0xe5   :  { %vm321_vm7 = vmor %vm319_vm6, %vm320_vm5 }
  0xe6   :  { %v316_v31 = vsub.f32 1.0, %v315_v30 }
  0xe8   :  { %v317_v33 = vmul.f32 %v2861_v29, %v316_v31 }
  0xea   :  { %v318_v36 = vadd.f32 %v2861_v29, %v317_v33 }
  0xec   :  { %v322_v40 = vsel %vm321_vm7, %v2861_v29, %v318_v36 }
  0xed   :  { %v327_v42 = vsel %vm324_vm8, %v326_v41, %v322_v40 }
  0xee   :  { %v330_v53 = vmul.f32 0.0, %v327_v42 }
 0x11a   :  { %v296_v24 = vpop.permute.xlu0 %295 }
 0x11b   :  { %v298_v26 = vmul.f32 %v296_v24, %v290_v25 }
 0x11d   :  { %300 = vrot.lane.b32.xlu1 %v298_v26, %s3165_s1 }
 0x142   :  { %v333_v44 = vpop.permute.xlu0 %332 }
 0x143   :  { %v335_v45 = vmul.f32 %v333_v44, %v327_v42 }
 0x145   :  { %337 = vrot.lane.b32.xlu1 %v335_v45, %s3165_s1 }
 0x14a   :  { %v3429_v57 = vpop.permute.xlu0 %66 }
 0x14b   :  { %vm4717_vm9 = vcmp.gt.s32.totalorder %v3429_v57, 0  ;;  %vm4716_vm10 = vcmp.gt.s32.totalorder %v3429_v57, 7  ;;  %vm484_vm5 = vcmp.gt.s32.totalorder %v3429_v57, 1  ;;  %vm485_vm6 = vcmp.gt.s32.totalorder %v3429_v57, 6 }
 0x18f   :  { %v301_v49 = vpop.permute.xlu1 %300 }
 0x190   :  { %v3421_v51 = vadd.f32 %v301_v49, %v293_v47 }
 0x192   :  { %2862 = vtanh.f32 %v3421_v51 }
 0x198   :  { %v2863_v52 = vpop.eup %2862 }
 0x199   :  { %306 = vrot.lane.b32.xlu2 %v2863_v52, %s3163_s0 }
 0x1b7   :  { %v338_v54 = vpop.permute.xlu1 %337 }
 0x1b8   :  { %v3425_v55 = vadd.f32 %v338_v54, %v330_v53 }
 0x1ba   :  { %2864 = vtanh.f32 %v3425_v55 }
 0x1c0   :  { %v2865_v56 = vpop.eup %2864 }
 0x1c1   :  { %343 = vrot.lane.b32.xlu2 %v2865_v56, %s3163_s0 }
 0x1f3   :  { %v307_v58 = vpop.permute.xlu2 %306 }
 0x1f4   :  { %v309_v59 = vmul.f32 %v307_v58, %v290_v25 }
 0x1f6   :  { %v3434_v60 = vsel %vm4717_vm9, %v309_v59, 0.0 }
 0x1f7   :  { %354 = vrot.lane.b32.xlu1 %v3434_v60, %s3165_s1 }
 0x21b   :  { %v344_v61 = vpop.permute.xlu2 %343 }
 0x21c   :  { %v346_v62 = vmul.f32 %v344_v61, %v327_v42 }
 0x21e   :  { %v3441_v63 = vsel %vm4716_vm10, %v346_v62, 0.0 }
 0x21f   :  { %358 = vrot.lane.b32.xlu2 %v3441_v63, %s3163_s0 }
 0x269   :  { %v3445_v0 = vpop.permute.xlu1 %354 }
 0x279   :  { %v3447_v2 = vpop.permute.xlu2 %358 }
 0x27a   :  { %v362_v4 = vsel %vm361_vm11, %v3445_v0, %v3447_v2 }
 0x27b   :  { %2760 = vmatmul.msk.f32.vlgmr.msrb.gmra.mxu2 %vm225_vm12, %v362_v4  ;;  %2761 = vmatmul.msk.f32.vlgmr.msrb.gmra.mxu3 %vm225_vm12, %v362_v4 }
 0x27c   :  { %650 = vmatpush.msrb.mxu2 %v3231_v1  ;;  %670 = vmatpush.msrb.mxu3 %v3255_v9 }
 0x27e   :  { %651 = vmatpush.msrb.mxu2 %v3237_v3  ;;  %671 = vmatpush.msrb.mxu3 %v3260_v11 }
 0x280   :  { %652 = vmatpush.msrb.mxu2 %v3242_v5  ;;  %672 = vmatpush.msrb.mxu3 %v3281_v16 }
 0x282   :  { %653 = vmatpush.msrb.mxu2 %v3246_v6  ;;  %673 = vmatpush.msrb.mxu3 %v3283_v17 }
 0x284   :  { %654 = vmatpush.msrb.mxu2 %v3257_v10  ;;  %674 = vmatpush.msrb.mxu3 %v3287_v18 }
 0x286   :  { %655 = vmatpush.msrb.mxu2 %v3264_v12  ;;  %675 = vmatpush.msrb.mxu3 %v3294_v20 }
 0x288   :  { %656 = vmatpush.msrb.mxu2 %v3273_v14  ;;  %676 = vmatpush.msrb.mxu3 %v3307_v22 }
 0x28a   :  { %657 = vmatpush.msrb.mxu2 %v3279_v15  ;;  %677 = vmatpush.msrb.mxu3 %v3309_v23 }
 0x2fe   :  { %v383_v13 = vpop.f32.mrf.mxu2  ;;  %v403_v21 = vpop.f32.mrf.mxu3 }
 0x2ff   :  { %v407_v24 = vadd.f32 %v383_v13, %v132_v8  ;;  %v409_v25 = vadd.f32 %v403_v21, %v3413_v50 }
 0x301   :  { %2866 = vtanh.f32 %v407_v24  ;;  %v2763_v28 = vmul.f32 -1.442695, %v409_v25  ;;  %v2762_v33 = vmul.f32 -1.442695, %v407_v24 }
 0x302   :  { %2868 = vtanh.f32 %v409_v25  ;;  %v3479_v25 = vsel %vm4716_vm10, %v3425_v55, 0.0 }
 0x303   :  { %2870 = vpow2.f32 %v2763_v28 }
 0x307   :  { %v2867_v26 = vpop.eup %2866 }
 0x308   :  { %v2869_v27 = vpop.eup %2868  ;;  %432 = vrot.lane.b32.xlu1 %v2867_v26, %s3163_s0 }
 0x309   :  { %469 = vrot.lane.b32.xlu2 %v2869_v27, %s3163_s0  ;;  %v2871_v29 = vpop.eup %2870 }
 0x30a   :  { %v450_v30 = vadd.f32 1.0, %v2871_v29 }
 0x30c   :  { %2872 = vrcp.f32 %v450_v30  ;;  %v462_v42 = vand.u32 2147483648, %v450_v30  ;;  %vm456_vm14 = vweird.f32 %v450_v30  ;;  %v460_v44 = vand.u32 2147483647, %v450_v30 }
 0x30d   :  { %2874 = vpow2.f32 %v2762_v33 }
 0x30e   :  { %v463_v47 = vor.u32 1.1754944e-38, %v462_v42  ;;  %vm461_vm0 = vcmp.eq.f32.partialorder %v460_v44, 8.507059e+37 }
 0x312   :  { %v2873_v31 = vpop.eup %2872 }
 0x313   :  { %v452_v36 = vmul.f32 %v2873_v31, %v450_v30  ;;  %v2875_v38 = vpop.eup %2874  ;;  %vm457_vm13 = vweird.f32 %v2873_v31  ;;  %v3489_v30 = vsel %vm4717_vm9, %v3421_v51, 0.0 }
 0x314   :  { %v413_v40 = vadd.f32 1.0, %v2875_v38  ;;  %vm458_vm15 = vmor %vm456_vm14, %vm457_vm13 }
 0x315   :  { %v453_v37 = vsub.f32 1.0, %v452_v36 }
 0x316   :  { %2876 = vrcp.f32 %v413_v40  ;;  %v425_v62 = vand.u32 2147483648, %v413_v40  ;;  %vm419_vm2 = vweird.f32 %v413_v40  ;;  %v423_v4 = vand.u32 2147483647, %v413_v40 }
 0x317   :  { %v454_v50 = vmul.f32 %v2873_v31, %v453_v37 }
 0x318   :  { %v426_v8 = vor.u32 1.1754944e-38, %v425_v62  ;;  %vm424_vm4 = vcmp.eq.f32.partialorder %v423_v4, 8.507059e+37 }
 0x319   :  { %v455_v41 = vadd.f32 %v2873_v31, %v454_v50 }
 0x31b   :  { %v459_v45 = vsel %vm458_vm15, %v2873_v31, %v455_v41 }
 0x31c   :  { %v464_v52 = vsel %vm461_vm0, %v463_v47, %v459_v45  ;;  %v2877_v53 = vpop.eup %2876 }
 0x31d   :  { %v415_v56 = vmul.f32 %v2877_v53, %v413_v40  ;;  %vm420_vm1 = vweird.f32 %v2877_v53  ;;  %v467_v26 = vmul.f32 %v464_v52, %v3479_v25 }
 0x31e   :  { %vm421_vm3 = vmor %vm419_vm2, %vm420_vm1 }
 0x31f   :  { %v416_v58 = vsub.f32 1.0, %v415_v56 }
 0x321   :  { %v417_v59 = vmul.f32 %v2877_v53, %v416_v58 }
 0x323   :  { %v418_v61 = vadd.f32 %v2877_v53, %v417_v59 }
 0x325   :  { %v422_v7 = vsel %vm421_vm3, %v2877_v53, %v418_v61  ;;  %vm622_vm3 = vcmp.gt.s32.totalorder %v3429_v57, 2 }
 0x326   :  { %v427_v21 = vsel %vm424_vm4, %v426_v8, %v422_v7  ;;  %vm623_vm4 = vcmp.gt.s32.totalorder %v3429_v57, 5 }
 0x327   :  { %v430_v31 = vmul.f32 %v427_v21, %v3489_v30 }
 0x363   :  { %v470_v49 = vpop.permute.xlu2 %469 }
 0x364   :  { %v472_v54 = vmul.f32 %v470_v49, %v464_v52 }
 0x366   :  { %474 = vrot.lane.b32.xlu1 %v472_v54, %s3165_s1 }
 0x37a   :  { %v433_v13 = vpop.permute.xlu1 %432 }
 0x37b   :  { %v435_v24 = vmul.f32 %v433_v13, %v427_v21 }
 0x37d   :  { %437 = vrot.lane.b32.xlu0 %v435_v24, %s3165_s1 }
 0x3d8   :  { %v475_v27 = vpop.permute.xlu1 %474 }
 0x3d9   :  { %v3482_v28 = vadd.f32 %v475_v27, %v467_v26 }
 0x3db   :  { %2878 = vtanh.f32 %v3482_v28 }
 0x3e1   :  { %v2879_v29 = vpop.eup %2878 }
 0x3e2   :  { %480 = vrot.lane.b32.xlu0 %v2879_v29, %s3163_s0 }
 0x3ef   :  { %v438_v33 = vpop.permute.xlu0 %437 }
 0x3f0   :  { %v3492_v55 = vadd.f32 %v438_v33, %v430_v31 }
 0x3f2   :  { %2880 = vtanh.f32 %v3492_v55 }
 0x3f8   :  { %v2881_v36 = vpop.eup %2880 }
 0x3f9   :  { %443 = vrot.lane.b32.xlu2 %v2881_v36, %s3163_s0 }
 0x453   :  { %v444_v37 = vpop.permute.xlu2 %443 }
 0x454   :  { %v481_v38 = vpop.permute.xlu0 %480  ;;  %v3496_v50 = vmul.f32 %v444_v37, %v427_v21 }
 0x455   :  { %v3499_v40 = vmul.f32 %v481_v38, %v464_v52 }
 0x456   :  { %v3506_v51 = vsel %vm484_vm5, %v3496_v50, %v3434_v60  ;;  %v134_v60 = vpop.f32.mrf.mxu0 }
 0x457   :  { %v3512_v41 = vsel %vm485_vm6, %v3499_v40, %v3441_v63  ;;  %493 = vrot.lane.b32.xlu1 %v3506_v51, %s3165_s1  ;;  %v135_v63 = vadd.f32 %v134_v60, %v3401_v35 }
 0x458   :  { %497 = vrot.lane.b32.xlu2 %v3512_v41, %s3163_s0 }
 0x4b2   :  { %v498_v42 = vpop.permute.xlu2 %497 }
 0x4c9   :  { %v494_v44 = vpop.permute.xlu1 %493 }
 0x4ca   :  { %v500_v45 = vsel %vm361_vm11, %v494_v44, %v498_v42 }
 0x4cb   :  { %2764 = vmatmul.msk.f32.vlgmr.msra.gmra.mxu2 %vm225_vm12, %v500_v45  ;;  %2765 = vmatmul.msk.f32.vlgmr.msra.gmra.mxu3 %vm225_vm12, %v500_v45 }
 0x4cc   :  { %924 = vmatpush.msra.mxu2 %v3231_v1  ;;  %944 = vmatpush.msra.mxu3 %v3255_v9 }
 0x4ce   :  { %925 = vmatpush.msra.mxu2 %v3237_v3  ;;  %945 = vmatpush.msra.mxu3 %v3260_v11 }
 0x4d0   :  { %926 = vmatpush.msra.mxu2 %v3242_v5  ;;  %946 = vmatpush.msra.mxu3 %v3281_v16 }
 0x4d2   :  { %927 = vmatpush.msra.mxu2 %v3246_v6  ;;  %947 = vmatpush.msra.mxu3 %v3283_v17 }
 0x4d4   :  { %928 = vmatpush.msra.mxu2 %v3257_v10  ;;  %948 = vmatpush.msra.mxu3 %v3287_v18 }
 0x4d6   :  { %929 = vmatpush.msra.mxu2 %v3264_v12  ;;  %949 = vmatpush.msra.mxu3 %v3294_v20 }
 0x4d8   :  { %930 = vmatpush.msra.mxu2 %v3273_v14  ;;  %950 = vmatpush.msra.mxu3 %v3307_v22 }
 0x4da   :  { %931 = vmatpush.msra.mxu2 %v3279_v15  ;;  %951 = vmatpush.msra.mxu3 %v3309_v23 }
 0x54e   :  { %v521_v47 = vpop.f32.mrf.mxu2  ;;  %v541_v49 = vpop.f32.mrf.mxu3 }
 0x54f   :  { %v545_v52 = vadd.f32 %v521_v47, %v135_v63  ;;  %v547_v53 = vadd.f32 %v541_v49, %v3411_v48 }
 0x551   :  { %2882 = vtanh.f32 %v545_v52  ;;  %v2766_v58 = vmul.f32 -1.442695, %v545_v52  ;;  %v2767_v59 = vmul.f32 -1.442695, %v547_v53 }
 0x552   :  { %2884 = vtanh.f32 %v547_v53 }
 0x553   :  { %2886 = vpow2.f32 %v2766_v58  ;;  %v3547_v58 = vsel %vm484_vm5, %v3492_v55, %v3489_v30 }
 0x554   :  { %2888 = vpow2.f32 %v2767_v59 }
 0x557   :  { %v2883_v54 = vpop.eup %2882 }
 0x558   :  { %v2885_v56 = vpop.eup %2884  ;;  %570 = vrot.lane.b32.xlu0 %v2883_v54, %s3163_s0 }
 0x559   :  { %607 = vrot.lane.b32.xlu1 %v2885_v56, %s3163_s0  ;;  %v2887_v61 = vpop.eup %2886 }
 0x55a   :  { %v2889_v62 = vpop.eup %2888  ;;  %v551_v4 = vadd.f32 1.0, %v2887_v61 }
 0x55b   :  { %v588_v7 = vadd.f32 1.0, %v2889_v62 }
 0x55c   :  { %2890 = vrcp.f32 %v551_v4  ;;  %v563_v36 = vand.u32 2147483648, %v551_v4  ;;  %vm557_vm13 = vweird.f32 %v551_v4  ;;  %v561_v38 = vand.u32 2147483647, %v551_v4 }
 0x55d   :  { %2892 = vrcp.f32 %v588_v7  ;;  %v600_v37 = vand.u32 2147483648, %v588_v7  ;;  %vm594_vm14 = vweird.f32 %v588_v7  ;;  %v598_v42 = vand.u32 2147483647, %v588_v7 }
 0x55e   :  { %v564_v60 = vor.u32 1.1754944e-38, %v563_v36  ;;  %vm562_vm1 = vcmp.eq.f32.partialorder %v561_v38, 8.507059e+37 }
 0x55f   :  { %v601_v63 = vor.u32 1.1754944e-38, %v600_v37  ;;  %vm599_vm2 = vcmp.eq.f32.partialorder %v598_v42, 8.507059e+37 }
 0x562   :  { %v2891_v8 = vpop.eup %2890 }
 0x563   :  { %v2893_v48 = vpop.eup %2892  ;;  %v553_v13 = vmul.f32 %v2891_v8, %v551_v4  ;;  %vm558_vm7 = vweird.f32 %v2891_v8 }
 0x564   :  { %v590_v21 = vmul.f32 %v2893_v48, %v588_v7  ;;  %vm595_vm8 = vweird.f32 %v2893_v48  ;;  %vm559_vm15 = vmor %vm557_vm13, %vm558_vm7  ;;  %v3558_v7 = vsel %vm485_vm6, %v3482_v28, %v3479_v25 }
 0x565   :  { %v554_v24 = vsub.f32 1.0, %v553_v13  ;;  %vm596_vm0 = vmor %vm594_vm14, %vm595_vm8 }
 0x566   :  { %v591_v26 = vsub.f32 1.0, %v590_v21 }
 0x567   :  { %v555_v27 = vmul.f32 %v2891_v8, %v554_v24 }
 0x568   :  { %v592_v29 = vmul.f32 %v2893_v48, %v591_v26 }
 0x569   :  { %v556_v31 = vadd.f32 %v2891_v8, %v555_v27 }
 0x56a   :  { %v593_v33 = vadd.f32 %v2893_v48, %v592_v29 }
 0x56b   :  { %v560_v44 = vsel %vm559_vm15, %v2891_v8, %v556_v31 }
 0x56c   :  { %v597_v45 = vsel %vm596_vm0, %v2893_v48, %v593_v33  ;;  %v565_v49 = vsel %vm562_vm1, %v564_v60, %v560_v44 }
 0x56d   :  { %v602_v53 = vsel %vm599_vm2, %v601_v63, %v597_v45  ;;  %v568_v59 = vmul.f32 %v565_v49, %v3547_v58 }
 0x56e   :  { %v605_v8 = vmul.f32 %v602_v53, %v3558_v7 }
 0x5ca   :  { %v571_v47 = vpop.permute.xlu0 %570 }
 0x5cb   :  { %v608_v52 = vpop.permute.xlu1 %607  ;;  %v573_v54 = vmul.f32 %v571_v47, %v565_v49 }
 0x5cc   :  { %v610_v56 = vmul.f32 %v608_v52, %v602_v53 }
 0x5cd   :  { %575 = vrot.lane.b32.xlu2 %v573_v54, %s3165_s1 }
 0x5ce   :  { %612 = vrot.lane.b32.xlu0 %v610_v56, %s3165_s1 }
 0x627   :  { %v576_v61 = vpop.permute.xlu2 %575 }
 0x628   :  { %v3550_v62 = vadd.f32 %v576_v61, %v568_v59 }
 0x62a   :  { %2894 = vtanh.f32 %v3550_v62 }
 0x630   :  { %v2895_v4 = vpop.eup %2894 }
 0x631   :  { %581 = vrot.lane.b32.xlu1 %v2895_v4, %s3163_s0 }
 0x640   :  { %v613_v30 = vpop.permute.xlu0 %612 }
 0x641   :  { %v3561_v55 = vadd.f32 %v613_v30, %v605_v8  ;;  %v3616_v30 = vsel %vm622_vm3, %v3550_v62, %v3547_v58 }
 0x643   :  { %2896 = vtanh.f32 %v3561_v55 }
 0x649   :  { %v2897_v48 = vpop.eup %2896 }
 0x64a   :  { %618 = vrot.lane.b32.xlu2 %v2897_v48, %s3163_s0  ;;  %v3622_v48 = vsel %vm623_vm4, %v3561_v55, %v3558_v7 }
 0x6a3   :  { %v582_v13 = vpop.permute.xlu1 %581 }
 0x6a4   :  { %v619_v21 = vpop.permute.xlu2 %618  ;;  %v3565_v24 = vmul.f32 %v582_v13, %v565_v49 }
 0x6a5   :  { %v3568_v26 = vmul.f32 %v619_v21, %v602_v53 }
 0x6a6   :  { %v3575_v25 = vsel %vm622_vm3, %v3565_v24, %v3506_v51 }
 0x6a7   :  { %v3581_v28 = vsel %vm623_vm4, %v3568_v26, %v3512_v41  ;;  %631 = vrot.lane.b32.xlu0 %v3575_v25, %s3165_s1 }
 0x6a8   :  { %635 = vrot.lane.b32.xlu1 %v3581_v28, %s3163_s0 }
 0x719   :  { %v632_v27 = vpop.permute.xlu0 %631 }
 0x71a   :  { %v636_v29 = vpop.permute.xlu1 %635 }
 0x71b   :  { %v638_v31 = vsel %vm361_vm11, %v632_v27, %v636_v29 }
 0x71c   :  { %2768 = vmatmul.msk.f32.vlgmr.msrb.gmra.mxu2 %vm225_vm12, %v638_v31  ;;  %2769 = vmatmul.msk.f32.vlgmr.msrb.gmra.mxu3 %vm225_vm12, %v638_v31 }
 0x71d   :  { %1196 = vmatpush.msrb.mxu2 %v3231_v1  ;;  %1216 = vmatpush.msrb.mxu3 %v3255_v9  ;;  %v137_v1 = vpop.f32.mrf.mxu0 }
 0x71f   :  { %1197 = vmatpush.msrb.mxu2 %v3237_v3  ;;  %1217 = vmatpush.msrb.mxu3 %v3260_v11  ;;  %v138_v3 = vadd.f32 %v137_v1, %v3401_v35 }
 0x721   :  { %1198 = vmatpush.msrb.mxu2 %v3242_v5  ;;  %1218 = vmatpush.msrb.mxu3 %v3281_v16 }
 0x723   :  { %1199 = vmatpush.msrb.mxu2 %v3246_v6  ;;  %1219 = vmatpush.msrb.mxu3 %v3283_v17 }
 0x725   :  { %1200 = vmatpush.msrb.mxu2 %v3257_v10  ;;  %1220 = vmatpush.msrb.mxu3 %v3287_v18 }
 0x727   :  { %1201 = vmatpush.msrb.mxu2 %v3264_v12  ;;  %1221 = vmatpush.msrb.mxu3 %v3294_v20 }
 0x729   :  { %1202 = vmatpush.msrb.mxu2 %v3273_v14  ;;  %1222 = vmatpush.msrb.mxu3 %v3307_v22 }
 0x72b   :  { %1203 = vmatpush.msrb.mxu2 %v3279_v15  ;;  %1223 = vmatpush.msrb.mxu3 %v3309_v23 }
 0x79f   :  { %v659_v5 = vpop.f32.mrf.mxu2  ;;  %v679_v6 = vpop.f32.mrf.mxu3 }
 0x7a0   :  { %v683_v9 = vadd.f32 %v659_v5, %v138_v3  ;;  %v685_v10 = vadd.f32 %v679_v6, %v3409_v46 }
 0x7a2   :  { %2898 = vtanh.f32 %v683_v9  ;;  %v2770_v14 = vmul.f32 -1.442695, %v683_v9  ;;  %v2771_v18 = vmul.f32 -1.442695, %v685_v10 }
 0x7a3   :  { %2900 = vtanh.f32 %v685_v10 }
 0x7a4   :  { %2902 = vpow2.f32 %v2770_v14 }
 0x7a8   :  { %v2899_v11 = vpop.eup %2898 }
 0x7a9   :  { %v2901_v12 = vpop.eup %2900  ;;  %708 = vrot.lane.b32.xlu2 %v2899_v11, %s3163_s0 }
 0x7aa   :  { %745 = vrot.lane.b32.xlu0 %v2901_v12, %s3163_s0  ;;  %v2903_v15 = vpop.eup %2902 }
 0x7ab   :  { %v689_v16 = vadd.f32 1.0, %v2903_v15 }
 0x7ad   :  { %2904 = vrcp.f32 %v689_v16  ;;  %v701_v33 = vand.u32 2147483648, %v689_v16  ;;  %vm695_vm8 = vweird.f32 %v689_v16  ;;  %v699_v36 = vand.u32 2147483647, %v689_v16 }
 0x7ae   :  { %2906 = vpow2.f32 %v2771_v18 }
 0x7af   :  { %v702_v38 = vor.u32 1.1754944e-38, %v701_v33  ;;  %vm700_vm14 = vcmp.eq.f32.partialorder %v699_v36, 8.507059e+37 }
 0x7b3   :  { %v2905_v17 = vpop.eup %2904 }
 0x7b4   :  { %v691_v20 = vmul.f32 %v2905_v17, %v689_v16  ;;  %v2907_v46 = vpop.eup %2906  ;;  %vm696_vm7 = vweird.f32 %v2905_v17 }
 0x7b5   :  { %v726_v51 = vadd.f32 1.0, %v2907_v46  ;;  %vm697_vm13 = vmor %vm695_vm8, %vm696_vm7  ;;  %vm760_vm7 = vcmp.gt.s32.totalorder %v3429_v57, 3  ;;  %vm761_vm8 = vcmp.gt.s32.totalorder %v3429_v57, 4 }
 0x7b6   :  { %v692_v22 = vsub.f32 1.0, %v691_v20 }
 0x7b7   :  { %2908 = vrcp.f32 %v726_v51  ;;  %v738_v53 = vand.u32 2147483648, %v726_v51  ;;  %vm732_vm0 = vweird.f32 %v726_v51  ;;  %v736_v54 = vand.u32 2147483647, %v726_v51 }
 0x7b8   :  { %v693_v23 = vmul.f32 %v2905_v17, %v692_v22 }
 0x7b9   :  { %v739_v59 = vor.u32 1.1754944e-38, %v738_v53  ;;  %vm737_vm2 = vcmp.eq.f32.partialorder %v736_v54, 8.507059e+37 }
 0x7ba   :  { %v694_v41 = vadd.f32 %v2905_v17, %v693_v23 }
 0x7bc   :  { %v698_v37 = vsel %vm697_vm13, %v2905_v17, %v694_v41 }
 0x7bd   :  { %v703_v44 = vsel %vm700_vm14, %v702_v38, %v698_v37  ;;  %v2909_v60 = vpop.eup %2908 }
 0x7be   :  { %v728_v63 = vmul.f32 %v2909_v60, %v726_v51  ;;  %vm733_vm15 = vweird.f32 %v2909_v60  ;;  %v706_v13 = vmul.f32 %v703_v44, %v3616_v30 }
 0x7bf   :  { %vm734_vm1 = vmor %vm732_vm0, %vm733_vm15 }
 0x7c0   :  { %v729_v47 = vsub.f32 1.0, %v728_v63 }
 0x7c2   :  { %v730_v49 = vmul.f32 %v2909_v60, %v729_v47 }
 0x7c4   :  { %v731_v52 = vadd.f32 %v2909_v60, %v730_v49 }
 0x7c6   :  { %v735_v56 = vsel %vm734_vm1, %v2909_v60, %v731_v52 }
 0x7c7   :  { %v740_v4 = vsel %vm737_vm2, %v739_v59, %v735_v56 }
 0x7c8   :  { %v743_v21 = vmul.f32 %v740_v4, %v3622_v48 }
 0x803   :  { %v709_v42 = vpop.permute.xlu2 %708 }
 0x804   :  { %v711_v45 = vmul.f32 %v709_v42, %v703_v44 }
 0x806   :  { %713 = vrot.lane.b32.xlu1 %v711_v45, %s3165_s1 }
 0x81c   :  { %v746_v61 = vpop.permute.xlu0 %745 }
 0x81d   :  { %v748_v8 = vmul.f32 %v746_v61, %v740_v4 }
 0x81f   :  { %750 = vrot.lane.b32.xlu2 %v748_v8, %s3165_s1 }
 0x878   :  { %v714_v27 = vpop.permute.xlu1 %713 }
 0x879   :  { %v751_v29 = vpop.permute.xlu2 %750  ;;  %v3626_v31 = vadd.f32 %v714_v27, %v706_v13 }
 0x87a   :  { %v3628_v1 = vadd.f32 %v751_v29, %v743_v21 }
 0x87b   :  { %2910 = vtanh.f32 %v3626_v31 }
 0x87c   :  { %2912 = vtanh.f32 %v3628_v1 }
 0x881   :  { %v2911_v58 = vpop.eup %2910 }
 0x882   :  { %v2913_v62 = vpop.eup %2912  ;;  %719 = vrot.lane.b32.xlu0 %v2911_v58, %s3163_s0 }
 0x883   :  { %756 = vrot.lane.b32.xlu1 %v2913_v62, %s3163_s0 }
 0x8f4   :  { %v720_v7 = vpop.permute.xlu0 %719 }
 0x8f5   :  { %v757_v55 = vpop.permute.xlu1 %756  ;;  %v3634_v3 = vmul.f32 %v720_v7, %v703_v44 }
 0x8f6   :  { %v3637_v5 = vmul.f32 %v757_v55, %v740_v4 }
 0x8f7   :  { %v3644_v6 = vsel %vm760_vm7, %v3634_v3, %v3575_v25  ;;  %v140_v25 = vpop.f32.mrf.mxu0 }
 0x8f8   :  { %v3650_v9 = vsel %vm761_vm8, %v3637_v5, %v3581_v28  ;;  %769 = vrot.lane.b32.xlu2 %v3644_v6, %s3165_s1  ;;  %v141_v16 = vadd.f32 %v140_v25, %v3401_v35 }
 0x8f9   :  { %773 = vrot.lane.b32.xlu0 %v3650_v9, %s3163_s0 }
 0x8ff   :  { %v3659_v14 = vpop.f32.mrf.mxu0 }
 0x907   :  { %v3661_v15 = vpop.f32.mrf.mxu0 }
 0x90f   :  { %v3663_v28 = vpop.f32.mrf.mxu0 }
 0x952   :  { %v770_v10 = vpop.permute.xlu2 %769 }
 0x96b   :  { %v774_v11 = vpop.permute.xlu0 %773 }
 0x96c   :  { %v776_v12 = vsel %vm361_vm11, %v770_v10, %v774_v11  ;;  %v3675_v10 = vsel %vm761_vm8, %v3628_v1, %v3622_v48 }
 0x96d   :  { %2772 = vmatmul.msk.f32.vlgmr.msrb.gmra.mxu0 %vm225_vm12, %v776_v12  ;;  %2773 = vmatmul.msk.f32.vlgmr.msrb.gmra.mxu1 %vm225_vm12, %v776_v12 }
 0x9ea   :  { %v797_v17 = vpop.f32.mrf.mxu0  ;;  %v817_v18 = vpop.f32.mrf.mxu1 }
 0x9eb   :  { %v821_v20 = vadd.f32 %v797_v17, %v141_v16  ;;  %v823_v22 = vadd.f32 %v817_v18, %v3406_v43  ;;  %v3686_v17 = vsel %vm760_vm7, %v3626_v31, %v3616_v30 }
 0x9ed   :  { %2914 = vtanh.f32 %v821_v20  ;;  %v2775_v51 = vmul.f32 -1.442695, %v823_v22  ;;  %v2774_v37 = vmul.f32 -1.442695, %v821_v20 }
 0x9ee   :  { %2916 = vtanh.f32 %v823_v22 }
 0x9ef   :  { %2918 = vpow2.f32 %v2775_v51 }
 0x9f3   :  { %v2915_v23 = vpop.eup %2914 }
 0x9f4   :  { %v2917_v46 = vpop.eup %2916  ;;  %846 = vrot.lane.b32.xlu1 %v2915_v23, %s3163_s0 }
 0x9f5   :  { %883 = vrot.lane.b32.xlu2 %v2917_v46, %s3163_s0  ;;  %v2919_v41 = vpop.eup %2918 }
 0x9f6   :  { %v864_v33 = vadd.f32 1.0, %v2919_v41 }
 0x9f8   :  { %2920 = vrcp.f32 %v864_v33  ;;  %v876_v63 = vand.u32 2147483648, %v864_v33  ;;  %vm870_vm14 = vweird.f32 %v864_v33  ;;  %v874_v47 = vand.u32 2147483647, %v864_v33 }
 0x9f9   :  { %2922 = vpow2.f32 %v2774_v37 }
 0x9fa   :  { %v877_v52 = vor.u32 1.1754944e-38, %v876_v63  ;;  %vm875_vm0 = vcmp.eq.f32.partialorder %v874_v47, 8.507059e+37 }
 0x9fe   :  { %v2921_v36 = vpop.eup %2920 }
 0x9ff   :  { %v866_v38 = vmul.f32 %v2921_v36, %v864_v33  ;;  %v2923_v44 = vpop.eup %2922  ;;  %vm871_vm13 = vweird.f32 %v2921_v36 }
 0xa00   :  { %v827_v45 = vadd.f32 1.0, %v2923_v44  ;;  %vm872_vm15 = vmor %vm870_vm14, %vm871_vm13 }
 0xa01   :  { %v867_v42 = vsub.f32 1.0, %v866_v38 }
 0xa02   :  { %2924 = vrcp.f32 %v827_v45  ;;  %v839_v21 = vand.u32 2147483648, %v827_v45  ;;  %vm833_vm2 = vweird.f32 %v827_v45  ;;  %v837_v27 = vand.u32 2147483647, %v827_v45 }
 0xa03   :  { %v868_v43 = vmul.f32 %v2921_v36, %v867_v42 }
 0xa04   :  { %v840_v58 = vor.u32 1.1754944e-38, %v839_v21  ;;  %vm838_vm13 = vcmp.eq.f32.partialorder %v837_v27, 8.507059e+37 }
 0xa05   :  { %v869_v60 = vadd.f32 %v2921_v36, %v868_v43 }
 0xa07   :  { %v873_v49 = vsel %vm872_vm15, %v2921_v36, %v869_v60 }
 0xa08   :  { %v878_v54 = vsel %vm875_vm0, %v877_v52, %v873_v49  ;;  %v2925_v56 = vpop.eup %2924 }
 0xa09   :  { %v829_v61 = vmul.f32 %v2925_v56, %v827_v45  ;;  %vm834_vm1 = vweird.f32 %v2925_v56  ;;  %v881_v11 = vmul.f32 %v878_v54, %v3675_v10 }
 0xa0a   :  { %vm835_vm10 = vmor %vm833_vm2, %vm834_vm1 }
 0xa0b   :  { %v830_v4 = vsub.f32 1.0, %v829_v61 }
 0xa0d   :  { %v831_v8 = vmul.f32 %v2925_v56, %v830_v4 }
 0xa0f   :  { %v832_v13 = vadd.f32 %v2925_v56, %v831_v8 }
 0xa11   :  { %v836_v29 = vsel %vm835_vm10, %v2925_v56, %v832_v13 }
 0xa12   :  { %v841_v7 = vsel %vm838_vm13, %v840_v58, %v836_v29 }
 0xa13   :  { %v844_v18 = vmul.f32 %v841_v7, %v3686_v17 }
 0xa4f   :  { %v884_v53 = vpop.permute.xlu2 %883 }
 0xa50   :  { %v886_v59 = vmul.f32 %v884_v53, %v878_v54 }
 0xa52   :  { %888 = vrot.lane.b32.xlu1 %v886_v59, %s3165_s1 }
 0xa66   :  { %v847_v62 = vpop.permute.xlu1 %846 }
 0xa67   :  { %v849_v55 = vmul.f32 %v847_v62, %v841_v7 }
 0xa69   :  { %851 = vrot.lane.b32.xlu0 %v849_v55, %s3165_s1 }
 0xac4   :  { %v889_v12 = vpop.permute.xlu1 %888 }
 0xac5   :  { %v3678_v25 = vadd.f32 %v889_v12, %v881_v11 }
 0xac7   :  { %2926 = vtanh.f32 %v3678_v25 }
 0xacd   :  { %v2927_v16 = vpop.eup %2926 }
 0xace   :  { %894 = vrot.lane.b32.xlu0 %v2927_v16, %s3163_s0 }
 0xadb   :  { %v852_v48 = vpop.permute.xlu0 %851 }
 0xadc   :  { %v3689_v1 = vadd.f32 %v852_v48, %v844_v18 }
 0xade   :  { %2928 = vtanh.f32 %v3689_v1 }
 0xae4   :  { %v2929_v20 = vpop.eup %2928 }
 0xae5   :  { %857 = vrot.lane.b32.xlu2 %v2929_v20, %s3163_s0 }
 0xb3f   :  { %v858_v22 = vpop.permute.xlu2 %857 }
 0xb40   :  { %v895_v23 = vpop.permute.xlu0 %894  ;;  %v3693_v46 = vmul.f32 %v858_v22, %v841_v7 }
 0xb41   :  { %v3695_v51 = vmul.f32 %v895_v23, %v878_v54  ;;  %v3727_v23 = vsel %vm761_vm8, %v3689_v1, %v3686_v17 }
 0xb42   :  { %v3701_v30 = vsel %vm761_vm8, %v3693_v46, %v3644_v6  ;;  %v144_v6 = vadd.f32 %v3659_v14, %v3401_v35 }
 0xb43   :  { %v3707_v31 = vsel %vm760_vm7, %v3695_v51, %v3650_v9  ;;  %905 = vrot.lane.b32.xlu1 %v3701_v30, %s3165_s1 }
 0xb44   :  { %909 = vrot.lane.b32.xlu2 %v3707_v31, %s3163_s0 }
 0xb9e   :  { %v910_v41 = vpop.permute.xlu2 %909 }
 0xbb5   :  { %v906_v33 = vpop.permute.xlu1 %905 }
 0xbb6   :  { %v912_v36 = vsel %vm361_vm11, %v906_v33, %v910_v41 }
 0xbb7   :  { %2776 = vmatmul.msk.f32.vlgmr.msra.gmra.mxu2 %vm225_vm12, %v912_v36  ;;  %2777 = vmatmul.msk.f32.vlgmr.msra.gmra.mxu3 %vm225_vm12, %v912_v36 }
 0xc3a   :  { %v933_v37 = vpop.f32.mrf.mxu2  ;;  %v953_v9 = vpop.f32.mrf.mxu3 }
 0xc3b   :  { %v957_v38 = vadd.f32 %v933_v37, %v144_v6  ;;  %v959_v42 = vadd.f32 %v953_v9, %v3404_v39  ;;  %v3738_v37 = vsel %vm760_vm7, %v3678_v25, %v3675_v10 }
 0xc3d   :  { %2930 = vtanh.f32 %v957_v38  ;;  %v2778_v45 = vmul.f32 -1.442695, %v957_v38  ;;  %v2779_v60 = vmul.f32 -1.442695, %v959_v42 }
 0xc3e   :  { %2932 = vtanh.f32 %v959_v42 }
 0xc3f   :  { %2934 = vpow2.f32 %v2778_v45 }
 0xc40   :  { %2936 = vpow2.f32 %v2779_v60 }
 0xc43   :  { %v2931_v44 = vpop.eup %2930 }
 0xc44   :  { %v2933_v43 = vpop.eup %2932  ;;  %982 = vrot.lane.b32.xlu0 %v2931_v44, %s3163_s0 }
 0xc45   :  { %1019 = vrot.lane.b32.xlu1 %v2933_v43, %s3163_s0  ;;  %v2935_v63 = vpop.eup %2934 }
 0xc46   :  { %v2937_v47 = vpop.eup %2936  ;;  %v963_v14 = vadd.f32 1.0, %v2935_v63 }
 0xc47   :  { %v1000_v49 = vadd.f32 1.0, %v2937_v47 }
 0xc48   :  { %2938 = vrcp.f32 %v963_v14  ;;  %v975_v21 = vand.u32 2147483648, %v963_v14  ;;  %vm969_vm15 = vweird.f32 %v963_v14  ;;  %v973_v29 = vand.u32 2147483647, %v963_v14 }
 0xc49   :  { %2940 = vrcp.f32 %v1000_v49  ;;  %v1012_v27 = vand.u32 2147483648, %v1000_v49  ;;  %vm1006_vm0 = vweird.f32 %v1000_v49  ;;  %v1010_v58 = vand.u32 2147483647, %v1000_v49 }
 0xc4a   :  { %v976_v55 = vor.u32 1.1754944e-38, %v975_v21  ;;  %vm974_vm13 = vcmp.eq.f32.partialorder %v973_v29, 8.507059e+37 }
 0xc4b   :  { %v1013_v11 = vor.u32 1.1754944e-38, %v1012_v27  ;;  %vm1011_vm9 = vcmp.eq.f32.partialorder %v1010_v58, 8.507059e+37 }
 0xc4e   :  { %v2939_v52 = vpop.eup %2938 }
 0xc4f   :  { %v2941_v39 = vpop.eup %2940  ;;  %v965_v53 = vmul.f32 %v2939_v52, %v963_v14  ;;  %vm970_vm10 = vweird.f32 %v2939_v52 }
 0xc50   :  { %v1002_v54 = vmul.f32 %v2941_v39, %v1000_v49  ;;  %vm1007_vm14 = vweird.f32 %v2941_v39  ;;  %vm971_vm1 = vmor %vm969_vm15, %vm970_vm10 }
 0xc51   :  { %v966_v56 = vsub.f32 1.0, %v965_v53  ;;  %vm1008_vm2 = vmor %vm1006_vm0, %vm1007_vm14 }
 0xc52   :  { %v1003_v59 = vsub.f32 1.0, %v1002_v54 }
 0xc53   :  { %v967_v61 = vmul.f32 %v2939_v52, %v966_v56 }
 0xc54   :  { %v1004_v4 = vmul.f32 %v2941_v39, %v1003_v59 }
 0xc55   :  { %v968_v8 = vadd.f32 %v2939_v52, %v967_v61 }
 0xc56   :  { %v1005_v13 = vadd.f32 %v2941_v39, %v1004_v4 }
 0xc57   :  { %v972_v62 = vsel %vm971_vm1, %v2939_v52, %v968_v8 }
 0xc58   :  { %v1009_v7 = vsel %vm1008_vm2, %v2941_v39, %v1005_v13  ;;  %v977_v16 = vsel %vm974_vm13, %v976_v55, %v972_v62 }
 0xc59   :  { %v1014_v48 = vsel %vm1011_vm9, %v1013_v11, %v1009_v7  ;;  %v980_v41 = vmul.f32 %v977_v16, %v3727_v23 }
 0xc5a   :  { %v1017_v9 = vmul.f32 %v1014_v48, %v3738_v37 }
 0xcb6   :  { %v983_v12 = vpop.permute.xlu0 %982 }
 0xcb7   :  { %v1020_v18 = vpop.permute.xlu1 %1019  ;;  %v985_v20 = vmul.f32 %v983_v12, %v977_v16 }
 0xcb8   :  { %v1022_v22 = vmul.f32 %v1020_v18, %v1014_v48 }
 0xcb9   :  { %987 = vrot.lane.b32.xlu2 %v985_v20, %s3165_s1 }
 0xcba   :  { %1024 = vrot.lane.b32.xlu0 %v1022_v22, %s3165_s1 }
 0xd13   :  { %v988_v33 = vpop.permute.xlu2 %987 }
 0xd14   :  { %v3730_v36 = vadd.f32 %v988_v33, %v980_v41 }
 0xd16   :  { %2942 = vtanh.f32 %v3730_v36 }
 0xd1c   :  { %v2943_v6 = vpop.eup %2942 }
 0xd1d   :  { %993 = vrot.lane.b32.xlu1 %v2943_v6, %s3163_s0 }
 0xd2c   :  { %v1025_v17 = vpop.permute.xlu0 %1024 }
 0xd2d   :  { %v3741_v1 = vadd.f32 %v1025_v17, %v1017_v9 }
 0xd2f   :  { %2944 = vtanh.f32 %v3741_v1 }
 0xd35   :  { %v2945_v38 = vpop.eup %2944 }
 0xd36   :  { %1030 = vrot.lane.b32.xlu2 %v2945_v38, %s3163_s0 }
 0xd8f   :  { %v994_v42 = vpop.permute.xlu1 %993 }
 0xd90   :  { %v1031_v44 = vpop.permute.xlu2 %1030  ;;  %v3745_v43 = vmul.f32 %v994_v42, %v977_v16 }
 0xd91   :  { %v3747_v45 = vmul.f32 %v1031_v44, %v1014_v48  ;;  %v3779_v44 = vsel %vm623_vm4, %v3730_v36, %v3727_v23 }
 0xd92   :  { %v3753_v10 = vsel %vm623_vm4, %v3745_v43, %v3701_v30  ;;  %v147_v30 = vadd.f32 %v3661_v15, %v3401_v35 }
 0xd93   :  { %v3759_v25 = vsel %vm622_vm3, %v3747_v45, %v3707_v31  ;;  %1041 = vrot.lane.b32.xlu0 %v3753_v10, %s3165_s1 }
 0xd94   :  { %1045 = vrot.lane.b32.xlu1 %v3759_v25, %s3163_s0 }
 0xe05   :  { %v1042_v60 = vpop.permute.xlu0 %1041 }
 0xe06   :  { %v1046_v63 = vpop.permute.xlu1 %1045 }
 0xe07   :  { %v1048_v47 = vsel %vm361_vm11, %v1042_v60, %v1046_v63  ;;  %v3785_v60 = vsel %vm622_vm3, %v3741_v1, %v3738_v37 }
 0xe08   :  { %2780 = vmatmul.msk.f32.vlgmr.msra.gmra.mxu0 %vm225_vm12, %v1048_v47  ;;  %2781 = vmatmul.msk.f32.vlgmr.msra.gmra.mxu1 %vm225_vm12, %v1048_v47 }
 0xe85   :  { %v1069_v14 = vpop.f32.mrf.mxu0  ;;  %v1089_v31 = vpop.f32.mrf.mxu1 }
 0xe86   :  { %v1093_v49 = vadd.f32 %v1069_v14, %v147_v30  ;;  %v1095_v52 = vadd.f32 %v1089_v31, %v3399_v34 }
 0xe88   :  { %2946 = vtanh.f32 %v1093_v49  ;;  %v2782_v54 = vmul.f32 -1.442695, %v1093_v49  ;;  %v2783_v15 = vmul.f32 -1.442695, %v1095_v52 }
 0xe89   :  { %2948 = vtanh.f32 %v1095_v52 }
 0xe8a   :  { %2950 = vpow2.f32 %v2782_v54 }
 0xe8e   :  { %v2947_v39 = vpop.eup %2946 }
 0xe8f   :  { %v2949_v53 = vpop.eup %2948  ;;  %1118 = vrot.lane.b32.xlu2 %v2947_v39, %s3163_s0 }
 0xe90   :  { %1155 = vrot.lane.b32.xlu0 %v2949_v53, %s3163_s0  ;;  %v2951_v56 = vpop.eup %2950 }
 0xe91   :  { %v1099_v59 = vadd.f32 1.0, %v2951_v56 }
 0xe93   :  { %2952 = vrcp.f32 %v1099_v59  ;;  %v1111_v29 = vand.u32 2147483648, %v1099_v59  ;;  %vm1105_vm10 = vweird.f32 %v1099_v59  ;;  %v1109_v58 = vand.u32 2147483647, %v1099_v59 }
 0xe94   :  { %2954 = vpow2.f32 %v2783_v15 }
 0xe95   :  { %v1112_v7 = vor.u32 1.1754944e-38, %v1111_v29  ;;  %vm1110_vm15 = vcmp.eq.f32.partialorder %v1109_v58, 8.507059e+37 }
 0xe99   :  { %v2953_v61 = vpop.eup %2952 }
 0xe9a   :  { %v1101_v4 = vmul.f32 %v2953_v61, %v1099_v59  ;;  %v2955_v34 = vpop.eup %2954  ;;  %vm1106_vm9 = vweird.f32 %v2953_v61 }
 0xe9b   :  { %v1136_v21 = vadd.f32 1.0, %v2955_v34  ;;  %vm1107_vm14 = vmor %vm1105_vm10, %vm1106_vm9 }
 0xe9c   :  { %v1102_v8 = vsub.f32 1.0, %v1101_v4 }
 0xe9d   :  { %2956 = vrcp.f32 %v1136_v21  ;;  %v1148_v41 = vand.u32 2147483648, %v1136_v21  ;;  %vm1142_vm1 = vweird.f32 %v1136_v21  ;;  %v1146_v33 = vand.u32 2147483647, %v1136_v21 }
 0xe9e   :  { %v1103_v13 = vmul.f32 %v2953_v61, %v1102_v8 }
 0xe9f   :  { %v1149_v9 = vor.u32 1.1754944e-38, %v1148_v41  ;;  %vm1147_vm13 = vcmp.eq.f32.partialorder %v1146_v33, 8.507059e+37 }
 0xea0   :  { %v1104_v27 = vadd.f32 %v2953_v61, %v1103_v13 }
 0xea2   :  { %v1108_v62 = vsel %vm1107_vm14, %v2953_v61, %v1104_v27 }
 0xea3   :  { %v1113_v11 = vsel %vm1110_vm15, %v1112_v7, %v1108_v62  ;;  %v2957_v16 = vpop.eup %2956 }
 0xea4   :  { %v1138_v18 = vmul.f32 %v2957_v16, %v1136_v21  ;;  %vm1143_vm0 = vweird.f32 %v2957_v16  ;;  %v1116_v63 = vmul.f32 %v1113_v11, %v3779_v44 }
 0xea5   :  { %vm1144_vm2 = vmor %vm1142_vm1, %vm1143_vm0 }
 0xea6   :  { %v1139_v48 = vsub.f32 1.0, %v1138_v18 }
 0xea8   :  { %v1140_v20 = vmul.f32 %v2957_v16, %v1139_v48 }
 0xeaa   :  { %v1141_v22 = vadd.f32 %v2957_v16, %v1140_v20 }
 0xeac   :  { %v1145_v6 = vsel %vm1144_vm2, %v2957_v16, %v1141_v22 }
 0xead   :  { %v1150_v38 = vsel %vm1147_vm13, %v1149_v9, %v1145_v6 }
 0xeae   :  { %v1153_v47 = vmul.f32 %v1150_v38, %v3785_v60 }
 0xee9   :  { %v1119_v55 = vpop.permute.xlu2 %1118 }
 0xeea   :  { %v1121_v12 = vmul.f32 %v1119_v55, %v1113_v11 }
 0xeec   :  { %1123 = vrot.lane.b32.xlu1 %v1121_v12, %s3165_s1 }
 0xf02   :  { %v1156_v17 = vpop.permute.xlu0 %1155 }
 0xf03   :  { %v1158_v42 = vmul.f32 %v1156_v17, %v1150_v38 }
 0xf05   :  { %1160 = vrot.lane.b32.xlu2 %v1158_v42, %s3165_s1 }
 0xf5e   :  { %v1124_v30 = vpop.permute.xlu1 %1123 }
 0xf5f   :  { %v1161_v14 = vpop.permute.xlu2 %1160  ;;  %v3789_v31 = vadd.f32 %v1124_v30, %v1116_v63 }
 0xf60   :  { %v3791_v49 = vadd.f32 %v1161_v14, %v1153_v47 }
 0xf61   :  { %2958 = vtanh.f32 %v3789_v31 }
 0xf62   :  { %2960 = vtanh.f32 %v3791_v49 }
 0xf67   :  { %v2959_v23 = vpop.eup %2958 }
 0xf68   :  { %v2961_v36 = vpop.eup %2960  ;;  %1129 = vrot.lane.b32.xlu0 %v2959_v23, %s3163_s0 }
 0xf69   :  { %1166 = vrot.lane.b32.xlu1 %v2961_v36, %s3163_s0 }
 0xfda   :  { %v1130_v37 = vpop.permute.xlu0 %1129 }
 0xfdb   :  { %v1167_v1 = vpop.permute.xlu1 %1166  ;;  %v3797_v52 = vmul.f32 %v1130_v37, %v1113_v11 }
 0xfdc   :  { %v3799_v39 = vmul.f32 %v1167_v1, %v1150_v38  ;;  %v1035_v1 = vsel %vm622_vm3, %v3747_v45, 0.0 }
 0xfdd   :  { %v3805_v53 = vsel %vm485_vm6, %v3797_v52, %v3753_v10  ;;  %v150_v10 = vadd.f32 %v3663_v28, %v3401_v35 }
 0xfde   :  { %v3811_v54 = vsel %vm484_vm5, %v3799_v39, %v3759_v25  ;;  %1177 = vrot.lane.b32.xlu2 %v3805_v53, %s3165_s1  ;;  %v1171_v37 = vsel %vm484_vm5, %v3799_v39, 0.0  ;;  %v3850_v39 = vsel %vm484_vm5, %v3791_v49, %v3785_v60  ;;  %v624_v60 = vsel %vm622_vm3, %v3565_v24, 0.0 }
 0xfdf   :  { %1181 = vrot.lane.b32.xlu0 %v3811_v54, %s3163_s0  ;;  %v899_v49 = vsel %vm760_vm7, %v3695_v51, 0.0  ;;  %v3881_v24 = vsel %vm485_vm6, %v3789_v31, %v3779_v44  ;;  %v3897_v44 = vld [vmem:[%s4712_s7 + $0x70] sm:$0xff]  ;;  %v3902_v31 = vld [vmem:[%s4712_s7 + $0x60] sm:$0xff] }
 0xfe0   :  { %1544 = vmatpush.msra.mxu2 %v3897_v44 }
 0xfe2   :  { %1545 = vmatpush.msra.mxu2 %v3902_v31 }
0x1038   :  { %v1178_v56 = vpop.permute.xlu2 %1177 }
0x1051   :  { %v1182_v59 = vpop.permute.xlu0 %1181 }
0x1052   :  { %v1184_v61 = vsel %vm361_vm11, %v1178_v56, %v1182_v59  ;;  %v898_v56 = vsel %vm761_vm8, %v3693_v46, 0.0  ;;  %v625_v59 = vsel %vm623_vm4, %v3568_v26, 0.0  ;;  %v486_v26 = vsel %vm484_vm5, %v3496_v50, 0.0 }
0x1053   :  { %2784 = vmatmul.msk.f32.vlgmr.msrb.gmra.mxu2 %vm225_vm12, %v1184_v61  ;;  %2785 = vmatmul.msk.f32.vlgmr.msrb.gmra.mxu3 %vm225_vm12, %v1184_v61  ;;  %v487_v50 = vsel %vm485_vm6, %v3499_v40, 0.0 }
0x10d6   :  { %v1205_v15 = vpop.f32.mrf.mxu2  ;;  %v1225_v25 = vpop.f32.mrf.mxu3 }
0x10d7   :  { %v1229_v4 = vadd.f32 %v1205_v15, %v150_v10  ;;  %v1231_v8 = vadd.f32 %v1225_v25, %v3397_v32  ;;  %v1034_v15 = vsel %vm623_vm4, %v3745_v43, 0.0 }
0x10d9   :  { %2962 = vtanh.f32 %v1229_v4  ;;  %v2787_v21 = vmul.f32 -1.442695, %v1231_v8  ;;  %v2786_v27 = vmul.f32 -1.442695, %v1229_v4 }
0x10da   :  { %2964 = vtanh.f32 %v1231_v8 }
0x10db   :  { %2966 = vpow2.f32 %v2787_v21  ;;  %v1388_v21 = vld [vmem:[#allocation5 + $0x60] sm:$0xff] }
0x10dc   :  { %2968 = vpow2.f32 %v2786_v27  ;;  %v3908_v27 = vld [vmem:[%s4712_s7 + $0x50] sm:$0xff] }
0x10dd   :  { %1546 = vmatpush.msra.mxu2 %v3908_v27 }
0x10df   :  { %v2963_v13 = vpop.eup %2962 }
0x10e0   :  { %v2965_v34 = vpop.eup %2964  ;;  %1254 = vrot.lane.b32.xlu0 %v2963_v13, %s3163_s0  ;;  %v1390_v13 = vld [vmem:[#allocation5 + $0x70] sm:$0xff] }
0x10e1   :  { %1291 = vrot.lane.b32.xlu1 %v2965_v34, %s3163_s0  ;;  %v2967_v29 = vpop.eup %2966  ;;  %1430 = vmatpush.msrb.mxu0 %v1390_v13  ;;  %v1391_v34 = vld [vmem:[#allocation5 + $0x78] sm:$0xff] }
0x10e2   :  { %v1272_v58 = vadd.f32 1.0, %v2967_v29  ;;  %v2969_v35 = vpop.eup %2968  ;;  %1471 = vmatpush.msrb.mxu1 %v1391_v34  ;;  %v1389_v29 = vld [vmem:[#allocation5 + $0x68] sm:$0xff] }
0x10e3   :  { %v1235_v28 = vadd.f32 1.0, %v2969_v35  ;;  %1431 = vmatpush.msrb.mxu0 %v1388_v21 }
0x10e4   :  { %2970 = vrcp.f32 %v1272_v58  ;;  %v1284_v48 = vand.u32 2147483648, %v1272_v58  ;;  %vm1278_vm10 = vweird.f32 %v1272_v58  ;;  %v1282_v20 = vand.u32 2147483647, %v1272_v58  ;;  %1472 = vmatpush.msrb.mxu1 %v1389_v29 }
0x10e5   :  { %2972 = vrcp.f32 %v1235_v28  ;;  %v1247_v42 = vand.u32 2147483648, %v1235_v28  ;;  %vm1241_vm1 = vweird.f32 %v1235_v28  ;;  %v1245_v63 = vand.u32 2147483647, %v1235_v28 }
0x10e6   :  { %v1285_v33 = vor.u32 1.1754944e-38, %v1284_v48  ;;  %vm1283_vm15 = vcmp.eq.f32.partialorder %v1282_v20, 8.507059e+37  ;;  %v1381_v48 = vld [vmem:[#allocation5 + $0x28] sm:$0xff]  ;;  %v3933_v20 = vld [vmem:[%s4712_s7 + $0x10] sm:$0xff] }
0x10e7   :  { %v1248_v14 = vor.u32 1.1754944e-38, %v1247_v42  ;;  %vm1246_vm13 = vcmp.eq.f32.partialorder %v1245_v63, 8.507059e+37 }
0x10ea   :  { %v2971_v62 = vpop.eup %2970 }
0x10eb   :  { %v1274_v32 = vmul.f32 %v2971_v62, %v1272_v58  ;;  %v2973_v55 = vpop.eup %2972  ;;  %vm1279_vm9 = vweird.f32 %v2971_v62  ;;  %v1386_v58 = vld [vmem:[#allocation5 + $0x50] sm:$0xff] }
0x10ec   :  { %v1237_v12 = vmul.f32 %v2973_v55, %v1235_v28  ;;  %vm1280_vm14 = vmor %vm1278_vm10, %vm1279_vm9  ;;  %vm1242_vm0 = vweird.f32 %v2973_v55  ;;  %vm4718_vm9 = vcmp.gt.s32.totalorder %v3429_v57, 0  ;;  %v1387_v28 = vld [vmem:[#allocation5 + $0x58] sm:$0xff]  ;;  %1432 = vmatpush.msrb.mxu0 %v1386_v58  ;;  %vm4719_vm10 = vcmp.gt.s32.totalorder %v3429_v57, 7 }
0x10ed   :  { %v1275_v7 = vsub.f32 1.0, %v1274_v32  ;;  %vm1243_vm2 = vmor %vm1241_vm1, %vm1242_vm0  ;;  %v1384_v32 = vld [vmem:[#allocation5 + $0x40] sm:$0xff]  ;;  %1473 = vmatpush.msrb.mxu1 %v1387_v28 }
0x10ee   :  { %v1238_v18 = vsub.f32 1.0, %v1237_v12  ;;  %1433 = vmatpush.msrb.mxu0 %v1384_v32  ;;  %v1383_v12 = vld [vmem:[#allocation5 + $0x38] sm:$0xff]  ;;  %v1392_v28 = vld [vmem:[%s4711_s6] sm:$0x3]  ;;  %s3166_s6 = smov 96  }
0x10ef   :  { %v1276_v11 = vmul.f32 %v2971_v62, %v1275_v7  ;;  %v1385_v7 = vld [vmem:[#allocation5 + $0x48] sm:$0xff]  ;;  %v4105_v32 = vperm.slane %v1392_v28, 0 }
0x10f0   :  { %v1239_v41 = vmul.f32 %v2973_v55, %v1238_v18  ;;  %1474 = vmatpush.msrb.mxu1 %v1385_v7  ;;  %v1380_v18 = vld [vmem:[#allocation5 + $0x20] sm:$0xff] }
0x10f1   :  { %v1277_v16 = vadd.f32 %v2971_v62, %v1276_v11  ;;  %v1382_v11 = vld [vmem:[#allocation5 + $0x30] sm:$0xff] }
0x10f2   :  { %v1240_v38 = vadd.f32 %v2973_v55, %v1239_v41  ;;  %1434 = vmatpush.msrb.mxu0 %v1382_v11  ;;  %1475 = vmatpush.msrb.mxu1 %v1383_v12  ;;  %v762_v41 = vsel %vm760_vm7, %v3634_v3, 0.0  ;;  %v763_v3 = vsel %vm761_vm8, %v3637_v5, 0.0  ;;  %v1376_v5 = vld [vmem:[#allocation5] sm:$0xff] }
0x10f3   :  { %v1281_v22 = vsel %vm1280_vm14, %v2971_v62, %v1277_v16  ;;  %v3915_v62 = vld [vmem:[%s4712_s7 + $0x40] sm:$0xff] }
0x10f4   :  { %v1286_v9 = vsel %vm1283_vm15, %v1285_v33, %v1281_v22  ;;  %v1244_v47 = vsel %vm1243_vm2, %v2973_v55, %v1240_v38  ;;  %v3921_v55 = vld [vmem:[%s4712_s7 + $0x30] sm:$0xff]  ;;  %1547 = vmatpush.msra.mxu2 %v3915_v62  ;;  %v3927_v16 = vld [vmem:[%s4712_s7 + $0x20] sm:$0xff]  ;;  %1435 = vmatpush.msrb.mxu0 %v1380_v18  ;;  %v1379_v33 = vld [vmem:[#allocation5 + $0x18] sm:$0xff] }
0x10f5   :  { %v3826_v23 = vsel %vm1246_vm13, %v1248_v14, %v1244_v47  ;;  %v1289_v45 = vmul.f32 %v1286_v9, %v3850_v39  ;;  %v1378_v22 = vld [vmem:[#allocation5 + $0x10] sm:$0xff]  ;;  %1476 = vmatpush.msrb.mxu1 %v1381_v48 }
0x10f6   :  { %v1252_v25 = vmul.f32 %v3826_v23, %v3881_v24  ;;  %1548 = vmatpush.msra.mxu2 %v3921_v55  ;;  %1436 = vmatpush.msrb.mxu0 %v1378_v22 }
0x10f7   :  { %1477 = vmatpush.msrb.mxu1 %v1379_v33 }
0x10f8   :  { %1549 = vmatpush.msra.mxu2 %v3927_v16  ;;  %1437 = vmatpush.msrb.mxu0 %v1376_v5 }
0x10fa   :  { %1550 = vmatpush.msra.mxu2 %v3933_v20  ;;  %2086 = vmatpush.msra.mxu0 %v3897_v44 }
0x10fc   :  { %2087 = vmatpush.msra.mxu0 %v3902_v31 }
0x10fe   :  { %2088 = vmatpush.msra.mxu0 %v3908_v27 }
0x1100   :  { %2089 = vmatpush.msra.mxu0 %v3915_v62 }
0x1102   :  { %2090 = vmatpush.msra.mxu0 %v3921_v55 }
0x1104   :  { %2091 = vmatpush.msra.mxu0 %v3927_v16 }
0x1106   :  { %2092 = vmatpush.msra.mxu0 %v3933_v20 }
0x1152   :  { %v1255_v30 = vpop.permute.xlu0 %1254 }
0x1153   :  { %v1292_v6 = vpop.permute.xlu1 %1291  ;;  %v1257_v36 = vmul.f32 %v1255_v30, %v3826_v23 }
0x1154   :  { %v1294_v17 = vmul.f32 %v1292_v6, %v1286_v9  ;;  %v3943_v6 = vld [vmem:[%s4712_s7] sm:$0xff] }
0x1155   :  { %1551 = vmatpush.msra.mxu2 %v3943_v6  ;;  %2093 = vmatpush.msra.mxu0 %v3943_v6 }
0x1156   :  { %1296 = vrot.lane.b32.xlu2 %v1294_v17, %s3165_s1  ;;  %1552 = vmatmul.f32.vlgmr.msra.gmra.mxu2 %v3162_v19 }
0x1157   :  { %1678 = vmatpush.msrb.mxu2 %v3897_v44 }
0x1159   :  { %1679 = vmatpush.msrb.mxu2 %v3902_v31 }
0x115b   :  { %1680 = vmatpush.msrb.mxu2 %v3908_v27 }
0x115d   :  { %1681 = vmatpush.msrb.mxu2 %v3915_v62 }
0x115e   :  { %1259 = vrot.lane.b32.xlu2 %v1257_v36, %s3165_s1 }
0x115f   :  { %1682 = vmatpush.msrb.mxu2 %v3921_v55 }
0x1161   :  { %1683 = vmatpush.msrb.mxu2 %v3927_v16 }
0x1163   :  { %1684 = vmatpush.msrb.mxu2 %v3933_v20 }
0x1165   :  { %1685 = vmatpush.msrb.mxu2 %v3943_v6 }
0x1166   :  { %1322 = vrot.lane.b32.xlu2 %v1171_v37, %s3163_s0 }
0x1167   :  { %1814 = vmatpush.msra.mxu2 %v3897_v44 }
0x1169   :  { %1815 = vmatpush.msra.mxu2 %v3902_v31 }
0x116b   :  { %1816 = vmatpush.msra.mxu2 %v3908_v27 }
0x116d   :  { %1817 = vmatpush.msra.mxu2 %v3915_v62 }
0x116e   :  { %1331 = vrot.lane.b32.xlu2 %v1035_v1, %s3163_s0  ;;  %v4008_v1 = vld [vmem:[%s4712_s7 + $0x78] sm:$0xff] }
0x116f   :  { %1818 = vmatpush.msra.mxu2 %v3921_v55  ;;  %1564 = vmatpush.msra.mxu3 %v4008_v1 }
0x1171   :  { %1819 = vmatpush.msra.mxu2 %v3927_v16 }
0x1173   :  { %1820 = vmatpush.msra.mxu2 %v3933_v20 }
0x1175   :  { %1821 = vmatpush.msra.mxu2 %v3943_v6 }
0x1176   :  { %1345 = vrot.lane.b32.xlu2 %v898_v56, %s3165_s1  ;;  %v4013_v56 = vld [vmem:[%s4712_s7 + $0x68] sm:$0xff] }
0x1177   :  { %1565 = vmatpush.msra.mxu3 %v4013_v56 }
0x117e   :  { %1358 = vrot.lane.b32.xlu2 %v625_v59, %s3163_s0 }
0x11b0   :  { %v1297_v61 = vpop.permute.xlu2 %1296 }
0x11b1   :  { %v3853_v10 = vadd.f32 %v1297_v61, %v1289_v45  ;;  %v4020_v45 = vld [vmem:[%s4712_s7 + $0x58] sm:$0xff]  ;;  %v4027_v61 = vld [vmem:[%s4712_s7 + $0x48] sm:$0xff] }
0x11b2   :  { %1566 = vmatpush.msra.mxu3 %v4020_v45 }
0x11b3   :  { %2974 = vtanh.f32 %v3853_v10 }
0x11b4   :  { %1567 = vmatpush.msra.mxu3 %v4027_v61 }
0x11b8   :  { %v1260_v51 = vpop.permute.xlu2 %1259 }
0x11b9   :  { %v2975_v46 = vpop.eup %2974  ;;  %v3885_v43 = vadd.f32 %v1260_v51, %v1252_v25  ;;  %v4058_v25 = vld [vmem:[%s4712_s7 + $0x8] sm:$0xff] }
0x11ba   :  { %1302 = vrot.lane.b32.xlu1 %v2975_v46, %s3163_s0 }
0x11bb   :  { %2976 = vtanh.f32 %v3885_v43 }
0x11c0   :  { %v1323_v63 = vpop.permute.xlu2 %1322 }
0x11c1   :  { %v2977_v35 = vpop.eup %2976 }
0x11c2   :  { %1318 = vrot.lane.b32.xlu1 %v486_v26, %s3165_s1  ;;  %v4034_v26 = vld [vmem:[%s4712_s7 + $0x38] sm:$0xff] }
0x11c3   :  { %1568 = vmatpush.msra.mxu3 %v4034_v26 }
0x11c8   :  { %v1332_v36 = vpop.permute.xlu2 %1331 }
0x11ca   :  { %1327 = vrot.lane.b32.xlu1 %v624_v60, %s3165_s1 }
0x11d2   :  { %1340 = vrot.lane.b32.xlu1 %v899_v49, %s3163_s0  ;;  %v4044_v49 = vld [vmem:[%s4712_s7 + $0x28] sm:$0xff] }
0x11d3   :  { %1569 = vmatpush.msra.mxu3 %v4044_v49 }
0x11d9   :  { %v1553_v11 = vpop.f32.mrf.mxu2 }
0x11da   :  { %1354 = vrot.lane.b32.xlu1 %v1034_v15, %s3165_s1  ;;  %v4051_v15 = vld [vmem:[%s4712_s7 + $0x18] sm:$0xff] }
0x11db   :  { %1570 = vmatpush.msra.mxu3 %v4051_v15 }
0x11dd   :  { %1571 = vmatpush.msra.mxu3 %v4058_v25 }
0x11de   :  { %1572 = vmatmul.f32.vlgmr.msra.gmra.mxu3 %v3162_v19 }
0x11df   :  { %1698 = vmatpush.msrb.mxu3 %v4008_v1 }
0x11e1   :  { %1699 = vmatpush.msrb.mxu3 %v4013_v56 }
0x11e2   :  { %1367 = vrot.lane.b32.xlu1 %v487_v50, %s3163_s0  ;;  %v1346_v50 = vpop.permute.xlu2 %1345 }
0x11e3   :  { %1700 = vmatpush.msrb.mxu3 %v4020_v45 }
0x11e5   :  { %1701 = vmatpush.msrb.mxu3 %v4027_v61 }
0x11e7   :  { %1702 = vmatpush.msrb.mxu3 %v4034_v26 }
0x11e9   :  { %1703 = vmatpush.msrb.mxu3 %v4044_v49 }
0x11ea   :  { %v1359_v13 = vpop.permute.xlu2 %1358 }
0x11eb   :  { %1704 = vmatpush.msrb.mxu3 %v4051_v15 }
0x11ed   :  { %1705 = vmatpush.msrb.mxu3 %v4058_v25 }
0x11ef   :  { %1834 = vmatpush.msra.mxu3 %v4008_v1 }
0x11f1   :  { %1835 = vmatpush.msra.mxu3 %v4013_v56 }
0x11f3   :  { %1836 = vmatpush.msra.mxu3 %v4020_v45 }
0x11f5   :  { %1837 = vmatpush.msra.mxu3 %v4027_v61 }
0x11f7   :  { %1838 = vmatpush.msra.mxu3 %v4034_v26 }
0x11f9   :  { %1839 = vmatpush.msra.mxu3 %v4044_v49 }
0x11fb   :  { %1840 = vmatpush.msra.mxu3 %v4051_v15 }
0x11fd   :  { %1841 = vmatpush.msra.mxu3 %v4058_v25 }
0x122c   :  { %v1303_v4 = vpop.permute.xlu1 %1302 }
0x122d   :  { %v3887_v8 = vmul.f32 %v1303_v4, %v1286_v9  ;;  %v1170_v9 = vsel %vm485_vm6, %v3797_v52, 0.0  ;;  %v1377_v52 = vld [vmem:[#allocation5 + $0x8] sm:$0xff] }
0x122e   :  { %1478 = vmatpush.msrb.mxu1 %v1377_v52 }
0x122f   :  { %v1307_v40 = vsel %vm4718_vm9, %v3887_v8, 0.0 }
0x1230   :  { %1313 = vrot.lane.b32.xlu0 %v1307_v40, %s3163_s0  ;;  %2106 = vmatpush.msra.mxu1 %v4008_v1 }
0x1232   :  { %2107 = vmatpush.msra.mxu1 %v4013_v56 }
0x1234   :  { %v1319_v42 = vpop.permute.xlu1 %1318  ;;  %2108 = vmatpush.msra.mxu1 %v4020_v45 }
0x1235   :  { %v1325_v14 = vsel %vm361_vm11, %v1319_v42, %v1323_v63  ;;  %v4123_v42 = vperm.slane %v1392_v28, 1 }
0x1236   :  { %2109 = vmatpush.msra.mxu1 %v4027_v61 }
0x1238   :  { %1265 = vrot.lane.b32.xlu0 %v2977_v35, %s3163_s0  ;;  %2110 = vmatpush.msra.mxu1 %v4034_v26 }
0x123a   :  { %2111 = vmatpush.msra.mxu1 %v4044_v49 }
0x123c   :  { %2112 = vmatpush.msra.mxu1 %v4051_v15 }
0x123e   :  { %2113 = vmatpush.msra.mxu1 %v4058_v25 }
0x1240   :  { %1336 = vrot.lane.b32.xlu0 %v762_v41, %s3165_s1 }
0x1248   :  { %1349 = vrot.lane.b32.xlu0 %v763_v3, %s3163_s0 }
0x1250   :  { %1363 = vrot.lane.b32.xlu0 %v1170_v9, %s3165_s1 }
0x12a2   :  { %v1314_v17 = vpop.permute.xlu0 %1313 }
0x12a3   :  { %v1316_v38 = vsel %vm361_vm11, %v3445_v0, %v1314_v17 }
0x12a4   :  { %2788 = vmatmul.msk.f32.vlgmr.msrb.gmra.mxu0 %vm225_vm12, %v1316_v38  ;;  %2796 = vmatmul.msk.f32.vlgmr.msrb.gmra.mxu1 %vm225_vm12, %v1316_v38 }
0x12a5   :  { %2358 = vmatpush.msrb.mxu0 %v3897_v44  ;;  %2378 = vmatpush.msrb.mxu1 %v4008_v1 }
0x12a7   :  { %2359 = vmatpush.msrb.mxu0 %v3902_v31  ;;  %2379 = vmatpush.msrb.mxu1 %v4013_v56 }
0x12a9   :  { %2360 = vmatpush.msrb.mxu0 %v3908_v27  ;;  %2380 = vmatpush.msrb.mxu1 %v4020_v45 }
0x12aa   :  { %v1266_v47 = vpop.permute.xlu0 %1265 }
0x12ab   :  { %v3988_v30 = vmul.f32 %v1266_v47, %v3826_v23  ;;  %2361 = vmatpush.msrb.mxu0 %v3915_v62  ;;  %v1328_v23 = vpop.permute.xlu1 %1327  ;;  %2381 = vmatpush.msrb.mxu1 %v4027_v61  ;;  %v1573_v47 = vpop.f32.mrf.mxu3 }
0x12ac   :  { %2789 = vmatmul.msk.f32.gmra.mxu0 %vm225_vm12, %v1325_v14  ;;  %2797 = vmatmul.msk.f32.gmra.mxu1 %vm225_vm12, %v1325_v14  ;;  %v1334_v37 = vsel %vm361_vm11, %v1328_v23, %v1332_v36 }
0x12ad   :  { %v1306_v0 = vsel %vm4719_vm10, %v3988_v30, 0.0  ;;  %2362 = vmatpush.msrb.mxu0 %v3921_v55  ;;  %2382 = vmatpush.msrb.mxu1 %v4034_v26 }
0x12ae   :  { %1372 = vrot.lane.b32.xlu2 %v1306_v0, %s3165_s1 }
0x12af   :  { %2363 = vmatpush.msrb.mxu0 %v3927_v16  ;;  %2383 = vmatpush.msrb.mxu1 %v4044_v49 }
0x12b1   :  { %2364 = vmatpush.msrb.mxu0 %v3933_v20  ;;  %2384 = vmatpush.msrb.mxu1 %v4051_v15 }
0x12b2   :  { %v1337_v59 = vpop.permute.xlu0 %1336 }
0x12b3   :  { %2365 = vmatpush.msrb.mxu0 %v3943_v6  ;;  %v1341_v46 = vpop.permute.xlu1 %1340  ;;  %2385 = vmatpush.msrb.mxu1 %v4058_v25 }
0x12b4   :  { %2790 = vmatmul.msk.f32.gmra.mxu0 %vm225_vm12, %v1334_v37  ;;  %2798 = vmatmul.msk.f32.gmra.mxu1 %vm225_vm12, %v1334_v37  ;;  %v1343_v60 = vsel %vm361_vm11, %v1337_v59, %v1341_v46 }
0x12ba   :  { %v1350_v51 = vpop.permute.xlu0 %1349 }
0x12bb   :  { %v1352_v4 = vsel %vm361_vm11, %v1346_v50, %v1350_v51  ;;  %v1355_v40 = vpop.permute.xlu1 %1354 }
0x12bc   :  { %2791 = vmatmul.msk.f32.gmra.mxu0 %vm225_vm12, %v1343_v60  ;;  %2799 = vmatmul.msk.f32.gmra.mxu1 %vm225_vm12, %v1343_v60  ;;  %v1361_v34 = vsel %vm361_vm11, %v1355_v40, %v1359_v13 }
0x12c2   :  { %v1364_v19 = vpop.permute.xlu0 %1363 }
0x12c3   :  { %v1368_v21 = vpop.permute.xlu1 %1367 }
0x12c4   :  { %2792 = vmatmul.msk.f32.gmra.mxu0 %vm225_vm12, %v1352_v4  ;;  %2800 = vmatmul.msk.f32.gmra.mxu1 %vm225_vm12, %v1352_v4  ;;  %v1370_v29 = vsel %vm361_vm11, %v1364_v19, %v1368_v21 }
0x12cc   :  { %2793 = vmatmul.msk.f32.gmra.mxu0 %vm225_vm12, %v1361_v34  ;;  %2801 = vmatmul.msk.f32.gmra.mxu1 %vm225_vm12, %v1361_v34 }
0x12d4   :  { %2794 = vmatmul.msk.f32.gmra.mxu0 %vm225_vm12, %v1370_v29  ;;  %2802 = vmatmul.msk.f32.gmra.mxu1 %vm225_vm12, %v1370_v29 }
0x1308   :  { %v1373_v58 = vpop.permute.xlu2 %1372 }
0x1309   :  { %v1375_v35 = vsel %vm361_vm11, %v1373_v58, %v3447_v2 }
0x130a   :  { %2795 = vmatmul.msk.f32.gmra.mxu0 %vm225_vm12, %v1375_v35  ;;  %2803 = vmatmul.msk.f32.gmra.mxu1 %vm225_vm12, %v1375_v35 }
0x1321   :  { %v1439_v7 = vpop.f32.mrf.mxu0  ;;  %v4109_v2 = vpop.f32.mrf.mxu1 }
0x1322   :  { %v1440_v12 = vadd.f32 %v1439_v7, %v4105_v32 }
0x1324   :  { %v1577_v18 = vadd.f32 %v1553_v11, %v1440_v12 }
0x1326   :  { %2978 = vtanh.f32 %v1577_v18  ;;  %v2804_v9 = vmul.f32 -1.442695, %v1577_v18 }
0x1328   :  { %2980 = vpow2.f32 %v2804_v9 }
0x1329   :  { %v4111_v22 = vpop.f32.mrf.mxu1 }
0x132c   :  { %v2979_v48 = vpop.eup %2978 }
0x132d   :  { %1602 = vrot.lane.b32.xlu0 %v2979_v48, %s3163_s0 }
0x132e   :  { %v2981_v52 = vpop.eup %2980 }
0x132f   :  { %v1583_v17 = vadd.f32 1.0, %v2981_v52 }
0x1331   :  { %v4113_v41 = vpop.f32.mrf.mxu1  ;;  %2982 = vrcp.f32 %v1583_v17  ;;  %v1595_v50 = vand.u32 2147483648, %v1583_v17  ;;  %vm1589_vm15 = vweird.f32 %v1583_v17  ;;  %v1593_v51 = vand.u32 2147483647, %v1583_v17 }
0x1333   :  { %v1596_v40 = vor.u32 1.1754944e-38, %v1595_v50  ;;  %vm1594_vm1 = vcmp.eq.f32.partialorder %v1593_v51, 8.507059e+37 }
0x1337   :  { %v2983_v0 = vpop.eup %2982 }
0x1338   :  { %v1585_v36 = vmul.f32 %v2983_v0, %v1583_v17  ;;  %vm1590_vm14 = vweird.f32 %v2983_v0 }
0x1339   :  { %v4115_v33 = vpop.f32.mrf.mxu1  ;;  %vm1591_vm0 = vmor %vm1589_vm15, %vm1590_vm14  ;;  %vm4720_vm14 = vcmp.gt.s32.totalorder %v3429_v57, 0  ;;  %vm4721_vm15 = vcmp.gt.s32.totalorder %v3429_v57, 7 }
0x133a   :  { %v1586_v37 = vsub.f32 1.0, %v1585_v36 }
0x133c   :  { %v1587_v46 = vmul.f32 %v2983_v0, %v1586_v37 }
0x133e   :  { %v1588_v60 = vadd.f32 %v2983_v0, %v1587_v46 }
0x1340   :  { %v1592_v4 = vsel %vm1591_vm0, %v2983_v0, %v1588_v60 }
0x1341   :  { %v4117_v3 = vpop.f32.mrf.mxu1  ;;  %v1597_v13 = vsel %vm1594_vm1, %v1596_v40, %v1592_v4 }
0x1342   :  { %v1600_v12 = vmul.f32 0.0, %v1597_v13 }
0x1349   :  { %v4119_v5 = vpop.f32.mrf.mxu1 }
0x1351   :  { %v4121_v38 = vpop.f32.mrf.mxu1 }
0x1387   :  { %v1501_v63 = vpop.f32.mrf.mxu1 }
0x1388   :  { %v1502_v14 = vadd.f32 %v1501_v63, %v4123_v42 }
0x138a   :  { %v1579_v23 = vadd.f32 %v1573_v47, %v1502_v14 }
0x138c   :  { %2984 = vtanh.f32 %v1579_v23  ;;  %v2805_v21 = vmul.f32 -1.442695, %v1579_v23 }
0x138e   :  { %2986 = vpow2.f32 %v2805_v21 }
0x1392   :  { %v2985_v59 = vpop.eup %2984 }
0x1393   :  { %1639 = vrot.lane.b32.xlu1 %v2985_v59, %s3163_s0 }
0x1394   :  { %v2987_v29 = vpop.eup %2986 }
0x1395   :  { %v1620_v58 = vadd.f32 1.0, %v2987_v29 }
0x1397   :  { %2988 = vrcp.f32 %v1620_v58  ;;  %v1632_v52 = vand.u32 2147483648, %v1620_v58  ;;  %vm1626_vm13 = vweird.f32 %v1620_v58  ;;  %v1630_v17 = vand.u32 2147483647, %v1620_v58 }
0x1399   :  { %v1633_v47 = vor.u32 1.1754944e-38, %v1632_v52  ;;  %vm1631_vm10 = vcmp.eq.f32.partialorder %v1630_v17, 8.507059e+37 }
0x139d   :  { %v2989_v35 = vpop.eup %2988 }
0x139e   :  { %v1622_v28 = vmul.f32 %v2989_v35, %v1620_v58  ;;  %vm1627_vm2 = vweird.f32 %v2989_v35  ;;  %v1442_v58 = vpop.f32.mrf.mxu0 }
0x139f   :  { %v1603_v34 = vpop.permute.xlu0 %1602  ;;  %vm1628_vm9 = vmor %vm1626_vm13, %vm1627_vm2 }
0x13a0   :  { %v1605_v19 = vmul.f32 %v1603_v34, %v1597_v13  ;;  %v1623_v7 = vsub.f32 1.0, %v1622_v28  ;;  %v1499_v28 = vadd.f32 %v4121_v38, %v4123_v42 }
0x13a2   :  { %1607 = vrot.lane.b32.xlu2 %v1605_v19, %s3165_s1  ;;  %v1624_v11 = vmul.f32 %v2989_v35, %v1623_v7 }
0x13a4   :  { %v1625_v9 = vadd.f32 %v2989_v35, %v1624_v11 }
0x13a6   :  { %v1629_v63 = vsel %vm1628_vm9, %v2989_v35, %v1625_v9  ;;  %v1443_v35 = vadd.f32 %v1442_v58, %v4105_v32 }
0x13a7   :  { %v1634_v23 = vsel %vm1631_vm10, %v1633_v47, %v1629_v63 }
0x13a8   :  { %v1637_v46 = vmul.f32 0.0, %v1634_v23 }
0x13fc   :  { %v1608_v18 = vpop.permute.xlu2 %1607 }
0x13fd   :  { %v4128_v48 = vadd.f32 %v1608_v18, %v1600_v12 }
0x13ff   :  { %2990 = vtanh.f32 %v4128_v48 }
0x1405   :  { %v2991_v14 = vpop.eup %2990  ;;  %v1640_v0 = vpop.permute.xlu1 %1639 }
0x1406   :  { %v1642_v36 = vmul.f32 %v1640_v0, %v1634_v23  ;;  %1613 = vrot.lane.b32.xlu1 %v2991_v14, %s3163_s0 }
0x1408   :  { %1644 = vrot.lane.b32.xlu0 %v1642_v36, %s3165_s1 }
0x1478   :  { %v1614_v37 = vpop.permute.xlu1 %1613 }
0x1479   :  { %v1616_v59 = vmul.f32 %v1614_v37, %v1597_v13 }
0x147a   :  { %v1645_v60 = vpop.permute.xlu0 %1644 }
0x147b   :  { %v4133_v50 = vadd.f32 %v1645_v60, %v1637_v46  ;;  %v4137_v51 = vsel %vm4720_vm14, %v1616_v59, 0.0 }
0x147c   :  { %1659 = vrot.lane.b32.xlu0 %v4137_v51, %s3165_s1 }
0x147d   :  { %2992 = vtanh.f32 %v4133_v50 }
0x1483   :  { %v2993_v4 = vpop.eup %2992 }
0x1484   :  { %1650 = vrot.lane.b32.xlu2 %v2993_v4, %s3163_s0 }
0x14de   :  { %v1651_v40 = vpop.permute.xlu2 %1650 }
0x14df   :  { %v1653_v34 = vmul.f32 %v1651_v40, %v1634_v23 }
0x14e1   :  { %v4145_v13 = vsel %vm4721_vm15, %v1653_v34, 0.0 }
0x14e2   :  { %1663 = vrot.lane.b32.xlu1 %v4145_v13, %s3163_s0 }
0x14ee   :  { %v4149_v19 = vpop.permute.xlu0 %1659 }
0x1554   :  { %v4151_v21 = vpop.permute.xlu1 %1663 }
0x1555   :  { %v1666_v29 = vsel %vm361_vm11, %v4149_v19, %v4151_v21 }
0x1556   :  { %2806 = vmatmul.msk.f32.vlgmr.msrb.gmra.mxu2 %vm225_vm12, %v1666_v29  ;;  %2807 = vmatmul.msk.f32.vlgmr.msrb.gmra.mxu3 %vm225_vm12, %v1666_v29 }
0x1557   :  { %1950 = vmatpush.msrb.mxu2 %v3897_v44  ;;  %1970 = vmatpush.msrb.mxu3 %v4008_v1 }
0x1559   :  { %1951 = vmatpush.msrb.mxu2 %v3902_v31  ;;  %1971 = vmatpush.msrb.mxu3 %v4013_v56 }
0x155b   :  { %1952 = vmatpush.msrb.mxu2 %v3908_v27  ;;  %1972 = vmatpush.msrb.mxu3 %v4020_v45 }
0x155d   :  { %1953 = vmatpush.msrb.mxu2 %v3915_v62  ;;  %1973 = vmatpush.msrb.mxu3 %v4027_v61 }
0x155f   :  { %1954 = vmatpush.msrb.mxu2 %v3921_v55  ;;  %1974 = vmatpush.msrb.mxu3 %v4034_v26 }
0x1561   :  { %1955 = vmatpush.msrb.mxu2 %v3927_v16  ;;  %1975 = vmatpush.msrb.mxu3 %v4044_v49 }
0x1563   :  { %1956 = vmatpush.msrb.mxu2 %v3933_v20  ;;  %1976 = vmatpush.msrb.mxu3 %v4051_v15 }
0x1565   :  { %1957 = vmatpush.msrb.mxu2 %v3943_v6  ;;  %1977 = vmatpush.msrb.mxu3 %v4058_v25 }
0x15d9   :  { %v1687_v7 = vpop.f32.mrf.mxu2  ;;  %v1707_v11 = vpop.f32.mrf.mxu3 }
0x15da   :  { %v1711_v12 = vadd.f32 %v1687_v7, %v1443_v35  ;;  %v1713_v18 = vadd.f32 %v1707_v11, %v1499_v28 }
0x15dc   :  { %2994 = vtanh.f32 %v1711_v12  ;;  %v2808_v17 = vmul.f32 -1.442695, %v1711_v12  ;;  %v2809_v0 = vmul.f32 -1.442695, %v1713_v18 }
0x15dd   :  { %2996 = vtanh.f32 %v1713_v18 }
0x15de   :  { %2998 = vpow2.f32 %v2808_v17 }
0x15e2   :  { %v2995_v9 = vpop.eup %2994 }
0x15e3   :  { %v2997_v52 = vpop.eup %2996  ;;  %1736 = vrot.lane.b32.xlu2 %v2995_v9, %s3163_s0 }
0x15e4   :  { %1773 = vrot.lane.b32.xlu0 %v2997_v52, %s3163_s0  ;;  %v2999_v63 = vpop.eup %2998 }
0x15e5   :  { %v1717_v47 = vadd.f32 1.0, %v2999_v63 }
0x15e7   :  { %3000 = vrcp.f32 %v1717_v47  ;;  %v1729_v60 = vand.u32 2147483648, %v1717_v47  ;;  %vm1723_vm1 = vweird.f32 %v1717_v47  ;;  %v1727_v4 = vand.u32 2147483647, %v1717_v47 }
0x15e8   :  { %3002 = vpow2.f32 %v2809_v0 }
0x15e9   :  { %v1730_v34 = vor.u32 1.1754944e-38, %v1729_v60  ;;  %vm1728_vm13 = vcmp.eq.f32.partialorder %v1727_v4, 8.507059e+37 }
0x15ed   :  { %v3001_v14 = vpop.eup %3000 }
0x15ee   :  { %v1719_v38 = vmul.f32 %v3001_v14, %v1717_v47  ;;  %v3003_v37 = vpop.eup %3002  ;;  %vm1724_vm0 = vweird.f32 %v3001_v14 }
0x15ef   :  { %v1754_v59 = vadd.f32 1.0, %v3003_v37  ;;  %vm1725_vm2 = vmor %vm1723_vm1, %vm1724_vm0  ;;  %vm4722_vm0 = vcmp.gt.s32.totalorder %v3429_v57, 0  ;;  %vm4723_vm1 = vcmp.gt.s32.totalorder %v3429_v57, 7 }
0x15f0   :  { %v1720_v23 = vsub.f32 1.0, %v1719_v38  ;;  %v4184_v38 = vsel %vm4722_vm0, %v4128_v48, 0.0 }
0x15f1   :  { %3004 = vrcp.f32 %v1754_v59  ;;  %v1766_v9 = vand.u32 2147483648, %v1754_v59  ;;  %vm1760_vm10 = vweird.f32 %v1754_v59  ;;  %v1764_v52 = vand.u32 2147483647, %v1754_v59 }
0x15f2   :  { %v1721_v36 = vmul.f32 %v3001_v14, %v1720_v23  ;;  %v4189_v23 = vsel %vm4723_vm1, %v4133_v50, 0.0 }
0x15f3   :  { %v1767_v63 = vor.u32 1.1754944e-38, %v1766_v9  ;;  %vm1765_vm15 = vcmp.eq.f32.partialorder %v1764_v52, 8.507059e+37 }
0x15f4   :  { %v1722_v46 = vadd.f32 %v3001_v14, %v1721_v36 }
0x15f6   :  { %v1726_v40 = vsel %vm1725_vm2, %v3001_v14, %v1722_v46 }
0x15f7   :  { %v1731_v58 = vsel %vm1728_vm13, %v1730_v34, %v1726_v40  ;;  %v3005_v28 = vpop.eup %3004 }
0x15f8   :  { %v1756_v7 = vmul.f32 %v3005_v28, %v1754_v59  ;;  %vm1761_vm9 = vweird.f32 %v3005_v28  ;;  %v1734_v36 = vmul.f32 %v1731_v58, %v4184_v38 }
0x15f9   :  { %vm1762_vm14 = vmor %vm1760_vm10, %vm1761_vm9 }
0x15fa   :  { %v1757_v11 = vsub.f32 1.0, %v1756_v7 }
0x15fc   :  { %v1758_v12 = vmul.f32 %v3005_v28, %v1757_v11 }
0x15fe   :  { %v1759_v18 = vadd.f32 %v3005_v28, %v1758_v12 }
0x1600   :  { %v1763_v17 = vsel %vm1762_vm14, %v3005_v28, %v1759_v18  ;;  %v1496_v18 = vadd.f32 %v4119_v5, %v4123_v42 }
0x1601   :  { %v1768_v14 = vsel %vm1765_vm15, %v1767_v63, %v1763_v17 }
0x1602   :  { %v1771_v37 = vmul.f32 %v1768_v14, %v4189_v23 }
0x163d   :  { %v1737_v29 = vpop.permute.xlu2 %1736 }
0x163e   :  { %v1739_v35 = vmul.f32 %v1737_v29, %v1731_v58 }
0x1640   :  { %1741 = vrot.lane.b32.xlu1 %v1739_v35, %s3165_s1 }
0x1656   :  { %v1774_v47 = vpop.permute.xlu0 %1773 }
0x1657   :  { %v1776_v0 = vmul.f32 %v1774_v47, %v1768_v14 }
0x1659   :  { %1778 = vrot.lane.b32.xlu2 %v1776_v0, %s3165_s1 }
0x16b2   :  { %v1742_v59 = vpop.permute.xlu1 %1741 }
0x16b3   :  { %v1779_v46 = vpop.permute.xlu2 %1778  ;;  %v4193_v60 = vadd.f32 %v1742_v59, %v1734_v36 }
0x16b4   :  { %v4195_v4 = vadd.f32 %v1779_v46, %v1771_v37 }
0x16b5   :  { %3006 = vtanh.f32 %v4193_v60 }
0x16b6   :  { %3008 = vtanh.f32 %v4195_v4 }
0x16bb   :  { %v3007_v48 = vpop.eup %3006 }
0x16bc   :  { %v3009_v40 = vpop.eup %3008  ;;  %1747 = vrot.lane.b32.xlu0 %v3007_v48, %s3163_s0 }
0x16bd   :  { %1784 = vrot.lane.b32.xlu1 %v3009_v40, %s3163_s0 }
0x172e   :  { %v1748_v50 = vpop.permute.xlu0 %1747 }
0x172f   :  { %v1785_v34 = vpop.permute.xlu1 %1784  ;;  %v4201_v29 = vmul.f32 %v1748_v50, %v1731_v58 }
0x1730   :  { %v4203_v35 = vmul.f32 %v1785_v34, %v1768_v14 }
0x1731   :  { %v4209_v28 = vsel %vm484_vm5, %v4201_v29, %v4137_v51  ;;  %v1445_v51 = vpop.f32.mrf.mxu0 }
0x1732   :  { %v4215_v7 = vsel %vm485_vm6, %v4203_v35, %v4145_v13  ;;  %1795 = vrot.lane.b32.xlu2 %v4209_v28, %s3165_s1  ;;  %v1446_v13 = vadd.f32 %v1445_v51, %v4105_v32 }
0x1733   :  { %1799 = vrot.lane.b32.xlu0 %v4215_v7, %s3163_s0 }
0x178c   :  { %v1796_v58 = vpop.permute.xlu2 %1795 }
0x17a5   :  { %v1800_v11 = vpop.permute.xlu0 %1799 }
0x17a6   :  { %v1802_v12 = vsel %vm361_vm11, %v1796_v58, %v1800_v11 }
0x17a7   :  { %2810 = vmatmul.msk.f32.vlgmr.msra.gmra.mxu2 %vm225_vm12, %v1802_v12  ;;  %2811 = vmatmul.msk.f32.vlgmr.msra.gmra.mxu3 %vm225_vm12, %v1802_v12 }
0x17a8   :  { %2222 = vmatpush.msra.mxu2 %v3897_v44  ;;  %2242 = vmatpush.msra.mxu3 %v4008_v1 }
0x17aa   :  { %2223 = vmatpush.msra.mxu2 %v3902_v31  ;;  %2243 = vmatpush.msra.mxu3 %v4013_v56 }
0x17ac   :  { %2224 = vmatpush.msra.mxu2 %v3908_v27  ;;  %2244 = vmatpush.msra.mxu3 %v4020_v45 }
0x17ae   :  { %2225 = vmatpush.msra.mxu2 %v3915_v62  ;;  %2245 = vmatpush.msra.mxu3 %v4027_v61 }
0x17b0   :  { %2226 = vmatpush.msra.mxu2 %v3921_v55  ;;  %2246 = vmatpush.msra.mxu3 %v4034_v26 }
0x17b2   :  { %2227 = vmatpush.msra.mxu2 %v3927_v16  ;;  %2247 = vmatpush.msra.mxu3 %v4044_v49 }
0x17b4   :  { %2228 = vmatpush.msra.mxu2 %v3933_v20  ;;  %2248 = vmatpush.msra.mxu3 %v4051_v15 }
0x17b6   :  { %2229 = vmatpush.msra.mxu2 %v3943_v6  ;;  %2249 = vmatpush.msra.mxu3 %v4058_v25 }
0x182a   :  { %v1823_v9 = vpop.f32.mrf.mxu2  ;;  %v1843_v52 = vpop.f32.mrf.mxu3 }
0x182b   :  { %v1847_v17 = vadd.f32 %v1823_v9, %v1446_v13  ;;  %v1849_v63 = vadd.f32 %v1843_v52, %v1496_v18 }
0x182d   :  { %3010 = vtanh.f32 %v1847_v17  ;;  %v2813_v0 = vmul.f32 -1.442695, %v1849_v63  ;;  %v2812_v46 = vmul.f32 -1.442695, %v1847_v17 }
0x182e   :  { %3012 = vtanh.f32 %v1849_v63 }
0x182f   :  { %3014 = vpow2.f32 %v2813_v0 }
0x1833   :  { %v3011_v47 = vpop.eup %3010 }
0x1834   :  { %v3013_v14 = vpop.eup %3012  ;;  %1872 = vrot.lane.b32.xlu1 %v3011_v47, %s3163_s0 }
0x1835   :  { %1909 = vrot.lane.b32.xlu2 %v3013_v14, %s3163_s0  ;;  %v3015_v36 = vpop.eup %3014 }
0x1836   :  { %v1890_v37 = vadd.f32 1.0, %v3015_v36 }
0x1838   :  { %3016 = vrcp.f32 %v1890_v37  ;;  %v1902_v11 = vand.u32 2147483648, %v1890_v37  ;;  %vm1896_vm13 = vweird.f32 %v1890_v37  ;;  %v1900_v12 = vand.u32 2147483647, %v1890_v37 }
0x1839   :  { %3018 = vpow2.f32 %v2812_v46 }
0x183a   :  { %v1903_v13 = vor.u32 1.1754944e-38, %v1902_v11  ;;  %vm1901_vm10 = vcmp.eq.f32.partialorder %v1900_v12, 8.507059e+37 }
0x183e   :  { %v3017_v59 = vpop.eup %3016 }
0x183f   :  { %v1892_v5 = vmul.f32 %v3017_v59, %v1890_v37  ;;  %v3019_v40 = vpop.eup %3018  ;;  %vm1897_vm2 = vweird.f32 %v3017_v59 }
0x1840   :  { %v1853_v34 = vadd.f32 1.0, %v3019_v40  ;;  %vm1898_vm9 = vmor %vm1896_vm13, %vm1897_vm2 }
0x1841   :  { %v1893_v48 = vsub.f32 1.0, %v1892_v5 }
0x1842   :  { %3020 = vrcp.f32 %v1853_v34  ;;  %v1865_v36 = vand.u32 2147483648, %v1853_v34  ;;  %vm1859_vm15 = vweird.f32 %v1853_v34  ;;  %v1863_v46 = vand.u32 2147483647, %v1853_v34 }
0x1843   :  { %v1894_v50 = vmul.f32 %v3017_v59, %v1893_v48 }
0x1844   :  { %v1866_v5 = vor.u32 1.1754944e-38, %v1865_v36  ;;  %vm1864_vm1 = vcmp.eq.f32.partialorder %v1863_v46, 8.507059e+37 }
0x1845   :  { %v1895_v58 = vadd.f32 %v3017_v59, %v1894_v50  ;;  %v4251_v50 = vsel %vm485_vm6, %v4195_v4, %v4189_v23 }
0x1847   :  { %v1899_v51 = vsel %vm1898_vm9, %v3017_v59, %v1895_v58 }
0x1848   :  { %v1904_v9 = vsel %vm1901_vm10, %v1903_v13, %v1899_v51  ;;  %v3021_v52 = vpop.eup %3020  ;;  %v4262_v51 = vsel %vm484_vm5, %v4193_v60, %v4184_v38 }
0x1849   :  { %v1855_v63 = vmul.f32 %v3021_v52, %v1853_v34  ;;  %vm1860_vm14 = vweird.f32 %v3021_v52  ;;  %v1907_v58 = vmul.f32 %v1904_v9, %v4251_v50 }
0x184a   :  { %vm1861_vm0 = vmor %vm1859_vm15, %vm1860_vm14 }
0x184b   :  { %v1856_v47 = vsub.f32 1.0, %v1855_v63 }
0x184d   :  { %v1857_v14 = vmul.f32 %v3021_v52, %v1856_v47 }
0x184f   :  { %v1858_v0 = vadd.f32 %v3021_v52, %v1857_v14 }
0x1851   :  { %v1862_v37 = vsel %vm1861_vm0, %v3021_v52, %v1858_v0 }
0x1852   :  { %v1867_v48 = vsel %vm1864_vm1, %v1866_v5, %v1862_v37 }
0x1853   :  { %v1870_v13 = vmul.f32 %v1867_v48, %v4262_v51 }
0x188f   :  { %v1910_v18 = vpop.permute.xlu2 %1909 }
0x1890   :  { %v1912_v17 = vmul.f32 %v1910_v18, %v1904_v9 }
0x1892   :  { %1914 = vrot.lane.b32.xlu1 %v1912_v17, %s3165_s1 }
0x18a6   :  { %v1873_v59 = vpop.permute.xlu1 %1872 }
0x18a7   :  { %v1875_v40 = vmul.f32 %v1873_v59, %v1867_v48 }
0x18a9   :  { %1877 = vrot.lane.b32.xlu0 %v1875_v40, %s3165_s1 }
0x1904   :  { %v1915_v11 = vpop.permute.xlu1 %1914 }
0x1905   :  { %v4254_v12 = vadd.f32 %v1915_v11, %v1907_v58 }
0x1907   :  { %3022 = vtanh.f32 %v4254_v12 }
0x190d   :  { %v3023_v34 = vpop.eup %3022 }
0x190e   :  { %1920 = vrot.lane.b32.xlu0 %v3023_v34, %s3163_s0 }
0x191b   :  { %v1878_v23 = vpop.permute.xlu0 %1877 }
0x191c   :  { %v4265_v4 = vadd.f32 %v1878_v23, %v1870_v13 }
0x191e   :  { %3024 = vtanh.f32 %v4265_v4 }
0x1924   :  { %v3025_v18 = vpop.eup %3024 }
0x1925   :  { %1883 = vrot.lane.b32.xlu2 %v3025_v18, %s3163_s0 }
0x197f   :  { %v1884_v52 = vpop.permute.xlu2 %1883 }
0x1980   :  { %v1921_v17 = vpop.permute.xlu0 %1920  ;;  %v4269_v63 = vmul.f32 %v1884_v52, %v1867_v48 }
0x1981   :  { %v4271_v47 = vmul.f32 %v1921_v17, %v1904_v9 }
0x1982   :  { %v4277_v38 = vsel %vm622_vm3, %v4269_v63, %v4209_v28 }
0x1983   :  { %v4283_v60 = vsel %vm623_vm4, %v4271_v47, %v4215_v7  ;;  %1931 = vrot.lane.b32.xlu1 %v4277_v38, %s3165_s1 }
0x1984   :  { %1935 = vrot.lane.b32.xlu2 %v4283_v60, %s3163_s0 }
0x19de   :  { %v1936_v9 = vpop.permute.xlu2 %1935 }
0x19f5   :  { %v1932_v14 = vpop.permute.xlu1 %1931 }
0x19f6   :  { %v1938_v0 = vsel %vm361_vm11, %v1932_v14, %v1936_v9 }
0x19f7   :  { %2814 = vmatmul.msk.f32.vlgmr.msrb.gmra.mxu2 %vm225_vm12, %v1938_v0  ;;  %2815 = vmatmul.msk.f32.vlgmr.msrb.gmra.mxu3 %vm225_vm12, %v1938_v0 }
0x19f8   :  { %2494 = vmatpush.msrb.mxu2 %v3897_v44  ;;  %2514 = vmatpush.msrb.mxu3 %v4008_v1  ;;  %v1448_v44 = vpop.f32.mrf.mxu0 }
0x19fa   :  { %2495 = vmatpush.msrb.mxu2 %v3902_v31  ;;  %2515 = vmatpush.msrb.mxu3 %v4013_v56  ;;  %v1449_v31 = vadd.f32 %v1448_v44, %v4105_v32 }
0x19fc   :  { %2496 = vmatpush.msrb.mxu2 %v3908_v27  ;;  %2516 = vmatpush.msrb.mxu3 %v4020_v45  ;;  %v1493_v27 = vadd.f32 %v4117_v3, %v4123_v42 }
0x19fe   :  { %2497 = vmatpush.msrb.mxu2 %v3915_v62  ;;  %2517 = vmatpush.msrb.mxu3 %v4027_v61 }
0x1a00   :  { %2498 = vmatpush.msrb.mxu2 %v3921_v55  ;;  %2518 = vmatpush.msrb.mxu3 %v4034_v26 }
0x1a02   :  { %2499 = vmatpush.msrb.mxu2 %v3927_v16  ;;  %2519 = vmatpush.msrb.mxu3 %v4044_v49 }
0x1a04   :  { %2500 = vmatpush.msrb.mxu2 %v3933_v20  ;;  %2520 = vmatpush.msrb.mxu3 %v4051_v15 }
0x1a06   :  { %2501 = vmatpush.msrb.mxu2 %v3943_v6  ;;  %2521 = vmatpush.msrb.mxu3 %v4058_v25 }
0x1a7a   :  { %v1959_v62 = vpop.f32.mrf.mxu2  ;;  %v1979_v55 = vpop.f32.mrf.mxu3 }
0x1a7b   :  { %v1983_v1 = vadd.f32 %v1959_v62, %v1449_v31  ;;  %v1985_v16 = vadd.f32 %v1979_v55, %v1493_v27  ;;  %v4319_v27 = vsel %vm622_vm3, %v4265_v4, %v4262_v51 }
0x1a7d   :  { %3026 = vtanh.f32 %v1983_v1  ;;  %v2816_v6 = vmul.f32 -1.442695, %v1983_v1  ;;  %v2817_v45 = vmul.f32 -1.442695, %v1985_v16 }
0x1a7e   :  { %3028 = vtanh.f32 %v1985_v16 }
0x1a7f   :  { %3030 = vpow2.f32 %v2816_v6 }
0x1a80   :  { %3032 = vpow2.f32 %v2817_v45 }
0x1a83   :  { %v3027_v56 = vpop.eup %3026 }
0x1a84   :  { %v3029_v20 = vpop.eup %3028  ;;  %2008 = vrot.lane.b32.xlu0 %v3027_v56, %s3163_s0  ;;  %v4330_v56 = vsel %vm623_vm4, %v4254_v12, %v4251_v50 }
0x1a85   :  { %2045 = vrot.lane.b32.xlu1 %v3029_v20, %s3163_s0  ;;  %v3031_v61 = vpop.eup %3030 }
0x1a86   :  { %v3033_v26 = vpop.eup %3032  ;;  %v1989_v49 = vadd.f32 1.0, %v3031_v61 }
0x1a87   :  { %v2026_v15 = vadd.f32 1.0, %v3033_v26 }
0x1a88   :  { %3034 = vrcp.f32 %v1989_v49  ;;  %v2001_v40 = vand.u32 2147483648, %v1989_v49  ;;  %vm1995_vm9 = vweird.f32 %v1989_v49  ;;  %v1999_v11 = vand.u32 2147483647, %v1989_v49 }
0x1a89   :  { %3036 = vrcp.f32 %v2026_v15  ;;  %v2038_v58 = vand.u32 2147483648, %v2026_v15  ;;  %vm2032_vm10 = vweird.f32 %v2026_v15  ;;  %v2036_v34 = vand.u32 2147483647, %v2026_v15 }
0x1a8a   :  { %v2002_v18 = vor.u32 1.1754944e-38, %v2001_v40  ;;  %vm2000_vm0 = vcmp.eq.f32.partialorder %v1999_v11, 8.507059e+37 }
0x1a8b   :  { %v2039_v52 = vor.u32 1.1754944e-38, %v2038_v58  ;;  %vm2037_vm1 = vcmp.eq.f32.partialorder %v2036_v34, 8.507059e+37 }
0x1a8e   :  { %v3035_v25 = vpop.eup %3034 }
0x1a8f   :  { %v3037_v3 = vpop.eup %3036  ;;  %v1991_v28 = vmul.f32 %v3035_v25, %v1989_v49  ;;  %vm1996_vm2 = vweird.f32 %v3035_v25 }
0x1a90   :  { %v2028_v7 = vmul.f32 %v3037_v3, %v2026_v15  ;;  %vm2033_vm13 = vweird.f32 %v3037_v3  ;;  %vm1997_vm14 = vmor %vm1995_vm9, %vm1996_vm2 }
0x1a91   :  { %v1992_v36 = vsub.f32 1.0, %v1991_v28  ;;  %vm2034_vm15 = vmor %vm2032_vm10, %vm2033_vm13 }
0x1a92   :  { %v2029_v46 = vsub.f32 1.0, %v2028_v7 }
0x1a93   :  { %v1993_v37 = vmul.f32 %v3035_v25, %v1992_v36  ;;  %v1490_v36 = vadd.f32 %v4115_v33, %v4123_v42 }
0x1a94   :  { %v2030_v5 = vmul.f32 %v3037_v3, %v2029_v46 }
0x1a95   :  { %v1994_v59 = vadd.f32 %v3035_v25, %v1993_v37 }
0x1a96   :  { %v2031_v48 = vadd.f32 %v3037_v3, %v2030_v5 }
0x1a97   :  { %v1998_v13 = vsel %vm1997_vm14, %v3035_v25, %v1994_v59 }
0x1a98   :  { %v2035_v23 = vsel %vm2034_vm15, %v3037_v3, %v2031_v48  ;;  %v2003_v9 = vsel %vm2000_vm0, %v2002_v18, %v1998_v13 }
0x1a99   :  { %v2040_v0 = vsel %vm2037_vm1, %v2039_v52, %v2035_v23  ;;  %v2006_v62 = vmul.f32 %v2003_v9, %v4319_v27 }
0x1a9a   :  { %v2043_v20 = vmul.f32 %v2040_v0, %v4330_v56 }
0x1af6   :  { %v2009_v17 = vpop.permute.xlu0 %2008 }
0x1af7   :  { %v2046_v14 = vpop.permute.xlu1 %2045  ;;  %v2011_v44 = vmul.f32 %v2009_v17, %v2003_v9 }
0x1af8   :  { %v2048_v31 = vmul.f32 %v2046_v14, %v2040_v0 }
0x1af9   :  { %2013 = vrot.lane.b32.xlu2 %v2011_v44, %s3165_s1 }
0x1afa   :  { %2050 = vrot.lane.b32.xlu0 %v2048_v31, %s3165_s1 }
0x1b53   :  { %v2014_v55 = vpop.permute.xlu2 %2013 }
0x1b54   :  { %v4322_v1 = vadd.f32 %v2014_v55, %v2006_v62 }
0x1b56   :  { %3038 = vtanh.f32 %v4322_v1 }
0x1b5c   :  { %v3039_v16 = vpop.eup %3038 }
0x1b5d   :  { %2019 = vrot.lane.b32.xlu1 %v3039_v16, %s3163_s0 }
0x1b6c   :  { %v2051_v51 = vpop.permute.xlu0 %2050 }
0x1b6d   :  { %v4333_v4 = vadd.f32 %v2051_v51, %v2043_v20 }
0x1b6f   :  { %3040 = vtanh.f32 %v4333_v4 }
0x1b75   :  { %v3041_v6 = vpop.eup %3040 }
0x1b76   :  { %2056 = vrot.lane.b32.xlu2 %v3041_v6, %s3163_s0 }
0x1bcf   :  { %v2020_v45 = vpop.permute.xlu1 %2019 }
0x1bd0   :  { %v2057_v61 = vpop.permute.xlu2 %2056  ;;  %v4337_v26 = vmul.f32 %v2020_v45, %v2003_v9 }
0x1bd1   :  { %v4339_v49 = vmul.f32 %v2057_v61, %v2040_v0 }
0x1bd2   :  { %v4345_v50 = vsel %vm760_vm7, %v4337_v26, %v4277_v38  ;;  %v1451_v38 = vpop.f32.mrf.mxu0 }
0x1bd3   :  { %v4351_v12 = vsel %vm761_vm8, %v4339_v49, %v4283_v60  ;;  %2067 = vrot.lane.b32.xlu0 %v4345_v50, %s3165_s1  ;;  %v1452_v46 = vadd.f32 %v1451_v38, %v4105_v32 }
0x1bd4   :  { %2071 = vrot.lane.b32.xlu1 %v4351_v12, %s3163_s0 }
0x1bda   :  { %v4360_v28 = vpop.f32.mrf.mxu0 }
0x1be2   :  { %v4362_v7 = vpop.f32.mrf.mxu0 }
0x1bea   :  { %v4364_v60 = vpop.f32.mrf.mxu0 }
0x1c45   :  { %v2068_v15 = vpop.permute.xlu0 %2067 }
0x1c46   :  { %v2072_v25 = vpop.permute.xlu1 %2071 }
0x1c47   :  { %v2074_v3 = vsel %vm361_vm11, %v2068_v15, %v2072_v25 }
0x1c48   :  { %2818 = vmatmul.msk.f32.vlgmr.msra.gmra.mxu0 %vm225_vm12, %v2074_v3  ;;  %2819 = vmatmul.msk.f32.vlgmr.msra.gmra.mxu1 %vm225_vm12, %v2074_v3 }
0x1cc5   :  { %v2095_v37 = vpop.f32.mrf.mxu0  ;;  %v2115_v5 = vpop.f32.mrf.mxu1 }
0x1cc6   :  { %v2119_v59 = vadd.f32 %v2095_v37, %v1452_v46  ;;  %v2121_v48 = vadd.f32 %v2115_v5, %v1490_v36 }
0x1cc8   :  { %3042 = vtanh.f32 %v2119_v59  ;;  %v2820_v11 = vmul.f32 -1.442695, %v2119_v59  ;;  %v2821_v23 = vmul.f32 -1.442695, %v2121_v48 }
0x1cc9   :  { %3044 = vtanh.f32 %v2121_v48  ;;  %v4377_v48 = vsel %vm760_vm7, %v4322_v1, %v4319_v27 }
0x1cca   :  { %3046 = vpow2.f32 %v2820_v11 }
0x1cce   :  { %v3043_v40 = vpop.eup %3042 }
0x1ccf   :  { %v3045_v58 = vpop.eup %3044  ;;  %2144 = vrot.lane.b32.xlu2 %v3043_v40, %s3163_s0  ;;  %v4383_v40 = vsel %vm761_vm8, %v4333_v4, %v4330_v56 }
0x1cd0   :  { %2181 = vrot.lane.b32.xlu0 %v3045_v58, %s3163_s0  ;;  %v3047_v34 = vpop.eup %3046 }
0x1cd1   :  { %v2125_v13 = vadd.f32 1.0, %v3047_v34 }
0x1cd3   :  { %3048 = vrcp.f32 %v2125_v13  ;;  %v2137_v44 = vand.u32 2147483648, %v2125_v13  ;;  %vm2131_vm13 = vweird.f32 %v2125_v13  ;;  %v2135_v31 = vand.u32 2147483647, %v2125_v13 }
0x1cd4   :  { %3050 = vpow2.f32 %v2821_v23 }
0x1cd5   :  { %v2138_v55 = vor.u32 1.1754944e-38, %v2137_v44  ;;  %vm2136_vm10 = vcmp.eq.f32.partialorder %v2135_v31, 8.507059e+37 }
0x1cd9   :  { %v3049_v33 = vpop.eup %3048 }
0x1cda   :  { %v2127_v18 = vmul.f32 %v3049_v33, %v2125_v13  ;;  %v3051_v9 = vpop.eup %3050  ;;  %vm2132_vm2 = vweird.f32 %v3049_v33 }
0x1cdb   :  { %v2162_v14 = vadd.f32 1.0, %v3051_v9  ;;  %vm2133_vm9 = vmor %vm2131_vm13, %vm2132_vm2 }
0x1cdc   :  { %v2128_v52 = vsub.f32 1.0, %v2127_v18 }
0x1cdd   :  { %3052 = vrcp.f32 %v2162_v14  ;;  %v2174_v3 = vand.u32 2147483648, %v2162_v14  ;;  %vm2168_vm15 = vweird.f32 %v2162_v14  ;;  %v2172_v38 = vand.u32 2147483647, %v2162_v14 }
0x1cde   :  { %v2129_v17 = vmul.f32 %v3049_v33, %v2128_v52 }
0x1cdf   :  { %v2175_v46 = vor.u32 1.1754944e-38, %v2174_v3  ;;  %vm2173_vm1 = vcmp.eq.f32.partialorder %v2172_v38, 8.507059e+37 }
0x1ce0   :  { %v2130_v0 = vadd.f32 %v3049_v33, %v2129_v17 }
0x1ce2   :  { %v2134_v62 = vsel %vm2133_vm9, %v3049_v33, %v2130_v0 }
0x1ce3   :  { %v2139_v20 = vsel %vm2136_vm10, %v2138_v55, %v2134_v62  ;;  %v3053_v6 = vpop.eup %3052 }
0x1ce4   :  { %v2164_v45 = vmul.f32 %v3053_v6, %v2162_v14  ;;  %vm2169_vm14 = vweird.f32 %v3053_v6  ;;  %v2142_v58 = vmul.f32 %v2139_v20, %v4377_v48 }
0x1ce5   :  { %vm2170_vm0 = vmor %vm2168_vm15, %vm2169_vm14 }
0x1ce6   :  { %v2165_v61 = vsub.f32 1.0, %v2164_v45 }
0x1ce8   :  { %v2166_v15 = vmul.f32 %v3053_v6, %v2165_v61 }
0x1cea   :  { %v2167_v25 = vadd.f32 %v3053_v6, %v2166_v15 }
0x1cec   :  { %v2171_v36 = vsel %vm2170_vm0, %v3053_v6, %v2167_v25 }
0x1ced   :  { %v2176_v5 = vsel %vm2173_vm1, %v2175_v46, %v2171_v36 }
0x1cee   :  { %v2179_v11 = vmul.f32 %v2176_v5, %v4383_v40 }
0x1d29   :  { %v2145_v16 = vpop.permute.xlu2 %2144 }
0x1d2a   :  { %v2147_v51 = vmul.f32 %v2145_v16, %v2139_v20 }
0x1d2c   :  { %2149 = vrot.lane.b32.xlu1 %v2147_v51, %s3165_s1 }
0x1d42   :  { %v2182_v37 = vpop.permute.xlu0 %2181 }
0x1d43   :  { %v2184_v59 = vmul.f32 %v2182_v37, %v2176_v5 }
0x1d45   :  { %2186 = vrot.lane.b32.xlu2 %v2184_v59, %s3165_s1 }
0x1d9e   :  { %v2150_v34 = vpop.permute.xlu1 %2149 }
0x1d9f   :  { %v2187_v13 = vpop.permute.xlu2 %2186  ;;  %v4387_v33 = vadd.f32 %v2150_v34, %v2142_v58 }
0x1da0   :  { %v4389_v23 = vadd.f32 %v2187_v13, %v2179_v11 }
0x1da1   :  { %3054 = vtanh.f32 %v4387_v33 }
0x1da2   :  { %3056 = vtanh.f32 %v4389_v23 }
0x1da7   :  { %v3055_v27 = vpop.eup %3054 }
0x1da8   :  { %v3057_v1 = vpop.eup %3056  ;;  %2155 = vrot.lane.b32.xlu0 %v3055_v27, %s3163_s0 }
0x1da9   :  { %2192 = vrot.lane.b32.xlu1 %v3057_v1, %s3163_s0 }
0x1e1a   :  { %v2156_v56 = vpop.permute.xlu0 %2155 }
0x1e1b   :  { %v2193_v4 = vpop.permute.xlu1 %2192  ;;  %v4395_v18 = vmul.f32 %v2156_v56, %v2139_v20 }
0x1e1c   :  { %v4397_v52 = vmul.f32 %v2193_v4, %v2176_v5 }
0x1e1d   :  { %v4403_v17 = vsel %vm761_vm8, %v4395_v18, %v4345_v50  ;;  %v1487_v50 = vadd.f32 %v4113_v41, %v4123_v42 }
0x1e1e   :  { %v4409_v9 = vsel %vm760_vm7, %v4397_v52, %v4351_v12  ;;  %2203 = vrot.lane.b32.xlu2 %v4403_v17, %s3165_s1  ;;  %v1455_v12 = vadd.f32 %v4360_v28, %v4105_v32 }
0x1e1f   :  { %2207 = vrot.lane.b32.xlu0 %v4409_v9, %s3163_s0 }
0x1e78   :  { %v2204_v14 = vpop.permute.xlu2 %2203 }
0x1e91   :  { %v2208_v0 = vpop.permute.xlu0 %2207 }
0x1e92   :  { %v2210_v44 = vsel %vm361_vm11, %v2204_v14, %v2208_v0 }
0x1e93   :  { %2822 = vmatmul.msk.f32.vlgmr.msra.gmra.mxu2 %vm225_vm12, %v2210_v44  ;;  %2823 = vmatmul.msk.f32.vlgmr.msra.gmra.mxu3 %vm225_vm12, %v2210_v44 }
0x1f16   :  { %v2231_v31 = vpop.f32.mrf.mxu2  ;;  %v2251_v62 = vpop.f32.mrf.mxu3 }
0x1f17   :  { %v2255_v55 = vadd.f32 %v2231_v31, %v1455_v12  ;;  %v2257_v16 = vadd.f32 %v2251_v62, %v1487_v50 }
0x1f19   :  { %3058 = vtanh.f32 %v2255_v55  ;;  %v2825_v6 = vmul.f32 -1.442695, %v2257_v16  ;;  %v2824_v15 = vmul.f32 -1.442695, %v2255_v55 }
0x1f1a   :  { %3060 = vtanh.f32 %v2257_v16  ;;  %v4430_v16 = vsel %vm760_vm7, %v4389_v23, %v4383_v40 }
0x1f1b   :  { %3062 = vpow2.f32 %v2825_v6 }
0x1f1f   :  { %v3059_v20 = vpop.eup %3058 }
0x1f20   :  { %v3061_v51 = vpop.eup %3060  ;;  %2280 = vrot.lane.b32.xlu1 %v3059_v20, %s3163_s0 }
0x1f21   :  { %2317 = vrot.lane.b32.xlu2 %v3061_v51, %s3163_s0  ;;  %v3063_v45 = vpop.eup %3062 }
0x1f22   :  { %v2298_v61 = vadd.f32 1.0, %v3063_v45 }
0x1f24   :  { %3064 = vrcp.f32 %v2298_v61  ;;  %v2310_v37 = vand.u32 2147483648, %v2298_v61  ;;  %vm2304_vm13 = vweird.f32 %v2298_v61  ;;  %v2308_v5 = vand.u32 2147483647, %v2298_v61 }
0x1f25   :  { %3066 = vpow2.f32 %v2824_v15 }
0x1f26   :  { %v2311_v58 = vor.u32 1.1754944e-38, %v2310_v37  ;;  %vm2309_vm10 = vcmp.eq.f32.partialorder %v2308_v5, 8.507059e+37 }
0x1f2a   :  { %v3065_v41 = vpop.eup %3064 }
0x1f2b   :  { %v2300_v28 = vmul.f32 %v3065_v41, %v2298_v61  ;;  %v3067_v3 = vpop.eup %3066  ;;  %vm2305_vm2 = vweird.f32 %v3065_v41  ;;  %v4441_v61 = vsel %vm761_vm8, %v4387_v33, %v4377_v48 }
0x1f2c   :  { %v2261_v36 = vadd.f32 1.0, %v3067_v3  ;;  %vm2306_vm9 = vmor %vm2304_vm13, %vm2305_vm2 }
0x1f2d   :  { %v2301_v25 = vsub.f32 1.0, %v2300_v28 }
0x1f2e   :  { %3068 = vrcp.f32 %v2261_v36  ;;  %v2273_v0 = vand.u32 2147483648, %v2261_v36  ;;  %vm2267_vm15 = vweird.f32 %v2261_v36  ;;  %v2271_v44 = vand.u32 2147483647, %v2261_v36 }
0x1f2f   :  { %v2302_v38 = vmul.f32 %v3065_v41, %v2301_v25 }
0x1f30   :  { %v2274_v12 = vor.u32 1.1754944e-38, %v2273_v0  ;;  %vm2272_vm1 = vcmp.eq.f32.partialorder %v2271_v44, 8.507059e+37 }
0x1f31   :  { %v2303_v46 = vadd.f32 %v3065_v41, %v2302_v38 }
0x1f33   :  { %v2307_v59 = vsel %vm2306_vm9, %v3065_v41, %v2303_v46 }
0x1f34   :  { %v2312_v34 = vsel %vm2309_vm10, %v2311_v58, %v2307_v59  ;;  %v3069_v13 = vpop.eup %3068 }
0x1f35   :  { %v2263_v1 = vmul.f32 %v3069_v13, %v2261_v36  ;;  %vm2268_vm14 = vweird.f32 %v3069_v13  ;;  %v2315_v20 = vmul.f32 %v2312_v34, %v4430_v16 }
0x1f36   :  { %vm2269_vm0 = vmor %vm2267_vm15, %vm2268_vm14 }
0x1f37   :  { %v2264_v56 = vsub.f32 1.0, %v2263_v1 }
0x1f39   :  { %v2265_v4 = vmul.f32 %v3069_v13, %v2264_v56 }
0x1f3b   :  { %v2266_v14 = vadd.f32 %v3069_v13, %v2265_v4 }
0x1f3d   :  { %v2270_v50 = vsel %vm2269_vm0, %v3069_v13, %v2266_v14 }
0x1f3e   :  { %v2275_v62 = vsel %vm2272_vm1, %v2274_v12, %v2270_v50 }
0x1f3f   :  { %v2278_v41 = vmul.f32 %v2275_v62, %v4441_v61 }
0x1f7b   :  { %v2318_v11 = vpop.permute.xlu2 %2317 }
0x1f7c   :  { %v2320_v27 = vmul.f32 %v2318_v11, %v2312_v34 }
0x1f7e   :  { %2322 = vrot.lane.b32.xlu1 %v2320_v27, %s3165_s1 }
0x1f92   :  { %v2281_v31 = vpop.permute.xlu1 %2280 }
0x1f93   :  { %v2283_v55 = vmul.f32 %v2281_v31, %v2275_v62 }
0x1f95   :  { %2285 = vrot.lane.b32.xlu0 %v2283_v55, %s3165_s1 }
0x1ff0   :  { %v2323_v51 = vpop.permute.xlu1 %2322 }
0x1ff1   :  { %v4433_v6 = vadd.f32 %v2323_v51, %v2315_v20 }
0x1ff3   :  { %3070 = vtanh.f32 %v4433_v6 }
0x1ff9   :  { %v3071_v45 = vpop.eup %3070 }
0x1ffa   :  { %2328 = vrot.lane.b32.xlu0 %v3071_v45, %s3163_s0 }
0x2007   :  { %v2286_v40 = vpop.permute.xlu0 %2285 }
0x2008   :  { %v4444_v23 = vadd.f32 %v2286_v40, %v2278_v41 }
0x200a   :  { %3072 = vtanh.f32 %v4444_v23 }
0x2010   :  { %v3073_v15 = vpop.eup %3072 }
0x2011   :  { %2291 = vrot.lane.b32.xlu2 %v3073_v15, %s3163_s0 }
0x206b   :  { %v2292_v28 = vpop.permute.xlu2 %2291 }
0x206c   :  { %v2329_v25 = vpop.permute.xlu0 %2328  ;;  %v4448_v3 = vmul.f32 %v2292_v28, %v2275_v62 }
0x206d   :  { %v4450_v38 = vmul.f32 %v2329_v25, %v2312_v34 }
0x206e   :  { %v4456_v48 = vsel %vm623_vm4, %v4448_v3, %v4403_v17  ;;  %v1484_v17 = vadd.f32 %v4111_v22, %v4123_v42 }
0x206f   :  { %v4462_v33 = vsel %vm622_vm3, %v4450_v38, %v4409_v9  ;;  %2339 = vrot.lane.b32.xlu1 %v4456_v48, %s3165_s1  ;;  %v1458_v9 = vadd.f32 %v4362_v7, %v4105_v32 }
0x2070   :  { %2343 = vrot.lane.b32.xlu2 %v4462_v33, %s3163_s0 }
0x20ca   :  { %v2344_v36 = vpop.permute.xlu2 %2343 }
0x20e1   :  { %v2340_v46 = vpop.permute.xlu1 %2339 }
0x20e2   :  { %v2346_v37 = vsel %vm361_vm11, %v2340_v46, %v2344_v36 }
0x20e3   :  { %2826 = vmatmul.msk.f32.vlgmr.msrb.gmra.mxu0 %vm225_vm12, %v2346_v37  ;;  %2827 = vmatmul.msk.f32.vlgmr.msrb.gmra.mxu1 %vm225_vm12, %v2346_v37 }
0x2160   :  { %v2367_v5 = vpop.f32.mrf.mxu0  ;;  %v2387_v59 = vpop.f32.mrf.mxu1 }
0x2161   :  { %v2391_v58 = vadd.f32 %v2367_v5, %v1458_v9  ;;  %v2393_v11 = vadd.f32 %v2387_v59, %v1484_v17 }
0x2163   :  { %3074 = vtanh.f32 %v2391_v58  ;;  %v2828_v27 = vmul.f32 -1.442695, %v2391_v58  ;;  %v2829_v1 = vmul.f32 -1.442695, %v2393_v11 }
0x2164   :  { %3076 = vtanh.f32 %v2393_v11  ;;  %v4483_v11 = vsel %vm623_vm4, %v4444_v23, %v4441_v61 }
0x2165   :  { %3078 = vpow2.f32 %v2828_v27 }
0x2166   :  { %3080 = vpow2.f32 %v2829_v1 }
0x2169   :  { %v3075_v34 = vpop.eup %3074 }
0x216a   :  { %v3077_v13 = vpop.eup %3076  ;;  %2416 = vrot.lane.b32.xlu0 %v3075_v34, %s3163_s0 }
0x216b   :  { %2453 = vrot.lane.b32.xlu1 %v3077_v13, %s3163_s0  ;;  %v3079_v22 = vpop.eup %3078 }
0x216c   :  { %v3081_v56 = vpop.eup %3080  ;;  %v2397_v4 = vadd.f32 1.0, %v3079_v22  ;;  %v4494_v22 = vsel %vm622_vm3, %v4433_v6, %v4430_v16 }
0x216d   :  { %v2434_v7 = vadd.f32 1.0, %v3081_v56 }
0x216e   :  { %3082 = vrcp.f32 %v2397_v4  ;;  %v2409_v45 = vand.u32 2147483648, %v2397_v4  ;;  %vm2403_vm9 = vweird.f32 %v2397_v4  ;;  %v2407_v40 = vand.u32 2147483647, %v2397_v4 }
0x216f   :  { %3084 = vrcp.f32 %v2434_v7  ;;  %v2446_v41 = vand.u32 2147483648, %v2434_v7  ;;  %vm2440_vm10 = vweird.f32 %v2434_v7  ;;  %v2444_v15 = vand.u32 2147483647, %v2434_v7 }
0x2170   :  { %v2410_v36 = vor.u32 1.1754944e-38, %v2409_v45  ;;  %vm2408_vm0 = vcmp.eq.f32.partialorder %v2407_v40, 8.507059e+37  ;;  %v1788_v40 = vsel %vm484_vm5, %v4201_v29, 0.0 }
0x2171   :  { %v2447_v46 = vor.u32 1.1754944e-38, %v2446_v41  ;;  %vm2445_vm1 = vcmp.eq.f32.partialorder %v2444_v15, 8.507059e+37 }
0x2174   :  { %v3083_v14 = vpop.eup %3082 }
0x2175   :  { %v3085_v0 = vpop.eup %3084  ;;  %v2399_v44 = vmul.f32 %v3083_v14, %v2397_v4  ;;  %vm2404_vm2 = vweird.f32 %v3083_v14 }
0x2176   :  { %v2436_v50 = vmul.f32 %v3085_v0, %v2434_v7  ;;  %vm2441_vm13 = vweird.f32 %v3085_v0  ;;  %vm2405_vm14 = vmor %vm2403_vm9, %vm2404_vm2 }
0x2177   :  { %v2400_v12 = vsub.f32 1.0, %v2399_v44  ;;  %vm2442_vm15 = vmor %vm2440_vm10, %vm2441_vm13 }
0x2178   :  { %v2437_v31 = vsub.f32 1.0, %v2436_v50 }
0x2179   :  { %v2401_v62 = vmul.f32 %v3083_v14, %v2400_v12 }
0x217a   :  { %v2438_v55 = vmul.f32 %v3085_v0, %v2437_v31 }
0x217b   :  { %v2402_v20 = vadd.f32 %v3083_v14, %v2401_v62 }
0x217c   :  { %v2439_v51 = vadd.f32 %v3085_v0, %v2438_v55 }
0x217d   :  { %v2406_v28 = vsel %vm2405_vm14, %v3083_v14, %v2402_v20 }
0x217e   :  { %v2443_v25 = vsel %vm2442_vm15, %v3085_v0, %v2439_v51  ;;  %v2411_v17 = vsel %vm2408_vm0, %v2410_v36, %v2406_v28 }
0x217f   :  { %v2448_v5 = vsel %vm2445_vm1, %v2447_v46, %v2443_v25  ;;  %v2414_v34 = vmul.f32 %v2411_v17, %v4483_v11 }
0x2180   :  { %v2451_v56 = vmul.f32 %v2448_v5, %v4494_v22 }
0x21dc   :  { %v2417_v37 = vpop.permute.xlu0 %2416 }
0x21dd   :  { %v2454_v9 = vpop.permute.xlu1 %2453  ;;  %v2419_v59 = vmul.f32 %v2417_v37, %v2411_v17 }
0x21de   :  { %v2456_v58 = vmul.f32 %v2454_v9, %v2448_v5 }
0x21df   :  { %2421 = vrot.lane.b32.xlu2 %v2419_v59, %s3165_s1 }
0x21e0   :  { %2458 = vrot.lane.b32.xlu0 %v2456_v58, %s3165_s1 }
0x2239   :  { %v2422_v13 = vpop.permute.xlu2 %2421 }
0x223a   :  { %v4486_v27 = vadd.f32 %v2422_v13, %v2414_v34 }
0x223c   :  { %3086 = vtanh.f32 %v4486_v27 }
0x2242   :  { %v3087_v1 = vpop.eup %3086 }
0x2243   :  { %2427 = vrot.lane.b32.xlu1 %v3087_v1, %s3163_s0 }
0x2252   :  { %v2459_v61 = vpop.permute.xlu0 %2458 }
0x2253   :  { %v4497_v23 = vadd.f32 %v2459_v61, %v2451_v56 }
0x2255   :  { %3088 = vtanh.f32 %v4497_v23 }
0x225b   :  { %v3089_v4 = vpop.eup %3088 }
0x225c   :  { %2464 = vrot.lane.b32.xlu2 %v3089_v4, %s3163_s0 }
0x22b5   :  { %v2428_v7 = vpop.permute.xlu1 %2427 }
0x22b6   :  { %v2465_v14 = vpop.permute.xlu2 %2464  ;;  %v4501_v0 = vmul.f32 %v2428_v7, %v2411_v17 }
0x22b7   :  { %v2467_v44 = vmul.f32 %v2465_v14, %v2448_v5 }
0x22b8   :  { %v4507_v16 = vsel %vm485_vm6, %v4501_v0, %v4456_v48  ;;  %v1481_v48 = vadd.f32 %v4109_v2, %v4123_v42 }
0x22b9   :  { %v4512_v6 = vsel %vm484_vm5, %v2467_v44, %v4462_v33  ;;  %2475 = vrot.lane.b32.xlu0 %v4507_v16, %s3165_s1  ;;  %v1461_v33 = vadd.f32 %v4364_v60, %v4105_v32  ;;  %v2469_v61 = vsel %vm484_vm5, %v2467_v44, 0.0  ;;  %v1924_v44 = vsel %vm622_vm3, %v4269_v63, 0.0 }
0x22ba   :  { %2479 = vrot.lane.b32.xlu1 %v4512_v6, %s3163_s0 }
0x232b   :  { %v2476_v50 = vpop.permute.xlu0 %2475 }
0x232c   :  { %v2480_v12 = vpop.permute.xlu1 %2479 }
0x232d   :  { %v2482_v31 = vsel %vm361_vm11, %v2476_v50, %v2480_v12 }
0x232e   :  { %2830 = vmatmul.msk.f32.vlgmr.msrb.gmra.mxu2 %vm225_vm12, %v2482_v31  ;;  %2831 = vmatmul.msk.f32.vlgmr.msrb.gmra.mxu3 %vm225_vm12, %v2482_v31 }
0x23b1   :  { %v2503_v62 = vpop.f32.mrf.mxu2  ;;  %v2523_v55 = vpop.f32.mrf.mxu3 }
0x23b2   :  { %v2527_v20 = vadd.f32 %v2503_v62, %v1461_v33  ;;  %v2529_v51 = vadd.f32 %v2523_v55, %v1481_v48 }
0x23b4   :  { %3090 = vtanh.f32 %v2527_v20  ;;  %v2832_v2 = vmul.f32 -1.442695, %v2527_v20  ;;  %v2833_v15 = vmul.f32 -1.442695, %v2529_v51  ;;  %v2197_v20 = vsel %vm760_vm7, %v4397_v52, 0.0 }
0x23b5   :  { %3092 = vtanh.f32 %v2529_v51  ;;  %v2332_v51 = vsel %vm623_vm4, %v4448_v3, 0.0 }
0x23b6   :  { %3094 = vpow2.f32 %v2832_v2 }
0x23ba   :  { %v3091_v45 = vpop.eup %3090 }
0x23bb   :  { %v3093_v41 = vpop.eup %3092  ;;  %2552 = vrot.lane.b32.xlu2 %v3091_v45, %s3163_s0  ;;  %v1789_v45 = vsel %vm485_vm6, %v4203_v35, 0.0  ;;  %v2471_v35 = vsel %vm485_vm6, %v4486_v27, %v4483_v11 }
0x23bc   :  { %2589 = vrot.lane.b32.xlu0 %v3093_v41, %s3163_s0  ;;  %v3095_v32 = vpop.eup %3094 }
0x23bd   :  { %v2533_v42 = vadd.f32 1.0, %v3095_v32 }
0x23bf   :  { %3096 = vrcp.f32 %v2533_v42  ;;  %v2545_v9 = vand.u32 2147483648, %v2533_v42  ;;  %vm2539_vm13 = vweird.f32 %v2533_v42  ;;  %v2543_v29 = vand.u32 2147483647, %v2533_v42 }
0x23c0   :  { %3098 = vpow2.f32 %v2833_v15  ;;  %v2060_v15 = vsel %vm760_vm7, %v4337_v26, 0.0  ;;  %v1925_v26 = vsel %vm623_vm4, %v4271_v47, 0.0 }
0x23c1   :  { %v2546_v59 = vor.u32 1.1754944e-38, %v2545_v9  ;;  %vm2544_vm10 = vcmp.eq.f32.partialorder %v2543_v29, 8.507059e+37 }
0x23c4   :  { %2616 = vrot.lane.b32.xlu0 %v1788_v40, %s3165_s1 }
0x23c5   :  { %v3097_v60 = vpop.eup %3096 }
0x23c6   :  { %v2535_v28 = vmul.f32 %v3097_v60, %v2533_v42  ;;  %v3099_v46 = vpop.eup %3098  ;;  %vm2540_vm2 = vweird.f32 %v3097_v60 }
0x23c7   :  { %v2570_v37 = vadd.f32 1.0, %v3099_v46  ;;  %vm2541_vm9 = vmor %vm2539_vm13, %vm2540_vm2  ;;  %vm4724_vm2 = vcmp.gt.s32.totalorder %v3429_v57, 0  ;;  %vm4725_vm13 = vcmp.gt.s32.totalorder %v3429_v57, 7  ;;  %v2468_v46 = vsel %vm485_vm6, %v4501_v0, 0.0 }
0x23c8   :  { %v2536_v25 = vsub.f32 1.0, %v2535_v28  ;;  %v1310_v63 = vsel %vm4724_vm2, %v3887_v8, %v3811_v54  ;;  %v1309_v52 = vsel %vm4725_vm13, %v3885_v43, %v3881_v24  ;;  %v2473_v54 = vsel %vm484_vm5, %v4497_v23, %v4494_v22  ;;  %vm4726_vm5 = vmmov %vm4725_vm13 }
0x23c9   :  { %3100 = vrcp.f32 %v2570_v37  ;;  %v2582_v50 = vand.u32 2147483648, %v2570_v37  ;;  %vm2576_vm15 = vweird.f32 %v2570_v37  ;;  %v2580_v12 = vand.u32 2147483647, %v2570_v37  ;;  %vm4727_vm6 = vmmov %vm4726_vm5 }
0x23ca   :  { %v2537_v36 = vmul.f32 %v3097_v60, %v2536_v25  ;;  %v2333_v23 = vsel %vm622_vm3, %v4450_v38, 0.0  ;;  %v2196_v25 = vsel %vm761_vm8, %v4395_v18, 0.0  ;;  %v1308_v47 = vsel %vm4726_vm5, %v3988_v30, %v3805_v53  ;;  %vm4728_vm3 = vmmov %vm4724_vm2 }
0x23cb   :  { %v2583_v48 = vor.u32 1.1754944e-38, %v2582_v50  ;;  %vm2581_vm1 = vcmp.eq.f32.partialorder %v2580_v12, 8.507059e+37  ;;  %vm4729_vm4 = vmmov %vm4724_vm2 }
0x23cc   :  { %v2538_v17 = vadd.f32 %v3097_v60, %v2537_v36  ;;  %v2061_v36 = vsel %vm761_vm8, %v4339_v49, 0.0  ;;  %vm4730_vm7 = vmmov %vm4726_vm5 }
0x23cd   :  { %vm4731_vm8 = vmmov %vm4724_vm2 }
0x23ce   :  { %v2542_v5 = vsel %vm2541_vm9, %v3097_v60, %v2538_v17  ;;  %vm4732_vm9 = vmmov %vm4726_vm5 }
0x23cf   :  { %v4531_v34 = vsel %vm2544_vm10, %v2546_v59, %v2542_v5  ;;  %v3101_v1 = vpop.eup %3100  ;;  %vm4733_vm10 = vmmov %vm4724_vm2 }
0x23d0   :  { %v2572_v56 = vmul.f32 %v3101_v1, %v2570_v37  ;;  %vm2577_vm14 = vweird.f32 %v3101_v1  ;;  %v2550_v8 = vmul.f32 %v4531_v34, %v2471_v35 }
0x23d1   :  { %vm2578_vm0 = vmor %vm2576_vm15, %vm2577_vm14 }
0x23d2   :  { %v2573_v4 = vsub.f32 1.0, %v2572_v56 }
0x23d4   :  { %v2574_v7 = vmul.f32 %v3101_v1, %v2573_v4 }
0x23d6   :  { %v2575_v14 = vadd.f32 %v3101_v1, %v2574_v7 }
0x23d8   :  { %v2579_v31 = vsel %vm2578_vm0, %v3101_v1, %v2575_v14 }
0x23d9   :  { %v2584_v62 = vsel %vm2581_vm1, %v2583_v48, %v2579_v31 }
0x23da   :  { %v2587_v3 = vmul.f32 %v2584_v62, %v2473_v54 }
0x2415   :  { %v2553_v58 = vpop.permute.xlu2 %2552 }
0x2416   :  { %v2555_v13 = vmul.f32 %v2553_v58, %v4531_v34 }
0x2418   :  { %2557 = vrot.lane.b32.xlu1 %v2555_v13, %s3165_s1 }
0x2420   :  { %2620 = vrot.lane.b32.xlu1 %v2469_v61, %s3163_s0 }
0x242e   :  { %v2590_v33 = vpop.permute.xlu0 %2589 }
0x242f   :  { %v2592_v55 = vmul.f32 %v2590_v33, %v2584_v62 }
0x2431   :  { %2594 = vrot.lane.b32.xlu2 %v2592_v55, %s3165_s1 }
0x2436   :  { %v2617_v43 = vpop.permute.xlu0 %2616 }
0x2439   :  { %2625 = vrot.lane.b32.xlu2 %v1924_v44, %s3165_s1 }
0x2441   :  { %2638 = vrot.lane.b32.xlu2 %v2197_v20, %s3163_s0 }
0x2449   :  { %2652 = vrot.lane.b32.xlu2 %v2332_v51, %s3165_s1 }
0x2451   :  { %2665 = vrot.lane.b32.xlu2 %v1789_v45, %s3163_s0 }
0x2459   :  { %2688 = vrot.lane.b32.xlu2 %v1310_v63, %s3165_s1 }
0x2461   :  { %2706 = vrot.lane.b32.xlu2 %v1309_v52, %s3166_s6 }
0x248a   :  { %v2558_v41 = vpop.permute.xlu1 %2557 }
0x248b   :  { %v2595_v40 = vpop.permute.xlu2 %2594  ;;  %v2560_v2 = vadd.f32 %v2558_v41, %v2550_v8 }
0x248c   :  { %v2597_v24 = vadd.f32 %v2595_v40, %v2587_v3 }
0x248d   :  { %3102 = vtanh.f32 %v2560_v2  ;;  %v2607_v1 = vsel %vm4732_vm9, %v2560_v2, %v2471_v35 }
0x248e   :  { %3104 = vtanh.f32 %v2597_v24  ;;  %v2609_v13 = vsel %vm4731_vm8, %v2597_v24, %v2473_v54 }
0x2492   :  { %v2621_v32 = vpop.permute.xlu1 %2620 }
0x2493   :  { %v3103_v42 = vpop.eup %3102  ;;  %v2626_v60 = vpop.permute.xlu2 %2625  ;;  %v2623_v11 = vsel %vm361_vm11, %v2617_v43, %v2621_v32 }
0x2494   :  { %v3105_v27 = vpop.eup %3104  ;;  %2675 = vst.msk [vmem:[%s4713_s8 + $0x8] sm:$0xff] %vm225_vm12, %v2623_v11  ;;  %2563 = vrot.lane.b32.xlu0 %v3103_v42, %s3163_s0 }
0x2495   :  { %2600 = vrot.lane.b32.xlu1 %v3105_v27, %s3163_s0 }
0x249b   :  { %v2639_v22 = vpop.permute.xlu2 %2638 }
0x249c   :  { %2629 = vrot.lane.b32.xlu0 %v2333_v23, %s3163_s0 }
0x249d   :  { %2634 = vrot.lane.b32.xlu1 %v2060_v15, %s3165_s1 }
0x24a3   :  { %v2653_v28 = vpop.permute.xlu2 %2652 }
0x24a4   :  { %2643 = vrot.lane.b32.xlu0 %v2196_v25, %s3165_s1 }
0x24a5   :  { %2647 = vrot.lane.b32.xlu1 %v2061_v36, %s3163_s0 }
0x24ab   :  { %v2666_v38 = vpop.permute.xlu2 %2665 }
0x24ac   :  { %2656 = vrot.lane.b32.xlu0 %v1925_v26, %s3163_s0 }
0x24ad   :  { %2661 = vrot.lane.b32.xlu1 %v2468_v46, %s3165_s1 }
0x24b3   :  { %v2689_v18 = vpop.permute.xlu2 %2688 }
0x24b4   :  { %2834 = vst.msk [vmem:[%s4714_s9 + $0x8] sm:$0xff] %vm361_vm11, %v2689_v18 }
0x24b5   :  { %2683 = vrot.lane.b32.xlu1 %v1308_v47, %s3165_s1 }
0x24bb   :  { %v2707_v49 = vpop.permute.xlu2 %2706 }
0x24bc   :  { %2709 = vst.msk [vmem:[%s4715_s10] sm:$0xff] %vm361_vm11, %v2707_v49 }
0x2506   :  { %v2564_v0 = vpop.permute.xlu0 %2563 }
0x2507   :  { %v2601_v37 = vpop.permute.xlu1 %2600  ;;  %v2566_v17 = vmul.f32 %v2564_v0, %v4531_v34 }
0x2508   :  { %v2603_v9 = vmul.f32 %v2601_v37, %v2584_v62 }
0x2509   :  { %v2604_v29 = vsel %vm4727_vm6, %v2566_v17, 0.0 }
0x250a   :  { %v2605_v5 = vsel %vm4728_vm3, %v2603_v9, 0.0  ;;  %v2608_v53 = vsel %vm4729_vm4, %v2603_v9, %v4512_v6  ;;  %2670 = vrot.lane.b32.xlu0 %v2604_v29, %s3165_s1  ;;  %v2606_v6 = vsel %vm4730_vm7, %v2566_v17, %v4507_v16  ;;  %v1311_v16 = vsel %vm4733_vm10, %v3853_v10, %v3850_v39 }
0x250b   :  { %2700 = vrot.lane.b32.xlu1 %v2608_v53, %s3165_s1  ;;  %2611 = vrot.lane.b32.xlu2 %v2605_v5, %s3163_s0 }
0x250e   :  { %v2630_v30 = vpop.permute.xlu0 %2629 }
0x250f   :  { %v2635_v59 = vpop.permute.xlu1 %2634  ;;  %v2632_v58 = vsel %vm361_vm11, %v2626_v60, %v2630_v30 }
0x2510   :  { %v2641_v34 = vsel %vm361_vm11, %v2635_v59, %v2639_v22  ;;  %2676 = vst.msk [vmem:[%s4713_s8 + $0x10] sm:$0xff] %vm225_vm12, %v2632_v58 }
0x2511   :  { %2677 = vst.msk [vmem:[%s4713_s8 + $0x18] sm:$0xff] %vm225_vm12, %v2641_v34 }
0x2512   :  { %2694 = vrot.lane.b32.xlu0 %v2606_v6, %s3165_s1 }
0x2513   :  { %2723 = vrot.lane.b32.xlu2 %v2609_v13, %s3166_s6  ;;  %2717 = vrot.lane.b32.xlu1 %v2607_v1, %s3166_s6 }
0x2516   :  { %v2644_v56 = vpop.permute.xlu0 %2643 }
0x2517   :  { %v2648_v61 = vpop.permute.xlu1 %2647 }
0x2518   :  { %v2650_v4 = vsel %vm361_vm11, %v2644_v56, %v2648_v61 }
0x2519   :  { %2678 = vst.msk [vmem:[%s4713_s8 + $0x20] sm:$0xff] %vm225_vm12, %v2650_v4 }
0x251a   :  { %2711 = vrot.lane.b32.xlu0 %v1311_v16, %s3166_s6 }
0x251e   :  { %v2657_v7 = vpop.permute.xlu0 %2656 }
0x251f   :  { %v2662_v14 = vpop.permute.xlu1 %2661  ;;  %v2659_v50 = vsel %vm361_vm11, %v2653_v28, %v2657_v7 }
0x2520   :  { %v2668_v12 = vsel %vm361_vm11, %v2662_v14, %v2666_v38  ;;  %2679 = vst.msk [vmem:[%s4713_s8 + $0x28] sm:$0xff] %vm225_vm12, %v2659_v50 }
0x2521   :  { %2680 = vst.msk [vmem:[%s4713_s8 + $0x30] sm:$0xff] %vm225_vm12, %v2668_v12 }
0x2527   :  { %v2684_v57 = vpop.permute.xlu1 %2683 }
0x2528   :  { %2686 = vst.msk [vmem:[%s4714_s9] sm:$0xff] %vm361_vm11, %v2684_v57 }
0x2565   :  { %v2612_v39 = vpop.permute.xlu2 %2611 }
0x2566   :  { %v2614_v10 = vsel %vm361_vm11, %v4149_v19, %v2612_v39 }
0x2567   :  { %2674 = vst.msk [vmem:[%s4713_s8] sm:$0xff] %vm225_vm12, %v2614_v10 }
0x256d   :  { %v2724_v31 = vpop.permute.xlu2 %2723 }
0x256e   :  { %2839 = vst.msk [vmem:[%s4715_s10 + $0x18] sm:$0xff] %vm361_vm11, %v2724_v31 }
0x257c   :  { %v2671_v48 = vpop.permute.xlu0 %2670 }
0x257d   :  { %v2701_v33 = vpop.permute.xlu1 %2700  ;;  %v2673_v62 = vsel %vm361_vm11, %v2671_v48, %v4151_v21 }
0x257e   :  { %2836 = vst.msk [vmem:[%s4714_s9 + $0x18] sm:$0xff] %vm361_vm11, %v2701_v33 }
0x257f   :  { %2681 = vst.msk [vmem:[%s4713_s8 + $0x38] sm:$0xff] %vm225_vm12, %v2673_v62 }
0x2584   :  { %v2695_v19 = vpop.permute.xlu0 %2694 }
0x2585   :  { %v2718_v55 = vpop.permute.xlu1 %2717  ;;  %2835 = vst.msk [vmem:[%s4714_s9 + $0x10] sm:$0xff] %vm361_vm11, %v2695_v19 }
0x2586   :  { %2838 = vst.msk [vmem:[%s4715_s10 + $0x10] sm:$0xff] %vm361_vm11, %v2718_v55 }
0x258c   :  { %v2712_v21 = vpop.permute.xlu0 %2711 }
0x258d   :  { %2837 = vst.msk [vmem:[%s4715_s10 + $0x8] sm:$0xff] %vm361_vm11, %v2712_v21 }
0x258e   :  { %2740 = vsyncpa [#allocation4], 1 }
0x258f   :  { %2741 = vsyncpa [#allocation6], 1 }

</bundles_post_ra>
